<compile_context>
chip_gen: v7x
topology: tpu7x:2x2x1
jax: 0.10.0
libtpu: 0.0.40
codegen_flags: <defaults>
</compile_context>

<pallas_src>
import functools

import jax
import jax.numpy as jnp
from jax import lax
from jax.experimental import pallas as pl
from jax.experimental.pallas import tpu as pltpu

LN_EPS = 1e-5
LANE = 128


def _rup(v, m):
    return ((v + m - 1) // m) * m


def _cdiv(a, b):
    return (a + b - 1) // b


def _device_kind():
    try:
        return jax.devices()[0].device_kind.lower()
    except Exception:  # pragma: no cover
        return ""


def _silu(x):
    # exp and reciprocal both go to the EUP slot; VPU only does the multiplies/adds.
    return x * pl.reciprocal(1.0 + jnp.exp(-x), approx=True)


def _layernorm_padded(h, gamma, beta, n_real):
    """LayerNorm over the first n_real channels of a lane-padded [rows, 128k] block.

    Requires the padded lanes of `h` to be exactly zero (guaranteed by zero-padded weight
    columns / biases).  Two-pass (centered) form; the padded lanes contribute exactly
    (n_pad * mean^2) to the square-sum, which is subtracted analytically.  gamma/beta are
    zero in padded lanes, so padded output lanes stay zero.
    """
    n_total = h.shape[-1]
    inv_n = 1.0 / float(n_real)
    mean = jnp.sum(h, axis=-1, keepdims=True) * inv_n          # pads are zero -> exact
    c = h - mean                                               # pads become -mean
    ss = jnp.sum(c * c, axis=-1, keepdims=True) - float(n_total - n_real) * (mean * mean)
    var = jnp.maximum(ss * inv_n, 0.0)
    return c * lax.rsqrt(var + LN_EPS) * gamma + beta


# --------------------------- stage 1: edge MLP + scatter ---------------------------
def _edge_kernel(n_edge_lin, latent_real, node_chunk, tiles_per_split,
                 lo_ref, hi_ref, edge_ref, j_ref, *rest):
    acc_ref = rest[-1]           # [N_pad, latent_pad] f32 VMEM scratch (resident accumulator)
    out_ref = rest[-2]           # [N_pad, latent_pad] bf16 output block (per core-split)
    param_refs = rest[:-2]       # W (bf16), b (f32) pairs, then LN gamma/beta (f32)

    c = pl.program_id(0)         # core split
    e = pl.program_id(1)         # edge tile within split

    @pl.when(e == 0)
    def _():
        acc_ref[...] = jnp.zeros_like(acc_ref)

    # ---- edge MLP on this tile of edges (bf16 MXU operands, f32 accum / elementwise) ----
    h = edge_ref[...]                                   # [TE, F_pad] bf16
    for l in range(n_edge_lin):
        w = param_refs[2 * l][...]                      # bf16
        b = param_refs[2 * l + 1][...]                  # f32
        h = jnp.dot(h.astype(jnp.bfloat16), w,
                    preferred_element_type=jnp.float32) + b
        if l < n_edge_lin - 1:
            h = _silu(h)
    h = _layernorm_padded(h, param_refs[-2][...], param_refs[-1][...], latent_real)
    edge_emb = h.astype(jnp.bfloat16)                   # [TE, latent_pad]

    # ---- scatter_sum(edge_emb, j): edges are sorted by destination, so this tile only
    #      touches the contiguous node-chunk range [lo, hi] (scalar-prefetched bounds). ----
    j = j_ref[...]                                      # [1, TE] int32 (lane-dense)
    te = edge_emb.shape[0]
    node_iota0 = lax.broadcasted_iota(jnp.int32, (node_chunk, te), 0)   # hoisted

    t = c * tiles_per_split + e                         # global edge-tile index
    lo = lo_ref[t]
    hi = hi_ref[t]

    def chunk_body(cidx, carry):
        base = pl.multiple_of(cidx * node_chunk, node_chunk)
        onehot = (node_iota0 == (j - base)).astype(jnp.bfloat16)        # [TN, TE], exact
        partial = lax.dot_general(onehot, edge_emb,
                                  (((1,), (0,)), ((), ())),
                                  preferred_element_type=jnp.float32)   # [TN, latent_pad]
        acc_ref[pl.ds(base, node_chunk), :] += partial
        return carry

    lax.fori_loop(lo, hi + 1, chunk_body, 0)

    @pl.when(e == pl.num_programs(1) - 1)
    def _():
        out_ref[...] = acc_ref[...].astype(out_ref.dtype)


# --------------------------- stage 2: node MLP + residual --------------------------
def _node_kernel(n_node_lin, latent_real, x_ref, aggr_ref, *rest):
    out_ref = rest[-1]
    p = rest[:-1]   # [W0a, W0b, b0, W1, b1, ..., gamma, beta]

    x = x_ref[...]                                              # [T2, latent_pad] f32
    a = jnp.sum(aggr_ref[...].astype(jnp.float32), axis=0)      # sum per-core partials

    # first node linear on cat([x, aggr]) as a split matmul (avoids lane concat)
    h = (jnp.dot(x.astype(jnp.bfloat16), p[0][...], preferred_element_type=jnp.float32)
         + jnp.dot(a.astype(jnp.bfloat16), p[1][...], preferred_element_type=jnp.float32)
         + p[2][...])
    if n_node_lin > 1:
        h = _silu(h)
    for l in range(1, n_node_lin):
        w = p[3 + 2 * (l - 1)][...]
        b = p[4 + 2 * (l - 1)][...]
        h = jnp.dot(h.astype(jnp.bfloat16), w, preferred_element_type=jnp.float32) + b
        if l < n_node_lin - 1:
            h = _silu(h)
    h = _layernorm_padded(h, p[-2][...], p[-1][...], latent_real)
    out_ref[...] = (h + x).astype(out_ref.dtype)


# --------------------------------- parameter packing -------------------------------
def _pad_w(w):
    return jnp.pad(w, ((0, _rup(w.shape[0], LANE) - w.shape[0]),
                       (0, _rup(w.shape[1], LANE) - w.shape[1]))).astype(jnp.bfloat16)


def _pad_row(b):
    return jnp.pad(b, ((0, 0), (0, _rup(b.shape[1], LANE) - b.shape[1]))).astype(jnp.float32)


def _pack_edge_params(edge_params):
    n_lin = (len(edge_params) - 2) // 2
    out = []
    for l in range(n_lin):
        out.append(_pad_w(edge_params[2 * l]))
        out.append(_pad_row(edge_params[2 * l + 1]))
    out.append(_pad_row(edge_params[-2]))
    out.append(_pad_row(edge_params[-1]))
    return out


def _pack_node_params(node_params, latent):
    w0, b0 = node_params[0], node_params[1]
    out = [_pad_w(w0[:latent]), _pad_w(w0[latent:]), _pad_row(b0)]
    n_lin = (len(node_params) - 2) // 2
    for l in range(1, n_lin):
        out.append(_pad_w(node_params[2 * l]))
        out.append(_pad_row(node_params[2 * l + 1]))
    out.append(_pad_row(node_params[-2]))
    out.append(_pad_row(node_params[-1]))
    return out


# ------------------------------------- forward -------------------------------------
def gmp_forward(x, g, pos, edge_params, node_params, *,
                edge_tile=1024, node_chunk=256, stage2_tile=1024,
                num_splits=None, vmem_limit_bytes=None):
    """Pallas GMP forward (2-D node-feature case: x [N, latent], pos [N, pos_dim])."""
    N, latent = x.shape
    pos_dim = pos.shape[-1]
    E = g.shape[1]
    i_idx = g[0].astype(jnp.int32)
    j_idx = g[1].astype(jnp.int32)

    kind = _device_kind()
    if num_splits is None:
        # v7x has 2 TensorCores per chip -> split the edge range across them.
        num_splits = 2 if "v7" in kind else 1
    if vmem_limit_bytes is None:
        if "v7" in kind:
            vmem_limit_bytes = 48 * 1024 * 1024      # 64 MiB physical/TC -> leave headroom
        elif any(t in kind for t in ("v4", "v5", "v6")):
            vmem_limit_bytes = 100 * 1024 * 1024     # 128 MiB physical
        else:
            vmem_limit_bytes = 64 * 1024 * 1024

    latent_pad = _rup(latent, LANE)
    edge_in = 2 * latent + pos_dim + 1
    edge_in_pad = _rup(edge_in, LANE)

    # node tiling: scatter chunk + stage-2 tile (stage-2 tile is a multiple of the chunk)
    node_chunk = min(node_chunk, _rup(N, 8))
    stage2_tile = max(node_chunk, min(stage2_tile, _rup(N, 8)))
    stage2_tile = (stage2_tile // node_chunk) * node_chunk
    N_pad = _rup(N, stage2_tile)

    # edge tiling (split across num_splits core ranges)
    edge_tile = max(LANE, min(edge_tile, _rup(E, LANE)))
    tiles_per_split = _cdiv(_cdiv(E, edge_tile), num_splits)
    n_tiles = num_splits * tiles_per_split
    E_pad = n_tiles * edge_tile

    # ---- JAX glue: sort edges by destination, gather endpoints, build edge features ----
    order = jnp.argsort(j_idx)
    i_s = i_idx[order]
    j_s = j_idx[order]

    d = pos[i_s] - pos[j_s]
    nrm = jnp.sqrt(jnp.sum(d * d, axis=-1, keepdims=True))
    edge_feat = jnp.concatenate([d, nrm, x[i_s], x[j_s]], axis=-1)
    edge_feat = jnp.pad(edge_feat, ((0, E_pad - E), (0, edge_in_pad - edge_in))
                        ).astype(jnp.bfloat16)
    # padded edges carry j == N_pad -> match no node row; lane-dense [1, E_pad] index stream
    j_pad = jnp.pad(j_s, (0, E_pad - E), constant_values=N_pad)
    j_row = j_pad[None, :]

    # per-edge-tile node-chunk bounds (edges sorted -> min/max are first/last of each tile)
    jt = jnp.minimum(j_pad, N_pad - 1).reshape(n_tiles, edge_tile)
    chunk_lo = (jt[:, 0] // node_chunk).astype(jnp.int32)
    chunk_hi = (jt[:, -1] // node_chunk).astype(jnp.int32)

    x_pad = jnp.pad(x.astype(jnp.float32), ((0, N_pad - N), (0, latent_pad - latent)))

    edge_p = _pack_edge_params(edge_params)
    node_p = _pack_node_params(node_params, latent)
    n_edge_lin = (len(edge_params) - 2) // 2
    n_node_lin = (len(node_params) - 2) // 2

    # ---- stage 1: edge MLP + restricted scatter into f32 scratch, bf16 aggr output ----
    edge_kernel = functools.partial(_edge_kernel, n_edge_lin, latent, node_chunk,
                                    tiles_per_split)
    T = tiles_per_split
    in_specs1 = [
        pl.BlockSpec((edge_tile, edge_in_pad), lambda c, e, lo, hi, T=T: (c * T + e, 0)),
        pl.BlockSpec((1, edge_tile), lambda c, e, lo, hi, T=T: (0, c * T + e)),
    ] + [pl.BlockSpec(p.shape, lambda c, e, lo, hi: (0, 0)) for p in edge_p]

    aggr = pl.pallas_call(
        edge_kernel,
        out_shape=jax.ShapeDtypeStruct((num_splits * N_pad, latent_pad), jnp.bfloat16),
        grid_spec=pltpu.PrefetchScalarGridSpec(
            num_scalar_prefetch=2,
            grid=(num_splits, tiles_per_split),
            in_specs=in_specs1,
            out_specs=pl.BlockSpec((N_pad, latent_pad), lambda c, e, lo, hi: (c, 0)),
            scratch_shapes=[pltpu.VMEM((N_pad, latent_pad), jnp.float32)],
        ),
        compiler_params=pltpu.CompilerParams(
            dimension_semantics=("parallel", "arbitrary"),
            vmem_limit_bytes=vmem_limit_bytes),
    )(chunk_lo, chunk_hi, edge_feat, j_row, *edge_p)

    # free metadata reshape: per-core-split partial aggregators
    aggr = aggr.reshape(num_splits, N_pad, latent_pad)

    # ---- stage 2: node MLP + LayerNorm + residual, tiled & pipelined over nodes ----
    node_kernel = functools.partial(_node_kernel, n_node_lin, latent)
    in_specs2 = [
        pl.BlockSpec((stage2_tile, latent_pad), lambda n: (n, 0)),
        pl.BlockSpec((num_splits, stage2_tile, latent_pad), lambda n: (0, n, 0)),
    ] + [pl.BlockSpec(p.shape, lambda n: (0, 0)) for p in node_p]

    out = pl.pallas_call(
        node_kernel,
        out_shape=jax.ShapeDtypeStruct((N_pad, latent_pad), x.dtype),
        grid_spec=pltpu.PrefetchScalarGridSpec(
            num_scalar_prefetch=0,
            grid=(N_pad // stage2_tile,),
            in_specs=in_specs2,
            out_specs=pl.BlockSpec((stage2_tile, latent_pad), lambda n: (n, 0)),
        ),
        compiler_params=pltpu.CompilerParams(dimension_semantics=("parallel",),
                                             vmem_limit_bytes=vmem_limit_bytes),
    )(x_pad, aggr, *node_p)

    return out[:N, :latent]


# ----------------------- deterministic parameter init -----------------------
def init_mlp_params(key, in_dim, hidden_dim, out_dim, hidden_layers):
    dims = [in_dim] + [hidden_dim] * hidden_layers + [out_dim]
    params = []
    for l in range(len(dims) - 1):
        key, kw, kb = jax.random.split(key, 3)
        bound = 1.0 / (dims[l] ** 0.5)
        params.append(jax.random.uniform(kw, (dims[l], dims[l + 1]), jnp.float32, -bound, bound))
        params.append(jax.random.uniform(kb, (1, dims[l + 1]), jnp.float32, -bound, bound))
    params.append(jnp.ones((1, out_dim), jnp.float32))    # LayerNorm gamma
    params.append(jnp.zeros((1, out_dim), jnp.float32))   # LayerNorm beta
    return params


# ----------------------------- pure-JAX reference ----------------------------
def _mlp_ref(h, params):
    n_lin = (len(params) - 2) // 2
    for l in range(n_lin):
        h = h @ params[2 * l] + params[2 * l + 1]
        if l < n_lin - 1:
            h = h * jax.nn.sigmoid(h)
    mean = jnp.mean(h, axis=-1, keepdims=True)
    var = jnp.mean((h - mean) ** 2, axis=-1, keepdims=True)
    return (h - mean) / jnp.sqrt(var + LN_EPS) * params[-2] + params[-1]


def gmp_ref(x, g, pos, edge_params, node_params):
    i, j = g[0], g[1]
    d = pos[i] - pos[j]
    nrm = jnp.sqrt(jnp.sum(d * d, axis=-1, keepdims=True))
    ef = jnp.concatenate([d, nrm, x[i], x[j]], axis=-1)
    ee = _mlp_ref(ef, edge_params)
    aggr = jax.ops.segment_sum(ee, j, num_segments=x.shape[0])
    return _mlp_ref(jnp.concatenate([x, aggr], axis=-1), node_params) + x


# ------------------------------------ main -----------------------------------
if __name__ == "__main__":
    latent_dim = 32
    hidden_layer = 2
    pos_dim = 3
    N = 64          # nodes
    E = 256         # edges

    key = jax.random.PRNGKey(0)
    kx, kp, kg, ke, kn = jax.random.split(key, 5)

    x = jax.random.normal(kx, (N, latent_dim), jnp.float32)
    pos = jax.random.normal(kp, (N, pos_dim), jnp.float32)
    g = jax.random.randint(kg, (2, E), 0, N, jnp.int32)

    edge_in_dim = 2 * latent_dim + pos_dim + 1
    edge_params = init_mlp_params(ke, edge_in_dim, latent_dim, latent_dim, hidden_layer)
    node_params = init_mlp_params(kn, 2 * latent_dim, latent_dim, latent_dim, hidden_layer)

    out = gmp_forward(x, g, pos, edge_params, node_params)
    out = jax.block_until_ready(out)

    ref = jax.block_until_ready(gmp_ref(x, g, pos, edge_params, node_params))
    assert out.shape == (N, latent_dim)
    max_err = float(jnp.max(jnp.abs(out - ref)))
    # bf16 MXU operands + bf16 inter-stage aggregator (f32 accumulation everywhere)
    # -> relaxed tolerance vs the f32 reference
    assert jnp.allclose(out, ref, rtol=3e-2, atol=3e-2), max_err

    print("KERNEL_OK")
</pallas_src>

<mosaic_0001>
module attributes {stable_mosaic.version = 11 : i64} {
  func.func @_edge_kernel(%arg0: i32, %arg1: i32, %arg2: memref<1xi32, #tpu.memory_space<smem>>, %arg3: memref<1xi32, #tpu.memory_space<smem>>, %arg4: memref<256x128xbf16, #tpu.memory_space<vmem>>, %arg5: memref<1x256xi32, #tpu.memory_space<vmem>>, %arg6: memref<128x128xbf16, #tpu.memory_space<vmem>>, %arg7: memref<1x128xf32, #tpu.memory_space<vmem>>, %arg8: memref<128x128xbf16, #tpu.memory_space<vmem>>, %arg9: memref<1x128xf32, #tpu.memory_space<vmem>>, %arg10: memref<128x128xbf16, #tpu.memory_space<vmem>>, %arg11: memref<1x128xf32, #tpu.memory_space<vmem>>, %arg12: memref<1x128xf32, #tpu.memory_space<vmem>>, %arg13: memref<1x128xf32, #tpu.memory_space<vmem>>, %arg14: memref<64x128xbf16, #tpu.memory_space<vmem>>, %arg15: memref<64x128xf32, #tpu.memory_space<vmem>>) attributes {dimension_semantics = [#tpu.dimension_semantics<parallel>, #tpu.dimension_semantics<arbitrary>], iteration_bounds = array<i64: 1, 1>, scalar_prefetch = 2 : i64, scratch_operands = 1 : i64, tpu.core_type = #tpu.core_type<tc>, window_params = [{transform_indices = @transform_0, window_bounds = array<i64: 256, 128>}, {transform_indices = @transform_1, window_bounds = array<i64: 1, 256>}, {pipeline_mode = #tpu.pipeline_mode<synchronous>, transform_indices = @transform_2, window_bounds = array<i64: 128, 128>}, {pipeline_mode = #tpu.pipeline_mode<synchronous>, transform_indices = @transform_3, window_bounds = array<i64: 1, 128>}, {pipeline_mode = #tpu.pipeline_mode<synchronous>, transform_indices = @transform_4, window_bounds = array<i64: 128, 128>}, {pipeline_mode = #tpu.pipeline_mode<synchronous>, transform_indices = @transform_5, window_bounds = array<i64: 1, 128>}, {pipeline_mode = #tpu.pipeline_mode<synchronous>, transform_indices = @transform_6, window_bounds = array<i64: 128, 128>}, {pipeline_mode = #tpu.pipeline_mode<synchronous>, transform_indices = @transform_7, window_bounds = array<i64: 1, 128>}, {pipeline_mode = #tpu.pipeline_mode<synchronous>, transform_indices = @transform_8, window_bounds = array<i64: 1, 128>}, {pipeline_mode = #tpu.pipeline_mode<synchronous>, transform_indices = @transform_9, window_bounds = array<i64: 1, 128>}, {transform_indices = @transform_10, window_bounds = array<i64: 64, 128>}]} {
    %c0_i32 = arith.constant 0 : i32
    %0 = arith.cmpi eq, %arg1, %c0_i32 : i32
    %1 = arith.extui %0 : i1 to i32
    %c0_i32_0 = arith.constant 0 : i32
    %2 = arith.cmpi ne, %1, %c0_i32_0 : i32
    scf.if %2 {
      %cst_38 = arith.constant 0.000000e+00 : f32
      %78 = vector.broadcast %cst_38 : f32 to vector<64x128xf32>
      %c0_39 = arith.constant 0 : index
      %c0_40 = arith.constant 0 : index
      %79 = vector.load %arg15[%c0_39, %c0_40] : memref<64x128xf32, #tpu.memory_space<vmem>>, vector<64x128xf32>
      tpu.vector_store %arg15[%c0_39, %c0_40], %78 {strides = array<i32>} : memref<64x128xf32, #tpu.memory_space<vmem>>, vector<64x128xf32>,
    } else {
    }
    %c0 = arith.constant 0 : index
    %c0_1 = arith.constant 0 : index
    %3 = vector.load %arg4[%c0, %c0_1] : memref<256x128xbf16, #tpu.memory_space<vmem>>, vector<256x128xbf16>
    %c0_2 = arith.constant 0 : index
    %c0_3 = arith.constant 0 : index
    %4 = vector.load %arg6[%c0_2, %c0_3] : memref<128x128xbf16, #tpu.memory_space<vmem>>, vector<128x128xbf16>
    %c0_4 = arith.constant 0 : index
    %c0_5 = arith.constant 0 : index
    %5 = vector.load %arg7[%c0_4, %c0_5] : memref<1x128xf32, #tpu.memory_space<vmem>>, vector<1x128xf32>
    %cst = arith.constant dense<0.000000e+00> : vector<256x128xf32>
    %6 = tpu.matmul %3, %4, %cst {dimension_numbers = #tpu.dot_dimension_numbers<[1], [0], [0], [1], [0, 0, 1, 1], [], []>} : vector<256x128xbf16>, vector<128x128xbf16>, vector<256x128xf32> -> vector<256x128xf32>
    %7 = vector.broadcast %5 : vector<1x128xf32> to vector<256x128xf32>
    %8 = arith.addf %6, %7 : vector<256x128xf32>
    %cst_6 = arith.constant 0.000000e+00 : f32
    %9 = vector.broadcast %cst_6 : f32 to vector<256x128xf32>
    %10 = arith.subf %9, %8 : vector<256x128xf32>
    %11 = math.exp %10 : vector<256x128xf32>
    %cst_7 = arith.constant 1.000000e+00 : f32
    %12 = vector.broadcast %cst_7 : f32 to vector<256x128xf32>
    %13 = arith.addf %12, %11 : vector<256x128xf32>
    %14 = tpu.reciprocal %13 {approx = true} : vector<256x128xf32> -> vector<256x128xf32>
    %15 = arith.mulf %8, %14 : vector<256x128xf32>
    %c0_8 = arith.constant 0 : index
    %c0_9 = arith.constant 0 : index
    %16 = vector.load %arg8[%c0_8, %c0_9] : memref<128x128xbf16, #tpu.memory_space<vmem>>, vector<128x128xbf16>
    %c0_10 = arith.constant 0 : index
    %c0_11 = arith.constant 0 : index
    %17 = vector.load %arg9[%c0_10, %c0_11] : memref<1x128xf32, #tpu.memory_space<vmem>>, vector<1x128xf32>
    %18 = arith.truncf %15 : vector<256x128xf32> to vector<256x128xbf16>
    %cst_12 = arith.constant dense<0.000000e+00> : vector<256x128xf32>
    %19 = tpu.matmul %18, %16, %cst_12 {dimension_numbers = #tpu.dot_dimension_numbers<[1], [0], [0], [1], [0, 0, 1, 1], [], []>} : vector<256x128xbf16>, vector<128x128xbf16>, vector<256x128xf32> -> vector<256x128xf32>
    %20 = vector.broadcast %17 : vector<1x128xf32> to vector<256x128xf32>
    %21 = arith.addf %19, %20 : vector<256x128xf32>
    %cst_13 = arith.constant 0.000000e+00 : f32
    %22 = vector.broadcast %cst_13 : f32 to vector<256x128xf32>
    %23 = arith.subf %22, %21 : vector<256x128xf32>
    %24 = math.exp %23 : vector<256x128xf32>
    %cst_14 = arith.constant 1.000000e+00 : f32
    %25 = vector.broadcast %cst_14 : f32 to vector<256x128xf32>
    %26 = arith.addf %25, %24 : vector<256x128xf32>
    %27 = tpu.reciprocal %26 {approx = true} : vector<256x128xf32> -> vector<256x128xf32>
    %28 = arith.mulf %21, %27 : vector<256x128xf32>
    %c0_15 = arith.constant 0 : index
    %c0_16 = arith.constant 0 : index
    %29 = vector.load %arg10[%c0_15, %c0_16] : memref<128x128xbf16, #tpu.memory_space<vmem>>, vector<128x128xbf16>
    %c0_17 = arith.constant 0 : index
    %c0_18 = arith.constant 0 : index
    %30 = vector.load %arg11[%c0_17, %c0_18] : memref<1x128xf32, #tpu.memory_space<vmem>>, vector<1x128xf32>
    %31 = arith.truncf %28 : vector<256x128xf32> to vector<256x128xbf16>
    %cst_19 = arith.constant dense<0.000000e+00> : vector<256x128xf32>
    %32 = tpu.matmul %31, %29, %cst_19 {dimension_numbers = #tpu.dot_dimension_numbers<[1], [0], [0], [1], [0, 0, 1, 1], [], []>} : vector<256x128xbf16>, vector<128x128xbf16>, vector<256x128xf32> -> vector<256x128xf32>
    %33 = vector.broadcast %30 : vector<1x128xf32> to vector<256x128xf32>
    %34 = arith.addf %32, %33 : vector<256x128xf32>
    %c0_20 = arith.constant 0 : index
    %c0_21 = arith.constant 0 : index
    %35 = vector.load %arg12[%c0_20, %c0_21] : memref<1x128xf32, #tpu.memory_space<vmem>>, vector<1x128xf32>
    %c0_22 = arith.constant 0 : index
    %c0_23 = arith.constant 0 : index
    %36 = vector.load %arg13[%c0_22, %c0_23] : memref<1x128xf32, #tpu.memory_space<vmem>>, vector<1x128xf32>
    %cst_24 = arith.constant dense<0.000000e+00> : vector<256xf32>
    %37 = vector.multi_reduction <add>, %34, %cst_24 [1] : vector<256x128xf32> to vector<256xf32>
    %38 = vector.shape_cast %37 : vector<256xf32> to vector<256x1xf32>
    %cst_25 = arith.constant 3.125000e-02 : f32
    %39 = vector.broadcast %cst_25 : f32 to vector<256x1xf32>
    %40 = arith.mulf %38, %39 : vector<256x1xf32>
    %41 = vector.broadcast %40 : vector<256x1xf32> to vector<256x128xf32>
    %42 = arith.subf %34, %41 : vector<256x128xf32>
    %43 = arith.mulf %42, %42 : vector<256x128xf32>
    %cst_26 = arith.constant dense<0.000000e+00> : vector<256xf32>
    %44 = vector.multi_reduction <add>, %43, %cst_26 [1] : vector<256x128xf32> to vector<256xf32>
    %45 = vector.shape_cast %44 : vector<256xf32> to vector<256x1xf32>
    %46 = arith.mulf %40, %40 : vector<256x1xf32>
    %cst_27 = arith.constant 9.600000e+01 : f32
    %47 = vector.broadcast %cst_27 : f32 to vector<256x1xf32>
    %48 = arith.mulf %47, %46 : vector<256x1xf32>
    %49 = arith.subf %45, %48 : vector<256x1xf32>
    %cst_28 = arith.constant 3.125000e-02 : f32
    %50 = vector.broadcast %cst_28 : f32 to vector<256x1xf32>
    %51 = arith.mulf %49, %50 : vector<256x1xf32>
    %cst_29 = arith.constant 0.000000e+00 : f32
    %52 = vector.broadcast %cst_29 : f32 to vector<256x1xf32>
    %53 = arith.maximumf %51, %52 : vector<256x1xf32>
    %cst_30 = arith.constant 9.99999974E-6 : f32
    %54 = vector.broadcast %cst_30 : f32 to vector<256x1xf32>
    %55 = arith.addf %53, %54 : vector<256x1xf32>
    %56 = math.rsqrt %55 : vector<256x1xf32>
    %57 = vector.broadcast %56 : vector<256x1xf32> to vector<256x128xf32>
    %58 = arith.mulf %42, %57 : vector<256x128xf32>
    %59 = vector.broadcast %35 : vector<1x128xf32> to vector<256x128xf32>
    %60 = arith.mulf %58, %59 : vector<256x128xf32>
    %61 = vector.broadcast %36 : vector<1x128xf32> to vector<256x128xf32>
    %62 = arith.addf %60, %61 : vector<256x128xf32>
    %63 = arith.truncf %62 : vector<256x128xf32> to vector<256x128xbf16>
    %c0_31 = arith.constant 0 : index
    %c0_32 = arith.constant 0 : index
    %64 = vector.load %arg5[%c0_31, %c0_32] : memref<1x256xi32, #tpu.memory_space<vmem>>, vector<1x256xi32>
    %65 = tpu.iota {dimensions = array<i32: 0>} : vector<64x256xi32>
    %c1_i32 = arith.constant 1 : i32
    %66 = arith.muli %arg0, %c1_i32 : i32
    %67 = arith.addi %66, %arg1 : i32
    %68 = arith.index_cast %67 : i32 to index
    %69 = memref.load %arg2[%68] : memref<1xi32, #tpu.memory_space<smem>>
    %70 = arith.index_cast %67 : i32 to index
    %71 = memref.load %arg3[%70] : memref<1xi32, #tpu.memory_space<smem>>
    %c1_i32_33 = arith.constant 1 : i32
    %72 = arith.addi %71, %c1_i32_33 : i32
    %c0_i32_34 = arith.constant 0 : i32
    %73 = arith.subi %72, %69 : i32
    %74 = arith.addi %69, %73 : i32
    %c1_i32_35 = arith.constant 1 : i32
    scf.for %arg16 = %69 to %74 step %c1_i32_35  : i32 {
      %c64_i32 = arith.constant 64 : i32
      %78 = arith.muli %arg16, %c64_i32 : i32
      %79 = tpu.assume_multiple %78, 64 : i32
      %80 = vector.broadcast %79 : i32 to vector<1x256xi32>
      %81 = arith.subi %64, %80 : vector<1x256xi32>
      %82 = vector.broadcast %81 : vector<1x256xi32> to vector<64x256xi32>
      %83 = arith.cmpi eq, %65, %82 : vector<64x256xi32>
      %84 = arith.extui %83 : vector<64x256xi1> to vector<64x256xi32>
      %85 = arith.sitofp %84 : vector<64x256xi32> to vector<64x256xf32>
      %86 = arith.truncf %85 : vector<64x256xf32> to vector<64x256xbf16>
      %cst_38 = arith.constant dense<0.000000e+00> : vector<64x128xf32>
      %87 = tpu.matmul %86, %63, %cst_38 {dimension_numbers = #tpu.dot_dimension_numbers<[1], [0], [0], [1], [0, 0, 1, 1], [], []>} : vector<64x256xbf16>, vector<256x128xbf16>, vector<64x128xf32> -> vector<64x128xf32>
      %88 = arith.index_cast %79 : i32 to index
      %c0_39 = arith.constant 0 : index
      %89 = vector.load %arg15[%88, %c0_39] : memref<64x128xf32, #tpu.memory_space<vmem>>, vector<64x128xf32>
      %90 = arith.addf %89, %87 : vector<64x128xf32>
      %91 = arith.index_cast %79 : i32 to index
      %c0_40 = arith.constant 0 : index
      %92 = vector.load %arg15[%91, %c0_40] : memref<64x128xf32, #tpu.memory_space<vmem>>, vector<64x128xf32>
      tpu.vector_store %arg15[%91, %c0_40], %90 {strides = array<i32>} : memref<64x128xf32, #tpu.memory_space<vmem>>, vector<64x128xf32>,
    }
    %c0_i32_36 = arith.constant 0 : i32
    %75 = arith.cmpi eq, %arg1, %c0_i32_36 : i32
    %76 = arith.extui %75 : i1 to i32
    %c0_i32_37 = arith.constant 0 : i32
    %77 = arith.cmpi ne, %76, %c0_i32_37 : i32
    scf.if %77 {
      %c0_38 = arith.constant 0 : index
      %c0_39 = arith.constant 0 : index
      %78 = vector.load %arg15[%c0_38, %c0_39] : memref<64x128xf32, #tpu.memory_space<vmem>>, vector<64x128xf32>
      %79 = arith.truncf %78 : vector<64x128xf32> to vector<64x128xbf16>
      %c0_40 = arith.constant 0 : index
      %c0_41 = arith.constant 0 : index
      %80 = vector.load %arg14[%c0_40, %c0_41] : memref<64x128xbf16, #tpu.memory_space<vmem>>, vector<64x128xbf16>
      tpu.vector_store %arg14[%c0_40, %c0_41], %79 {strides = array<i32>} : memref<64x128xbf16, #tpu.memory_space<vmem>>, vector<64x128xbf16>,
    } else {
    }
    return
  }
  func.func @transform_0(%arg0: i32, %arg1: i32, %arg2: memref<1xi32, #tpu.memory_space<smem>>, %arg3: memref<1xi32, #tpu.memory_space<smem>>) -> (i32, i32) {
    %c1_i32 = arith.constant 1 : i32
    %0 = arith.muli %arg0, %c1_i32 : i32
    %1 = arith.addi %0, %arg1 : i32
    %c0_i32 = arith.constant 0 : i32
    %c0_i32_0 = arith.constant 0 : i32
    return %1, %c0_i32 : i32, i32
  }
  func.func @transform_1(%arg0: i32, %arg1: i32, %arg2: memref<1xi32, #tpu.memory_space<smem>>, %arg3: memref<1xi32, #tpu.memory_space<smem>>) -> (i32, i32) {
    %c1_i32 = arith.constant 1 : i32
    %0 = arith.muli %arg0, %c1_i32 : i32
    %1 = arith.addi %0, %arg1 : i32
    %c0_i32 = arith.constant 0 : i32
    %c0_i32_0 = arith.constant 0 : i32
    return %c0_i32, %1 : i32, i32
  }
  func.func @transform_2(%arg0: i32, %arg1: i32, %arg2: memref<1xi32, #tpu.memory_space<smem>>, %arg3: memref<1xi32, #tpu.memory_space<smem>>) -> (i32, i32) {
    %c0_i32 = arith.constant 0 : i32
    %c0_i32_0 = arith.constant 0 : i32
    %c0_i32_1 = arith.constant 0 : i32
    return %c0_i32, %c0_i32_0 : i32, i32
  }
  func.func @transform_3(%arg0: i32, %arg1: i32, %arg2: memref<1xi32, #tpu.memory_space<smem>>, %arg3: memref<1xi32, #tpu.memory_space<smem>>) -> (i32, i32) {
    %c0_i32 = arith.constant 0 : i32
    %c0_i32_0 = arith.constant 0 : i32
    %c0_i32_1 = arith.constant 0 : i32
    return %c0_i32, %c0_i32_0 : i32, i32
  }
  func.func @transform_4(%arg0: i32, %arg1: i32, %arg2: memref<1xi32, #tpu.memory_space<smem>>, %arg3: memref<1xi32, #tpu.memory_space<smem>>) -> (i32, i32) {
    %c0_i32 = arith.constant 0 : i32
    %c0_i32_0 = arith.constant 0 : i32
    %c0_i32_1 = arith.constant 0 : i32
    return %c0_i32, %c0_i32_0 : i32, i32
  }
  func.func @transform_5(%arg0: i32, %arg1: i32, %arg2: memref<1xi32, #tpu.memory_space<smem>>, %arg3: memref<1xi32, #tpu.memory_space<smem>>) -> (i32, i32) {
    %c0_i32 = arith.constant 0 : i32
    %c0_i32_0 = arith.constant 0 : i32
    %c0_i32_1 = arith.constant 0 : i32
    return %c0_i32, %c0_i32_0 : i32, i32
  }
  func.func @transform_6(%arg0: i32, %arg1: i32, %arg2: memref<1xi32, #tpu.memory_space<smem>>, %arg3: memref<1xi32, #tpu.memory_space<smem>>) -> (i32, i32) {
    %c0_i32 = arith.constant 0 : i32
    %c0_i32_0 = arith.constant 0 : i32
    %c0_i32_1 = arith.constant 0 : i32
    return %c0_i32, %c0_i32_0 : i32, i32
  }
  func.func @transform_7(%arg0: i32, %arg1: i32, %arg2: memref<1xi32, #tpu.memory_space<smem>>, %arg3: memref<1xi32, #tpu.memory_space<smem>>) -> (i32, i32) {
    %c0_i32 = arith.constant 0 : i32
    %c0_i32_0 = arith.constant 0 : i32
    %c0_i32_1 = arith.constant 0 : i32
    return %c0_i32, %c0_i32_0 : i32, i32
  }
  func.func @transform_8(%arg0: i32, %arg1: i32, %arg2: memref<1xi32, #tpu.memory_space<smem>>, %arg3: memref<1xi32, #tpu.memory_space<smem>>) -> (i32, i32) {
    %c0_i32 = arith.constant 0 : i32
    %c0_i32_0 = arith.constant 0 : i32
    %c0_i32_1 = arith.constant 0 : i32
    return %c0_i32, %c0_i32_0 : i32, i32
  }
  func.func @transform_9(%arg0: i32, %arg1: i32, %arg2: memref<1xi32, #tpu.memory_space<smem>>, %arg3: memref<1xi32, #tpu.memory_space<smem>>) -> (i32, i32) {
    %c0_i32 = arith.constant 0 : i32
    %c0_i32_0 = arith.constant 0 : i32
    %c0_i32_1 = arith.constant 0 : i32
    return %c0_i32, %c0_i32_0 : i32, i32
  }
  func.func @transform_10(%arg0: i32, %arg1: i32, %arg2: memref<1xi32, #tpu.memory_space<smem>>, %arg3: memref<1xi32, #tpu.memory_space<smem>>) -> (i32, i32) {
    %c0_i32 = arith.constant 0 : i32
    %c0_i32_0 = arith.constant 0 : i32
    return %arg0, %c0_i32 : i32, i32
  }
}

</mosaic_0001>

<bundles_post_ra>
// kernel: tpu_custom_call.1
= control target key start
LH: loop header
LB: loop body
LE: loop exit
PB: predicated region body
PF: predicated region fallthrough
CT: control target
= control target key end

     0   :  { %19 = vsyncpa [#allocation7], 0  ;;  %s4647_s0 = inlined_call_operand.<no memory space> [shape: s32[1], index: 0, kind: input, shape index: {}]   ;;  %s4648_s1 = inlined_call_operand.<no memory space> [shape: s32[1], index: 1, kind: input, shape index: {}]   ;;  %s4649_s2 = inlined_call_operand.hbm [shape: bf16[256,128], index: 2, kind: input, shape index: {}]   ;;  %s4650_s3 = inlined_call_operand.hbm [shape: s32[1,256], index: 3, kind: input, shape index: {}]   ;;  %s4651_s4 = inlined_call_operand.hbm [shape: bf16[128,128], index: 4, kind: input, shape index: {}]   ;;  %s4652_s5 = inlined_call_operand.hbm [shape: f32[1,128], index: 5, kind: input, shape index: {}]   ;;  %s4653_s6 = inlined_call_operand.hbm [shape: bf16[128,128], index: 6, kind: input, shape index: {}]   ;;  %s4654_s7 = inlined_call_operand.hbm [shape: f32[1,128], index: 7, kind: input, shape index: {}]   ;;  %s4655_s8 = inlined_call_operand.hbm [shape: bf16[128,128], index: 8, kind: input, shape index: {}]   ;;  %s4656_s9 = inlined_call_operand.hbm [shape: f32[1,128], index: 9, kind: input, shape index: {}]   ;;  %s4657_s10 = inlined_call_operand.hbm [shape: f32[1,128], index: 10, kind: input, shape index: {}]   ;;  %s4658_s11 = inlined_call_operand.hbm [shape: f32[1,128], index: 11, kind: input, shape index: {}]   ;;  %s4659_s12 = inlined_call_operand.hbm [shape: bf16[64,128], index: 12, kind: output, shape index: {}]  }
   0x1   :  { %20 = vsyncpa [#allocation10], 0 }
   0x2   :  { %21 = vsyncpa [#allocation13], 0 }
   0x3   :  { %22 = vsyncpa [#allocation16], 0 }
   0x4   :  { %23 = vsyncpa [#allocation19], 0 }
   0x5   :  { %24 = vsyncpa [#allocation22], 0 }
   0x6   :  { %25 = vsyncpa [#allocation8], 0  ;;  %s3312_s21 = smov [#allocation9]   ;;  %s3313_s23 = smov [#allocation12]  }
   0x7   :  { %s52_s22 = sshll.u32 %s3312_s21, 4  ;;  %s74_s24 = sshll.u32 %s3313_s23, 4  ;;  %s53_s22 = int_to_ptr.vmem [resolvable:$true] %s52_s22  ;;  %s75_s24 = int_to_ptr.vmem [resolvable:$true] %s74_s24 }
   0x8   :  { %s3048_s27 = scalar_lea.hbm %s4650_s3, 32 }
   0x9   :  { %p3049_p0 = scmp.ne.s32.totalorder %s4650_s3, %s3048_s27  ;;  %p3052_p1 = scmp.lt.u32.totalorder %s3048_s27, %s4650_s3 }
   0xb   :  { %p3054_p2 = pnand %p3052_p1, %p3049_p0 }
   0xd   :  { %3057 = shalt.err (!%p3054_p2)
}
   0xe   :  { %s3058_s14 = scalar_lea.vmem %s53_s22, 32  ;;  %p3063_p4 = scmp.lt.s32.totalorder %s53_s22, %s53_s22 }
   0xf   :  { %p3059_p3 = scmp.ne.s32.totalorder %s53_s22, %s3058_s14  ;;  %p3064_p5 = scmp.lt.s32.totalorder %s3058_s14, %s3058_s14 }
  0x11   :  { %p3065_p6 = por %p3064_p5, %p3063_p4 }
  0x13   :  { %p3066_p7 = pnand %p3065_p6, %p3059_p3 }
  0x15   :  { %3069 = shalt.err (!%p3066_p7)
}
  0x16   :  { %55 = dma.hbm_to_vmem [thread:$0]  %s4650_s3, 32, %s53_s22, [#allocation10]  }
  0x17   :  { %s3070_s19 = scalar_lea.hbm %s4652_s5, 16 }
  0x18   :  { %p3071_p8 = scmp.ne.s32.totalorder %s4652_s5, %s3070_s19  ;;  %p3074_p9 = scmp.lt.u32.totalorder %s3070_s19, %s4652_s5 }
  0x1a   :  { %p3076_p10 = pnand %p3074_p9, %p3071_p8 }
  0x1c   :  { %3079 = shalt.err (!%p3076_p10)
}
  0x1d   :  { %s3080_s26 = scalar_lea.vmem %s75_s24, 16  ;;  %s3084_s27 = scalar_lea.vmem %s75_s24, 32 }
  0x1e   :  { %p3081_p11 = scmp.ne.s32.totalorder %s75_s24, %s3080_s26  ;;  %p3085_p12 = scmp.lt.s32.totalorder %s75_s24, %s75_s24 }
  0x1f   :  { %p3086_p13 = scmp.lt.s32.totalorder %s3084_s27, %s3080_s26 }
  0x21   :  { %p3087_p0 = por %p3086_p13, %p3085_p12 }
  0x23   :  { %p3088_p1 = pnand %p3087_p0, %p3081_p11 }
  0x25   :  { %3091 = shalt.err (!%p3088_p1)
}
  0x26   :  { %77 = dma.hbm_to_vmem [thread:$0]  %s4652_s5, 16, %s75_s24, [#allocation13]  }
  0x27   :  { %s3314_s28 = smov [#allocation15]   ;;  %s3315_s30 = smov [#allocation18]  }
  0x28   :  { %s96_s29 = sshll.u32 %s3314_s28, 4  ;;  %s118_s13 = sshll.u32 %s3315_s30, 4  ;;  %s97_s29 = int_to_ptr.vmem [resolvable:$true] %s96_s29  ;;  %s119_s13 = int_to_ptr.vmem [resolvable:$true] %s118_s13 }
  0x29   :  { %s3092_s16 = scalar_lea.hbm %s4654_s7, 16 }
  0x2a   :  { %p3093_p2 = scmp.ne.s32.totalorder %s4654_s7, %s3092_s16  ;;  %p3096_p3 = scmp.lt.u32.totalorder %s3092_s16, %s4654_s7 }
  0x2c   :  { %p3098_p4 = pnand %p3096_p3, %p3093_p2 }
  0x2e   :  { %3101 = shalt.err (!%p3098_p4)
}
  0x2f   :  { %s3102_s5 = scalar_lea.vmem %s97_s29, 16  ;;  %s3106_s24 = scalar_lea.vmem %s97_s29, 32 }
  0x30   :  { %p3103_p5 = scmp.ne.s32.totalorder %s97_s29, %s3102_s5  ;;  %p3107_p6 = scmp.lt.s32.totalorder %s97_s29, %s97_s29 }
  0x31   :  { %p3108_p7 = scmp.lt.s32.totalorder %s3106_s24, %s3102_s5 }
  0x33   :  { %p3109_p8 = por %p3108_p7, %p3107_p6 }
  0x35   :  { %p3110_p9 = pnand %p3109_p8, %p3103_p5 }
  0x37   :  { %3113 = shalt.err (!%p3110_p9)
}
  0x38   :  { %99 = dma.hbm_to_vmem [thread:$0]  %s4654_s7, 16, %s97_s29, [#allocation16]  }
  0x39   :  { %s3114_s27 = scalar_lea.hbm %s4656_s9, 16 }
  0x3a   :  { %p3115_p10 = scmp.ne.s32.totalorder %s4656_s9, %s3114_s27  ;;  %p3118_p11 = scmp.lt.u32.totalorder %s3114_s27, %s4656_s9 }
  0x3c   :  { %p3120_p12 = pnand %p3118_p11, %p3115_p10 }
  0x3e   :  { %3123 = shalt.err (!%p3120_p12)
}
  0x3f   :  { %s3124_s14 = scalar_lea.vmem %s119_s13, 16  ;;  %s3128_s15 = scalar_lea.vmem %s119_s13, 32 }
  0x40   :  { %p3125_p13 = scmp.ne.s32.totalorder %s119_s13, %s3124_s14  ;;  %p3129_p0 = scmp.lt.s32.totalorder %s119_s13, %s119_s13 }
  0x41   :  { %p3130_p1 = scmp.lt.s32.totalorder %s3128_s15, %s3124_s14 }
  0x43   :  { %p3131_p2 = por %p3130_p1, %p3129_p0 }
  0x45   :  { %p3132_p3 = pnand %p3131_p2, %p3125_p13 }
  0x47   :  { %3135 = shalt.err (!%p3132_p3)
}
  0x48   :  { %121 = dma.hbm_to_vmem [thread:$0]  %s4656_s9, 16, %s119_s13, [#allocation19]  }
  0x49   :  { %s3316_s16 = smov [#allocation6]   ;;  %s3136_s20 = scalar_lea.hbm %s4649_s2, 2048 }
  0x4a   :  { %s35_s17 = sshll.u32 %s3316_s16, 4  ;;  %p3137_p4 = scmp.ne.s32.totalorder %s4649_s2, %s3136_s20  ;;  %s36_s17 = int_to_ptr.vmem [resolvable:$true] %s35_s17 }
  0x4b   :  { %p3140_p5 = scmp.lt.u32.totalorder %s3136_s20, %s4649_s2 }
  0x4d   :  { %p3142_p6 = pnand %p3140_p5, %p3137_p4 }
  0x4f   :  { %3145 = shalt.err (!%p3142_p6)
}
  0x50   :  { %s3146_s25 = scalar_lea.vmem %s36_s17, 2048  ;;  %p3151_p8 = scmp.lt.s32.totalorder %s36_s17, %s36_s17 }
  0x51   :  { %p3147_p7 = scmp.ne.s32.totalorder %s36_s17, %s3146_s25  ;;  %p3152_p9 = scmp.lt.s32.totalorder %s3146_s25, %s3146_s25 }
  0x53   :  { %p3153_p10 = por %p3152_p9, %p3151_p8 }
  0x55   :  { %p3154_p11 = pnand %p3153_p10, %p3147_p7 }
  0x57   :  { %3157 = shalt.err (!%p3154_p11)
}
  0x58   :  { %s3317_s9 = smov 64   ;;  %s3318_s13 = smov 4  }
  0x59   :  { %41 = dma.hbm_to_vmem [thread:$0]  %s4649_s2, 2048, %s36_s17, [#allocation7], %s3317_s9, %s3317_s9, %s3318_s13  }
  0x5a   :  { %s3319_s3 = smov [#allocation11]   ;;  %s3320_s28 = smov [#allocation14]  }
  0x5b   :  { %s61_s22 = sshll.u32 %s3319_s3, 4  ;;  %s83_s30 = sshll.u32 %s3320_s28, 4  ;;  %s62_s22 = int_to_ptr.vmem [resolvable:$true] %s61_s22  ;;  %s84_s30 = int_to_ptr.vmem [resolvable:$true] %s83_s30 }
  0x5c   :  { %s3158_s7 = scalar_lea.hbm %s4651_s4, 1024 }
  0x5d   :  { %p3159_p12 = scmp.ne.s32.totalorder %s4651_s4, %s3158_s7  ;;  %p3162_p13 = scmp.lt.u32.totalorder %s3158_s7, %s4651_s4 }
  0x5f   :  { %p3164_p0 = pnand %p3162_p13, %p3159_p12 }
  0x61   :  { %3167 = shalt.err (!%p3164_p0)
}
  0x62   :  { %s3168_s2 = scalar_lea.vmem %s62_s22, 1024  ;;  %p3173_p2 = scmp.lt.s32.totalorder %s62_s22, %s62_s22 }
  0x63   :  { %p3169_p1 = scmp.ne.s32.totalorder %s62_s22, %s3168_s2  ;;  %p3174_p3 = scmp.lt.s32.totalorder %s3168_s2, %s3168_s2 }
  0x65   :  { %p3175_p4 = por %p3174_p3, %p3173_p2 }
  0x67   :  { %p3176_p5 = pnand %p3175_p4, %p3169_p1 }
  0x69   :  { %3179 = shalt.err (!%p3176_p5)
}
  0x6a   :  { %67 = dma.hbm_to_vmem [thread:$0]  %s4651_s4, 1024, %s62_s22, [#allocation10], %s3317_s9, %s3317_s9, %s3318_s13  }
  0x6b   :  { %s3180_s21 = scalar_lea.hbm %s4653_s6, 1024 }
  0x6c   :  { %p3181_p6 = scmp.ne.s32.totalorder %s4653_s6, %s3180_s21  ;;  %p3184_p7 = scmp.lt.u32.totalorder %s3180_s21, %s4653_s6 }
  0x6e   :  { %p3186_p8 = pnand %p3184_p7, %p3181_p6 }
  0x70   :  { %3189 = shalt.err (!%p3186_p8)
}
  0x71   :  { %s3190_s3 = scalar_lea.vmem %s84_s30, 1024  ;;  %p3195_p10 = scmp.lt.s32.totalorder %s84_s30, %s84_s30 }
  0x72   :  { %p3191_p9 = scmp.ne.s32.totalorder %s84_s30, %s3190_s3  ;;  %p3196_p11 = scmp.lt.s32.totalorder %s3190_s3, %s3190_s3 }
  0x74   :  { %p3197_p12 = por %p3196_p11, %p3195_p10 }
  0x76   :  { %p3198_p13 = pnand %p3197_p12, %p3191_p9 }
  0x78   :  { %3201 = shalt.err (!%p3198_p13)
}
  0x79   :  { %89 = dma.hbm_to_vmem [thread:$0]  %s4653_s6, 1024, %s84_s30, [#allocation13], %s3317_s9, %s3317_s9, %s3318_s13  }
  0x7a   :  { %s3321_s28 = smov [#allocation17]   ;;  %s3322_s15 = smov [#allocation20]  }
  0x7b   :  { %s105_s14 = sshll.u32 %s3321_s28, 4  ;;  %s128_s7 = sshll.u32 %s3322_s15, 4  ;;  %s106_s14 = int_to_ptr.vmem [resolvable:$true] %s105_s14  ;;  %s129_s7 = int_to_ptr.vmem [resolvable:$true] %s128_s7 }
  0x7c   :  { %s3202_s18 = scalar_lea.hbm %s4655_s8, 1024 }
  0x7d   :  { %p3203_p0 = scmp.ne.s32.totalorder %s4655_s8, %s3202_s18  ;;  %p3206_p1 = scmp.lt.u32.totalorder %s3202_s18, %s4655_s8 }
  0x7f   :  { %p3208_p2 = pnand %p3206_p1, %p3203_p0 }
  0x81   :  { %3211 = shalt.err (!%p3208_p2)
}
  0x82   :  { %s3212_s6 = scalar_lea.vmem %s106_s14, 1024  ;;  %p3217_p4 = scmp.lt.s32.totalorder %s106_s14, %s106_s14 }
  0x83   :  { %p3213_p3 = scmp.ne.s32.totalorder %s106_s14, %s3212_s6  ;;  %p3218_p5 = scmp.lt.s32.totalorder %s3212_s6, %s3212_s6 }
  0x85   :  { %p3219_p6 = por %p3218_p5, %p3217_p4 }
  0x87   :  { %p3220_p7 = pnand %p3219_p6, %p3213_p3 }
  0x89   :  { %3223 = shalt.err (!%p3220_p7)
}
  0x8a   :  { %111 = dma.hbm_to_vmem [thread:$0]  %s4655_s8, 1024, %s106_s14, [#allocation16], %s3317_s9, %s3317_s9, %s3318_s13  }
  0x8b   :  { %s3224_s23 = scalar_lea.hbm %s4657_s10, 16 }
  0x8c   :  { %p3225_p8 = scmp.ne.s32.totalorder %s4657_s10, %s3224_s23  ;;  %p3228_p9 = scmp.lt.u32.totalorder %s3224_s23, %s4657_s10 }
  0x8e   :  { %p3230_p10 = pnand %p3228_p9, %p3225_p8 }
  0x90   :  { %3233 = shalt.err (!%p3230_p10)
}
  0x91   :  { %s3234_s4 = scalar_lea.vmem %s129_s7, 16  ;;  %s3238_s22 = scalar_lea.vmem %s129_s7, 32 }
  0x92   :  { %p3235_p11 = scmp.ne.s32.totalorder %s129_s7, %s3234_s4  ;;  %p3239_p12 = scmp.lt.s32.totalorder %s129_s7, %s129_s7 }
  0x93   :  { %p3240_p13 = scmp.lt.s32.totalorder %s3238_s22, %s3234_s4 }
  0x95   :  { %p3241_p0 = por %p3240_p13, %p3239_p12 }
  0x97   :  { %p3242_p1 = pnand %p3241_p0, %p3235_p11 }
  0x99   :  { %3245 = shalt.err (!%p3242_p1)
}
  0x9a   :  { %131 = dma.hbm_to_vmem [thread:$0]  %s4657_s10, 16, %s129_s7, [#allocation19]  }
  0x9b   :  { %s3323_s14 = smov [#allocation21]   ;;  %s3246_s18 = scalar_lea.hbm %s4658_s11, 16 }
  0x9c   :  { %s138_s15 = sshll.u32 %s3323_s14, 4  ;;  %p3247_p2 = scmp.ne.s32.totalorder %s4658_s11, %s3246_s18  ;;  %s139_s15 = int_to_ptr.vmem [resolvable:$true] %s138_s15 }
  0x9d   :  { %p3250_p3 = scmp.lt.u32.totalorder %s3246_s18, %s4658_s11 }
  0x9f   :  { %p3252_p4 = pnand %p3250_p3, %p3247_p2 }
  0xa1   :  { %3255 = shalt.err (!%p3252_p4)
}
  0xa2   :  { %s3256_s6 = scalar_lea.vmem %s139_s15, 16  ;;  %s3260_s10 = scalar_lea.vmem %s139_s15, 32 }
  0xa3   :  { %p3257_p5 = scmp.ne.s32.totalorder %s139_s15, %s3256_s6  ;;  %p3261_p6 = scmp.lt.s32.totalorder %s139_s15, %s139_s15 }
  0xa4   :  { %p3262_p7 = scmp.lt.s32.totalorder %s3260_s10, %s3256_s6 }
  0xa6   :  { %p3263_p8 = por %p3262_p7, %p3261_p6 }
  0xa8   :  { %p3264_p9 = pnand %p3263_p8, %p3257_p5 }
  0xaa   :  { %3267 = shalt.err (!%p3264_p9)
}
  0xab   :  { %141 = dma.hbm_to_vmem [thread:$0]  %s4658_s11, 16, %s139_s15, [#allocation22]  }
  0xac   :  { %3294 = dma.done.wait [#allocation7], 2048  }
  0xad   :  { %3295 = vsyncadd [#allocation7], 4294965248 }
  0xae   :  { %3296 = dma.done.wait [#allocation10], 1056  }
  0xaf   :  { %3297 = vsyncadd [#allocation10], 4294966240 }
  0xb0   :  { %3298 = dma.done.wait [#allocation13], 1040  }
  0xb1   :  { %3299 = vsyncadd [#allocation13], 4294966256 }
  0xb2   :  { %3300 = dma.done.wait [#allocation16], 1040  }
  0xb3   :  { %3301 = vsyncadd [#allocation16], 4294966256 }
  0xb4   :  { %3302 = dma.done.wait [#allocation19], 32  }
  0xb5   :  { %3303 = vsyncadd [#allocation19], 4294967264 }
  0xb6   :  { %3304 = dma.done.wait [#allocation22], 16  }
  0xb7   :  { %3305 = vsyncadd [#allocation22], 4294967280  ;;  %v3324_v0 = vmov 0.0   ;;  %v3524_v1 = vld [vmem:[#allocation9] sm:$0x3]  ;;  %v2688_v2 = vld [vmem:[#allocation11] sm:$0xff]  }
  0xb8   :  { %181 = vst [vmem:[#allocation2] sm:$0xff] %v3324_v0  ;;  %182 = vst [vmem:[#allocation2 + $0x8] sm:$0xff] %v3324_v0  ;;  %v2689_v3 = vld [vmem:[#allocation11 + $0x8] sm:$0xff]   ;;  %2489 = vmatprep.subr.bf16.mxu0 %v2688_v2  ;;  %2633 = vmatprep.subr.bf16.mxu1 %v2688_v2  ;;  %v2690_v4 = vld [vmem:[#allocation11 + $0x10] sm:$0xff]   ;;  %s2016_s24 = sadd.s32 1, %s4648_s1 }
  0xb9   :  { %183 = vst [vmem:[#allocation2 + $0x10] sm:$0xff] %v3324_v0  ;;  %184 = vst [vmem:[#allocation2 + $0x18] sm:$0xff] %v3324_v0  ;;  %2490 = vmatpush3.bf16.msra.mxu0 %v2688_v2  ;;  %2641 = vmatpush3.bf16.msra.mxu1 %v2688_v2  ;;  %v2691_v5 = vld [vmem:[#allocation11 + $0x18] sm:$0xff]   ;;  %v2692_v8 = vld [vmem:[#allocation11 + $0x20] sm:$0xff]   ;;  %p2256_p10 = scmp.ge.s32.totalorder %s4647_s0, %s2016_s24 }
  0xba   :  { %185 = vst [vmem:[#allocation2 + $0x20] sm:$0xff] %v3324_v0  ;;  %186 = vst [vmem:[#allocation2 + $0x28] sm:$0xff] %v3324_v0  ;;  %2491 = vmatprep.subr.bf16.mxu0 %v2689_v3  ;;  %2634 = vmatprep.subr.bf16.mxu1 %v2689_v3  ;;  %v2696_v6 = vld [vmem:[#allocation6] sm:$0xff]   ;;  %v2693_v9 = vld [vmem:[#allocation11 + $0x28] sm:$0xff]  }
  0xbb   :  { %187 = vst [vmem:[#allocation2 + $0x30] sm:$0xff] %v3324_v0  ;;  %188 = vst [vmem:[#allocation2 + $0x38] sm:$0xff] %v3324_v0  ;;  %2505 = vmatprep.mubr.bf16.mxu0 %v2696_v6  ;;  %v2698_v7 = vld [vmem:[#allocation6 + $0x40] sm:$0xff]   ;;  %v2694_v10 = vld [vmem:[#allocation11 + $0x30] sm:$0xff]  }
  0xbc   :  { %4686 = vst [vmem:[#allocation31_spill] sm:$0xff] %v3524_v1  ;;  %2521 = vmatprep.mubr.bf16.mxu1 %v2698_v7  ;;  %v2695_v11 = vld [vmem:[#allocation11 + $0x38] sm:$0xff]   ;;  %v2697_v12 = vld [vmem:[#allocation6 + $0x8] sm:$0xff]   ;;  %v2700_v14 = vld [vmem:[#allocation6 + $0x10] sm:$0xff]  }
  0xbd   :  { %2492 = vmatpush3.bf16.msra.mxu0 %v2689_v3  ;;  %2642 = vmatpush3.bf16.msra.mxu1 %v2689_v3  ;;  %v2699_v13 = vld [vmem:[#allocation6 + $0x48] sm:$0xff]   ;;  %v2702_v15 = vld [vmem:[#allocation6 + $0x50] sm:$0xff]   ;;  %v2701_v16 = vld [vmem:[#allocation6 + $0x18] sm:$0xff]  }
  0xbe   :  { %2493 = vmatprep.subr.bf16.mxu0 %v2690_v4  ;;  %2635 = vmatprep.subr.bf16.mxu1 %v2690_v4  ;;  %v2703_v17 = vld [vmem:[#allocation6 + $0x58] sm:$0xff]   ;;  %v2704_v18 = vld [vmem:[#allocation6 + $0x20] sm:$0xff]   ;;  %v2705_v20 = vld [vmem:[#allocation6 + $0x28] sm:$0xff]  }
  0xbf   :  { %v2706_v19 = vld [vmem:[#allocation6 + $0x60] sm:$0xff]   ;;  %v2707_v21 = vld [vmem:[#allocation6 + $0x68] sm:$0xff]   ;;  %v2708_v22 = vld [vmem:[#allocation6 + $0x30] sm:$0xff]  }
  0xc0   :  { %v2710_v23 = vld [vmem:[#allocation6 + $0x70] sm:$0xff]   ;;  %v2709_v24 = vld [vmem:[#allocation6 + $0x38] sm:$0xff]   ;;  %v2712_v26 = vld [vmem:[#allocation14] sm:$0xff]  }
  0xc1   :  { %2494 = vmatpush3.bf16.msra.mxu0 %v2690_v4  ;;  %2643 = vmatpush3.bf16.msra.mxu1 %v2690_v4  ;;  %v2711_v25 = vld [vmem:[#allocation6 + $0x78] sm:$0xff]   ;;  %v2713_v27 = vld [vmem:[#allocation14 + $0x8] sm:$0xff]   ;;  %v2716_v30 = vld [vmem:[#allocation14 + $0x20] sm:$0xff]  }
  0xc2   :  { %2495 = vmatprep.subr.bf16.mxu0 %v2691_v5  ;;  %2636 = vmatprep.subr.bf16.mxu1 %v2691_v5  ;;  %v2714_v28 = vld [vmem:[#allocation14 + $0x10] sm:$0xff]   ;;  %v2715_v29 = vld [vmem:[#allocation14 + $0x18] sm:$0xff]   ;;  %v2717_v31 = vld [vmem:[#allocation14 + $0x28] sm:$0xff]  }
  0xc3   :  { %v2718_v32 = vld [vmem:[#allocation14 + $0x30] sm:$0xff]   ;;  %v2719_v33 = vld [vmem:[#allocation14 + $0x38] sm:$0xff]  }
  0xc4   :  { %v3526_v34 = vld [vmem:[#allocation12] ss:$0 sm:$0xff] }
  0xc5   :  { %2496 = vmatpush3.bf16.msra.mxu0 %v2691_v5  ;;  %2644 = vmatpush3.bf16.msra.mxu1 %v2691_v5 }
  0xc6   :  { %2497 = vmatprep.subr.bf16.mxu0 %v2692_v8  ;;  %2637 = vmatprep.subr.bf16.mxu1 %v2692_v8 }
  0xc9   :  { %2498 = vmatpush3.bf16.msra.mxu0 %v2692_v8  ;;  %2645 = vmatpush3.bf16.msra.mxu1 %v2692_v8 }
  0xca   :  { %2499 = vmatprep.subr.bf16.mxu0 %v2693_v9  ;;  %2638 = vmatprep.subr.bf16.mxu1 %v2693_v9 }
  0xcd   :  { %2500 = vmatpush3.bf16.msra.mxu0 %v2693_v9  ;;  %2646 = vmatpush3.bf16.msra.mxu1 %v2693_v9 }
  0xce   :  { %2501 = vmatprep.subr.bf16.mxu0 %v2694_v10  ;;  %2639 = vmatprep.subr.bf16.mxu1 %v2694_v10 }
  0xd1   :  { %2502 = vmatpush3.bf16.msra.mxu0 %v2694_v10  ;;  %2647 = vmatpush3.bf16.msra.mxu1 %v2694_v10 }
  0xd2   :  { %2503 = vmatprep.subr.bf16.mxu0 %v2695_v11  ;;  %2640 = vmatprep.subr.bf16.mxu1 %v2695_v11 }
  0xd5   :  { %2504 = vmatpush3.bf16.msra.mxu0 %v2695_v11  ;;  %2648 = vmatpush3.bf16.msra.mxu1 %v2695_v11 }
  0xd6   :  { %2537 = vmatprep.subr.bf16.mxu1 %v2712_v26 }
  0xd8   :  { %2506 = vmatmul.mubr.bf16.vlgmr.msra.gmra.mrb[0].mxu0 %v2697_v12  ;;  %2522 = vmatmul.mubr.bf16.vlgmr.msra.gmra.mrb[0].mxu1 %v2699_v13 }
  0xd9   :  { %2509 = vmatprep.mubr.bf16.mxu0 %v2700_v14  ;;  %2525 = vmatprep.mubr.bf16.mxu1 %v2702_v15 }
  0xda   :  { %2538 = vmatpush3.bf16.msra.mxu1 %v2712_v26 }
  0xdb   :  { %2539 = vmatprep.subr.bf16.mxu1 %v2713_v27 }
  0xde   :  { %2540 = vmatpush3.bf16.msra.mxu1 %v2713_v27 }
  0xdf   :  { %2541 = vmatprep.subr.bf16.mxu1 %v2714_v28 }
  0xe0   :  { %2510 = vmatmul.mubr.bf16.gmra.mrb[4].mxu0 %v2701_v16  ;;  %2526 = vmatmul.mubr.bf16.gmra.mrb[4].mxu1 %v2703_v17 }
  0xe1   :  { %2513 = vmatprep.mubr.bf16.mxu0 %v2704_v18  ;;  %2529 = vmatprep.mubr.bf16.mxu1 %v2706_v19 }
  0xe2   :  { %2542 = vmatpush3.bf16.msra.mxu1 %v2714_v28 }
  0xe3   :  { %2543 = vmatprep.subr.bf16.mxu1 %v2715_v29 }
  0xe6   :  { %2544 = vmatpush3.bf16.msra.mxu1 %v2715_v29 }
  0xe7   :  { %2545 = vmatprep.subr.bf16.mxu1 %v2716_v30 }
  0xe8   :  { %2514 = vmatmul.mubr.bf16.gmra.mrb[8].mxu0 %v2705_v20  ;;  %2530 = vmatmul.mubr.bf16.gmra.mrb[8].mxu1 %v2707_v21 }
  0xe9   :  { %2517 = vmatprep.mubr.bf16.mxu0 %v2708_v22  ;;  %2533 = vmatprep.mubr.bf16.mxu1 %v2710_v23 }
  0xea   :  { %2546 = vmatpush3.bf16.msra.mxu1 %v2716_v30 }
  0xeb   :  { %2547 = vmatprep.subr.bf16.mxu1 %v2717_v31 }
  0xee   :  { %2548 = vmatpush3.bf16.msra.mxu1 %v2717_v31 }
  0xef   :  { %2549 = vmatprep.subr.bf16.mxu1 %v2718_v32 }
  0xf0   :  { %2518 = vmatmul.mubr.bf16.gmra.mrb[12].mxu0 %v2709_v24  ;;  %2534 = vmatmul.mubr.bf16.gmra.mrb[12].mxu1 %v2711_v25 }
  0xf2   :  { %2550 = vmatpush3.bf16.msra.mxu1 %v2718_v32 }
  0xf3   :  { %2551 = vmatprep.subr.bf16.mxu1 %v2719_v33 }
  0xf6   :  { %2552 = vmatpush3.bf16.msra.mxu1 %v2719_v33 }
 0x1ab   :  { %v2507_v35 = vpop.f32.mrb[0].mxu0  ;;  %v2523_v36 = vpop.f32.mrb[0].mxu1 }
 0x1ac   :  { %v3529_v37 = vadd.f32 %v2507_v35, %v3526_v34  ;;  %v422_v38 = vpop.f32.mrb[1].mxu0  ;;  %v3532_v39 = vadd.f32 %v2523_v36, %v3526_v34  ;;  %v486_v40 = vpop.f32.mrb[1].mxu1 }
 0x1ad   :  { %v3535_v41 = vadd.f32 %v3526_v34, %v422_v38  ;;  %v2508_v42 = vpop.f32.mrb[2].mxu0  ;;  %v3538_v43 = vadd.f32 %v3526_v34, %v486_v40  ;;  %v2524_v44 = vpop.f32.mrb[2].mxu1 }
 0x1ae   :  { %v551_v45 = vsub.f32 0.0, %v3529_v37  ;;  %v3542_v46 = vadd.f32 %v2508_v42, %v3526_v34  ;;  %v567_v47 = vsub.f32 0.0, %v3532_v39  ;;  %v425_v48 = vpop.f32.mrb[3].mxu0  ;;  %v3546_v49 = vadd.f32 %v2524_v44, %v3526_v34  ;;  %v489_v50 = vpop.f32.mrb[3].mxu1 }
 0x1af   :  { %v549_v51 = vsub.f32 0.0, %v3535_v41  ;;  %v3550_v52 = vadd.f32 %v3526_v34, %v425_v48  ;;  %v565_v53 = vsub.f32 0.0, %v3538_v43  ;;  %v3554_v54 = vadd.f32 %v3526_v34, %v489_v50 }
 0x1b0   :  { %v585_v55 = vmul.f32 1.442695, %v551_v45  ;;  %v552_v56 = vsub.f32 0.0, %v3542_v46  ;;  %v568_v57 = vsub.f32 0.0, %v3546_v49  ;;  %v617_v59 = vmul.f32 1.442695, %v567_v47 }
 0x1b1   :  { %v581_v58 = vmul.f32 1.442695, %v549_v51  ;;  %v550_v60 = vsub.f32 0.0, %v3550_v52  ;;  %v566_v61 = vsub.f32 0.0, %v3554_v54  ;;  %v613_v0 = vmul.f32 1.442695, %v565_v53 }
 0x1b2   :  { %2728 = vpow2.f32 %v585_v55  ;;  %v587_v62 = vmul.f32 1.442695, %v552_v56  ;;  %v619_v4 = vmul.f32 1.442695, %v568_v57 }
 0x1b3   :  { %2730 = vpow2.f32 %v581_v58  ;;  %v583_v63 = vmul.f32 1.442695, %v550_v60  ;;  %v2511_v2 = vpop.f32.mrb[4].mxu0  ;;  %v2527_v3 = vpop.f32.mrb[4].mxu1  ;;  %v615_v9 = vmul.f32 1.442695, %v566_v61 }
 0x1b4   :  { %2732 = vpow2.f32 %v587_v62  ;;  %v3561_v5 = vadd.f32 %v2511_v2, %v3526_v34  ;;  %v438_v6 = vpop.f32.mrb[5].mxu0  ;;  %v3564_v7 = vadd.f32 %v2527_v3, %v3526_v34  ;;  %v502_v8 = vpop.f32.mrb[5].mxu1 }
 0x1b5   :  { %2734 = vpow2.f32 %v617_v59  ;;  %v3567_v10 = vadd.f32 %v3526_v34, %v438_v6  ;;  %v2512_v11 = vpop.f32.mrb[6].mxu0  ;;  %v2528_v12 = vpop.f32.mrb[6].mxu1  ;;  %v3581_v26 = vadd.f32 %v3526_v34, %v502_v8 }
 0x1b6   :  { %2736 = vpow2.f32 %v583_v63  ;;  %v555_v13 = vsub.f32 0.0, %v3561_v5  ;;  %v3571_v14 = vadd.f32 %v2512_v11, %v3526_v34  ;;  %v571_v15 = vsub.f32 0.0, %v3564_v7  ;;  %v441_v16 = vpop.f32.mrb[7].mxu0  ;;  %v505_v17 = vpop.f32.mrb[7].mxu1 }
 0x1b7   :  { %2738 = vpow2.f32 %v613_v0  ;;  %v553_v18 = vsub.f32 0.0, %v3567_v10  ;;  %v3576_v19 = vadd.f32 %v3526_v34, %v441_v16  ;;  %v569_v45 = vsub.f32 0.0, %v3581_v26 }
 0x1b8   :  { %2740 = vpow2.f32 %v619_v4  ;;  %v593_v20 = vmul.f32 1.442695, %v555_v13  ;;  %v556_v21 = vsub.f32 0.0, %v3571_v14  ;;  %v625_v23 = vmul.f32 1.442695, %v571_v15 }
 0x1b9   :  { %2742 = vpow2.f32 %v615_v9  ;;  %v589_v22 = vmul.f32 1.442695, %v553_v18  ;;  %v554_v24 = vsub.f32 0.0, %v3576_v19  ;;  %v3588_v51 = vadd.f32 %v2528_v12, %v3526_v34 }
 0x1ba   :  { %2744 = vpow2.f32 %v593_v20  ;;  %v595_v25 = vmul.f32 1.442695, %v556_v21  ;;  %v3591_v53 = vadd.f32 %v3526_v34, %v505_v17  ;;  %v621_v0 = vmul.f32 1.442695, %v569_v45 }
 0x1bb   :  { %2746 = vpow2.f32 %v589_v22  ;;  %v591_v27 = vmul.f32 1.442695, %v554_v24  ;;  %v2515_v28 = vpop.f32.mrb[8].mxu0  ;;  %v2531_v29 = vpop.f32.mrb[8].mxu1  ;;  %v572_v4 = vsub.f32 0.0, %v3588_v51 }
 0x1bc   :  { %v2729_v30 = vpop.eup %2728  ;;  %2748 = vpow2.f32 %v595_v25  ;;  %v454_v31 = vpop.f32.mrb[9].mxu0  ;;  %v3584_v38 = vadd.f32 %v2531_v29, %v3526_v34  ;;  %v3594_v58 = vadd.f32 %v2515_v28, %v3526_v34  ;;  %v570_v6 = vsub.f32 0.0, %v3591_v53 }
 0x1bd   :  { %v518_v32 = vpop.f32.mrb[9].mxu1  ;;  %v2731_v33 = vpop.eup %2730  ;;  %v647_v35 = vadd.f32 1.0, %v2729_v30  ;;  %2750 = vpow2.f32 %v625_v23  ;;  %v3597_v61 = vadd.f32 %v3526_v34, %v454_v31 }
 0x1be   :  { %v2516_v36 = vpop.f32.mrb[10].mxu0  ;;  %v2532_v40 = vpop.f32.mrb[10].mxu1  ;;  %v645_v44 = vadd.f32 1.0, %v2731_v33  ;;  %2752 = vpow2.f32 %v591_v27  ;;  %v559_v13 = vsub.f32 0.0, %v3594_v58  ;;  %v3615_v29 = vadd.f32 %v3526_v34, %v518_v32 }
 0x1bf   :  { %v2733_v42 = vpop.eup %2732  ;;  %v457_v47 = vpop.f32.mrb[11].mxu0  ;;  %2754 = vrcp.f32 %v647_v35  ;;  %v3603_v15 = vadd.f32 %v2532_v40, %v3526_v34  ;;  %v557_v21 = vsub.f32 0.0, %v3597_v61  ;;  %v3607_v22 = vadd.f32 %v2516_v36, %v3526_v34 }
 0x1c0   :  { %v2735_v48 = vpop.eup %2734  ;;  %v648_v50 = vadd.f32 1.0, %v2733_v42  ;;  %v521_v55 = vpop.f32.mrb[11].mxu1  ;;  %2756 = vrcp.f32 %v645_v44  ;;  %v3612_v28 = vadd.f32 %v3526_v34, %v457_v47  ;;  %v627_v36 = vmul.f32 1.442695, %v572_v4 }
 0x1c1   :  { %v2737_v56 = vpop.eup %2736  ;;  %v663_v57 = vadd.f32 1.0, %v2735_v48  ;;  %v623_v40 = vmul.f32 1.442695, %v570_v6  ;;  %v601_v45 = vmul.f32 1.442695, %v559_v13  ;;  %v575_v48 = vsub.f32 0.0, %v3584_v38 }
 0x1c2   :  { %v2739_v59 = vpop.eup %2738  ;;  %2758 = vrcp.f32 %v648_v50  ;;  %v646_v60 = vadd.f32 1.0, %v2737_v56  ;;  %v560_v32 = vsub.f32 0.0, %v3607_v22  ;;  %v3624_v56 = vadd.f32 %v3526_v34, %v521_v55 }
 0x1c3   :  { %v2741_v62 = vpop.eup %2740  ;;  %2760 = vrcp.f32 %v663_v57  ;;  %v661_v63 = vadd.f32 1.0, %v2739_v59  ;;  %v2519_v8 = vpop.f32.mrb[12].mxu0  ;;  %v597_v59 = vmul.f32 1.442695, %v557_v21 }
 0x1c4   :  { %v2743_v2 = vpop.eup %2742  ;;  %2762 = vrcp.f32 %v646_v60  ;;  %v664_v3 = vadd.f32 1.0, %v2741_v62  ;;  %v2535_v9 = vpop.f32.mrb[12].mxu1  ;;  %v558_v60 = vsub.f32 0.0, %v3612_v28  ;;  %v573_v62 = vsub.f32 0.0, %v3615_v29 }
 0x1c5   :  { %v2745_v11 = vpop.eup %2744  ;;  %2764 = vrcp.f32 %v661_v63  ;;  %v662_v12 = vadd.f32 1.0, %v2743_v2  ;;  %v470_v16 = vpop.f32.mrb[13].mxu0  ;;  %v576_v2 = vsub.f32 0.0, %v3603_v15 }
 0x1c6   :  { %v534_v17 = vpop.f32.mrb[13].mxu1  ;;  %v2747_v18 = vpop.eup %2746  ;;  %2766 = vrcp.f32 %v664_v3  ;;  %v651_v20 = vadd.f32 1.0, %v2745_v11  ;;  %v3630_v3 = vadd.f32 %v2519_v8, %v3526_v34  ;;  %v3633_v4 = vadd.f32 %v3526_v34, %v470_v16 }
 0x1c7   :  { %v3609_v23 = vpop.f32.mrb[14].mxu0  ;;  %v2536_v24 = vpop.f32.mrb[14].mxu1  ;;  %2768 = vrcp.f32 %v662_v12  ;;  %v649_v27 = vadd.f32 1.0, %v2747_v18  ;;  %v3638_v12 = vadd.f32 %v2535_v9, %v3526_v34  ;;  %v603_v18 = vmul.f32 1.442695, %v560_v32 }
 0x1c8   :  { %v2749_v25 = vpop.eup %2748  ;;  %v3617_v30 = vpop.f32.mrb[15].mxu0  ;;  %2770 = vrcp.f32 %v651_v20  ;;  %v574_v20 = vsub.f32 0.0, %v3624_v56  ;;  %v599_v16 = vmul.f32 1.442695, %v558_v60  ;;  %v561_v9 = vsub.f32 0.0, %v3633_v4 }
 0x1c9   :  { %v3619_v31 = vpop.f32.mrb[15].mxu1  ;;  %v2751_v33 = vpop.eup %2750  ;;  %v652_v35 = vadd.f32 1.0, %v2749_v25  ;;  %2772 = vrcp.f32 %v649_v27  ;;  %v633_v25 = vmul.f32 1.442695, %v575_v48 }
 0x1ca   :  { %v2753_v42 = vpop.eup %2752  ;;  %v667_v44 = vadd.f32 1.0, %v2751_v33  ;;  %v629_v33 = vmul.f32 1.442695, %v573_v62 }
 0x1cb   :  { %v2755_v47 = vpop.eup %2754  ;;  %2774 = vrcp.f32 %v652_v35  ;;  %v650_v50 = vadd.f32 1.0, %v2753_v42  ;;  %v3644_v35 = vadd.f32 %v3526_v34, %v534_v17 }
 0x1cc   :  { %v2757_v57 = vpop.eup %2756  ;;  %2776 = vrcp.f32 %v667_v44  ;;  %v711_v55 = vmul.f32 %v2755_v47, %v3529_v37  ;;  %v635_v37 = vmul.f32 1.442695, %v576_v2 }
 0x1cd   :  { %v2759_v63 = vpop.eup %2758  ;;  %2778 = vrcp.f32 %v650_v50 }
 0x1ce   :  { %v2761_v6 = vpop.eup %2760  ;;  %v712_v11 = vmul.f32 %v2759_v63, %v3542_v46  ;;  %2780 = vpow2.f32 %v621_v0  ;;  %v563_v46 = vsub.f32 0.0, %v3630_v3 }
 0x1cf   :  { %v2763_v13 = vpop.eup %2762  ;;  %2782 = vpow2.f32 %v627_v36  ;;  %v3647_v36 = vadd.f32 %v2536_v24, %v3526_v34  ;;  %v3652_v47 = vmul.f32 %v2761_v6, %v3532_v39 }
 0x1d0   :  { %v2765_v21 = vpop.eup %2764  ;;  %v759_v8 = vpack.c.bf16 %v712_v11, %v711_v55  ;;  %2784 = vpow2.f32 %v623_v40  ;;  %v709_v40 = vmul.f32 %v2757_v57, %v3535_v41  ;;  %v710_v44 = vmul.f32 %v2763_v13, %v3550_v52 }
 0x1d1   :  { %v2767_v27 = vpop.eup %2766  ;;  %2786 = vpow2.f32 %v601_v45  ;;  %v631_v45 = vmul.f32 1.442695, %v574_v20  ;;  %v3655_v50 = vmul.f32 %v2765_v21, %v3538_v43  ;;  %v609_v41 = vmul.f32 1.442695, %v563_v46 }
 0x1d2   :  { %v2769_v0 = vpop.eup %2768  ;;  %2788 = vpow2.f32 %v597_v59  ;;  %v3661_v32 = vmul.f32 %v2767_v27, %v3546_v49  ;;  %v3665_v52 = vadd.f32 %v3526_v34, %v3619_v31  ;;  %v758_v49 = vpack.c.bf16 %v710_v44, %v709_v40 }
 0x1d3   :  { %v2771_v42 = vpop.eup %2770  ;;  %2790 = vpow2.f32 %v603_v18  ;;  %v3658_v17 = vmul.f32 %v2769_v0, %v3554_v54  ;;  %v605_v54 = vmul.f32 1.442695, %v561_v9  ;;  %v3679_v21 = vadd.f32 %v3609_v23, %v3526_v34 }
 0x1d4   :  { %v2773_v48 = vpop.eup %2772  ;;  %2792 = vpow2.f32 %v633_v25  ;;  %v715_v39 = vmul.f32 %v2771_v42, %v3561_v5  ;;  %2553 = vmatprep.mubr.bf16.mxu1 %v758_v49  ;;  %v767_v5 = vpack.c.bf16 %v3661_v32, %v3652_v47  ;;  %v579_v44 = vsub.f32 0.0, %v3638_v12  ;;  %v2724_v47 = vld [vmem:[#allocation17 + $0x20] sm:$0xff]   ;;  %v2727_v32 = vld [vmem:[#allocation17 + $0x38] sm:$0xff]  }
 0x1d5   :  { %v2775_v24 = vpop.eup %2774  ;;  %2794 = vpow2.f32 %v599_v16  ;;  %v713_v60 = vmul.f32 %v2773_v48, %v3567_v10  ;;  %v766_v31 = vpack.c.bf16 %v3658_v17, %v3655_v50  ;;  %2554 = vmatmul.mubr.bf16.vlgmr.msra.gmra.mrb[16].mxu1 %v759_v8  ;;  %v3683_v8 = vadd.f32 %v3526_v34, %v3617_v30  ;;  %v2725_v50 = vld [vmem:[#allocation17 + $0x28] sm:$0xff]   ;;  %v2726_v17 = vld [vmem:[#allocation17 + $0x30] sm:$0xff]  }
 0x1d6   :  { %v3667_v57 = vpop.eup %2776  ;;  %v716_v43 = vmul.f32 %v2775_v24, %v3571_v14  ;;  %2796 = vpow2.f32 %v629_v33  ;;  %v564_v23 = vsub.f32 0.0, %v3679_v21  ;;  %v641_v49 = vmul.f32 1.442695, %v579_v44 }
 0x1d7   :  { %v2779_v59 = vpop.eup %2778  ;;  %2798 = vpow2.f32 %v635_v37  ;;  %v562_v24 = vsub.f32 0.0, %v3683_v8 }
 0x1d8   :  { %v2781_v62 = vpop.eup %2780  ;;  %v714_v63 = vmul.f32 %v2779_v59, %v3576_v19  ;;  %2800 = vpow2.f32 %v631_v45  ;;  %v761_v2 = vpack.c.bf16 %v716_v43, %v715_v39  ;;  %v611_v43 = vmul.f32 1.442695, %v564_v23 }
 0x1d9   :  { %v2783_v6 = vpop.eup %2782  ;;  %v665_v55 = vadd.f32 1.0, %v2781_v62  ;;  %2802 = vpow2.f32 %v609_v41  ;;  %v577_v41 = vsub.f32 0.0, %v3644_v35  ;;  %v578_v62 = vsub.f32 0.0, %v3665_v52 }
 0x1da   :  { %v2785_v14 = vpop.eup %2784  ;;  %v668_v11 = vadd.f32 1.0, %v2783_v6  ;;  %2804 = vpow2.f32 %v605_v54  ;;  %v760_v10 = vpack.c.bf16 %v714_v63, %v713_v60  ;;  %v580_v54 = vsub.f32 0.0, %v3647_v36 }
 0x1db   :  { %v2787_v13 = vpop.eup %2786  ;;  %2806 = vrcp.f32 %v665_v55  ;;  %v666_v19 = vadd.f32 1.0, %v2785_v14  ;;  %v3692_v60 = vmul.f32 %v3667_v57, %v3564_v7  ;;  %v607_v6 = vmul.f32 1.442695, %v562_v24 }
 0x1dc   :  { %v2789_v18 = vpop.eup %2788  ;;  %2808 = vrcp.f32 %v668_v11  ;;  %v655_v20 = vadd.f32 1.0, %v2787_v13  ;;  %2557 = vmatprep.mubr.bf16.mxu1 %v760_v10  ;;  %v637_v11 = vmul.f32 1.442695, %v577_v41  ;;  %v643_v7 = vmul.f32 1.442695, %v580_v54 }
 0x1dd   :  { %v2791_v25 = vpop.eup %2790  ;;  %2810 = vrcp.f32 %v666_v19  ;;  %v653_v16 = vadd.f32 1.0, %v2789_v18  ;;  %2558 = vmatmul.mubr.bf16.gmra.mrb[20].mxu1 %v761_v2  ;;  %v639_v19 = vmul.f32 1.442695, %v578_v62 }
 0x1de   :  { %v2793_v27 = vpop.eup %2792  ;;  %2812 = vrcp.f32 %v655_v20  ;;  %v656_v33 = vadd.f32 1.0, %v2791_v25 }
 0x1df   :  { %v2795_v37 = vpop.eup %2794  ;;  %2814 = vrcp.f32 %v653_v16  ;;  %v671_v46 = vadd.f32 1.0, %v2793_v27 }
 0x1e0   :  { %v2797_v0 = vpop.eup %2796  ;;  %2816 = vrcp.f32 %v656_v33  ;;  %v654_v9 = vadd.f32 1.0, %v2795_v37 }
 0x1e1   :  { %v2799_v42 = vpop.eup %2798  ;;  %2818 = vrcp.f32 %v671_v46  ;;  %v669_v40 = vadd.f32 1.0, %v2797_v0 }
 0x1e2   :  { %v2801_v45 = vpop.eup %2800  ;;  %2820 = vrcp.f32 %v654_v9  ;;  %v672_v48 = vadd.f32 1.0, %v2799_v42 }
 0x1e3   :  { %v2803_v34 = vpop.eup %2802  ;;  %2822 = vrcp.f32 %v669_v40  ;;  %v670_v30 = vadd.f32 1.0, %v2801_v45 }
 0x1e4   :  { %v2805_v39 = vpop.eup %2804  ;;  %2824 = vrcp.f32 %v672_v48 }
 0x1e5   :  { %v2807_v59 = vpop.eup %2806  ;;  %2826 = vrcp.f32 %v670_v30 }
 0x1e6   :  { %v2809_v63 = vpop.eup %2808  ;;  %v3696_v2 = vmul.f32 %v2807_v59, %v3581_v26  ;;  %2828 = vpow2.f32 %v611_v43 }
 0x1e7   :  { %v2811_v55 = vpop.eup %2810  ;;  %v3699_v14 = vmul.f32 %v2809_v63, %v3588_v51  ;;  %2830 = vpow2.f32 %v641_v49 }
 0x1e8   :  { %v2813_v10 = vpop.eup %2812  ;;  %v3702_v13 = vmul.f32 %v2811_v55, %v3591_v53  ;;  %2832 = vpow2.f32 %v607_v6 }
 0x1e9   :  { %v2815_v57 = vpop.eup %2814  ;;  %v769_v18 = vpack.c.bf16 %v3699_v14, %v3692_v60  ;;  %v719_v25 = vmul.f32 %v2813_v10, %v3594_v58  ;;  %2834 = vpow2.f32 %v637_v11 }
 0x1ea   :  { %v2817_v26 = vpop.eup %2816  ;;  %v768_v20 = vpack.c.bf16 %v3702_v13, %v3696_v2  ;;  %v717_v27 = vmul.f32 %v2815_v57, %v3597_v61  ;;  %2836 = vpow2.f32 %v643_v7  ;;  %v657_v61 = vadd.f32 1.0, %v2805_v39 }
 0x1eb   :  { %v2819_v51 = vpop.eup %2818  ;;  %v720_v16 = vmul.f32 %v2817_v26, %v3607_v22  ;;  %2838 = vpow2.f32 %v639_v19  ;;  %v659_v22 = vadd.f32 1.0, %v2803_v34 }
 0x1ec   :  { %v2821_v53 = vpop.eup %2820  ;;  %v3712_v37 = vmul.f32 %v2819_v51, %v3584_v38 }
 0x1ed   :  { %v2823_v33 = vpop.eup %2822  ;;  %v718_v46 = vmul.f32 %v2821_v53, %v3612_v28  ;;  %v763_v0 = vpack.c.bf16 %v720_v16, %v719_v25  ;;  %2840 = vrcp.f32 %v659_v22 }
 0x1ee   :  { %v2825_v9 = vpop.eup %2824  ;;  %v733_v23 = vmul.f32 %v2823_v33, %v3615_v29  ;;  %2842 = vrcp.f32 %v657_v61 }
 0x1ef   :  { %v2827_v42 = vpop.eup %2826  ;;  %v736_v58 = vmul.f32 %v2825_v9, %v3603_v15  ;;  %v762_v40 = vpack.c.bf16 %v718_v46, %v717_v27 }
 0x1f0   :  { %v734_v44 = vmul.f32 %v2827_v42, %v3624_v56  ;;  %v2829_v38 = vpop.eup %2828 }
 0x1f1   :  { %2561 = vmatprep.mubr.bf16.mxu1 %v762_v40  ;;  %v771_v45 = vpack.c.bf16 %v736_v58, %v3712_v37  ;;  %v2831_v28 = vpop.eup %2830  ;;  %v660_v24 = vadd.f32 1.0, %v2829_v38 }
 0x1f2   :  { %2562 = vmatmul.mubr.bf16.gmra.mrb[24].mxu1 %v763_v0  ;;  %v770_v48 = vpack.c.bf16 %v734_v44, %v733_v23  ;;  %v2833_v30 = vpop.eup %2832  ;;  %v675_v29 = vadd.f32 1.0, %v2831_v28 }
 0x1f3   :  { %v2835_v41 = vpop.eup %2834  ;;  %2844 = vrcp.f32 %v660_v24  ;;  %v658_v15 = vadd.f32 1.0, %v2833_v30 }
 0x1f4   :  { %v2837_v34 = vpop.eup %2836  ;;  %2846 = vrcp.f32 %v675_v29  ;;  %v673_v43 = vadd.f32 1.0, %v2835_v41 }
 0x1f5   :  { %v2839_v56 = vpop.eup %2838  ;;  %2848 = vrcp.f32 %v658_v15  ;;  %v676_v39 = vadd.f32 1.0, %v2837_v34 }
 0x1f6   :  { %2850 = vrcp.f32 %v673_v43  ;;  %v674_v54 = vadd.f32 1.0, %v2839_v56 }
 0x1f7   :  { %2852 = vrcp.f32 %v676_v39  ;;  %v2841_v59 = vpop.eup %2840 }
 0x1f8   :  { %2854 = vrcp.f32 %v674_v54  ;;  %v2843_v49 = vpop.eup %2842  ;;  %v723_v6 = vmul.f32 %v2841_v59, %v3630_v3 }
 0x1f9   :  { %v721_v7 = vmul.f32 %v2843_v49, %v3633_v4  ;;  %v2720_v4 = vld [vmem:[#allocation17] sm:$0xff]  }
 0x1fa   :  { %2585 = vmatprep.subr.bf16.mxu0 %v2720_v4 }
 0x1fb   :  { %2586 = vmatpush3.bf16.msra.mxu0 %v2720_v4 }
 0x1fd   :  { %v2845_v62 = vpop.eup %2844 }
 0x1fe   :  { %v2847_v63 = vpop.eup %2846  ;;  %v724_v55 = vmul.f32 %v2845_v62, %v3679_v21 }
 0x1ff   :  { %v2849_v11 = vpop.eup %2848  ;;  %v739_v57 = vmul.f32 %v2847_v63, %v3638_v12  ;;  %v2721_v12 = vld [vmem:[#allocation17 + $0x8] sm:$0xff]  }
 0x200   :  { %v2851_v10 = vpop.eup %2850  ;;  %v722_v19 = vmul.f32 %v2849_v11, %v3683_v8  ;;  %v765_v26 = vpack.c.bf16 %v724_v55, %v723_v6  ;;  %2587 = vmatprep.subr.bf16.mxu0 %v2721_v12 }
 0x201   :  { %v2853_v51 = vpop.eup %2852  ;;  %v737_v25 = vmul.f32 %v2851_v10, %v3644_v35  ;;  %2588 = vmatpush3.bf16.msra.mxu0 %v2721_v12  ;;  %v2722_v35 = vld [vmem:[#allocation17 + $0x10] sm:$0xff]  }
 0x202   :  { %v2855_v16 = vpop.eup %2854  ;;  %v740_v53 = vmul.f32 %v2853_v51, %v3647_v36  ;;  %v764_v27 = vpack.c.bf16 %v722_v19, %v721_v7  ;;  %2589 = vmatprep.subr.bf16.mxu0 %v2722_v35  ;;  %v2723_v36 = vld [vmem:[#allocation17 + $0x18] sm:$0xff]  }
 0x203   :  { %v738_v3 = vmul.f32 %v2855_v16, %v3665_v52  ;;  %v3739_v52 = vld [vmem:[#allocation15] ss:$0 sm:$0xff] }
 0x204   :  { %2565 = vmatprep.mubr.bf16.mxu1 %v764_v27  ;;  %v773_v21 = vpack.c.bf16 %v740_v53, %v739_v57 }
 0x205   :  { %2566 = vmatmul.mubr.bf16.gmra.mrb[28].mxu1 %v765_v26  ;;  %v772_v33 = vpack.c.bf16 %v738_v3, %v737_v25  ;;  %2590 = vmatpush3.bf16.msra.mxu0 %v2722_v35 }
 0x206   :  { %2569 = vmatprep.mubr.bf16.mxu1 %v766_v31  ;;  %2591 = vmatprep.subr.bf16.mxu0 %v2723_v36 }
 0x209   :  { %2592 = vmatpush3.bf16.msra.mxu0 %v2723_v36 }
 0x20a   :  { %2593 = vmatprep.subr.bf16.mxu0 %v2724_v47 }
 0x20d   :  { %2570 = vmatmul.mubr.bf16.gmra.mrb[32].mxu1 %v767_v5  ;;  %2594 = vmatpush3.bf16.msra.mxu0 %v2724_v47 }
 0x20e   :  { %2573 = vmatprep.mubr.bf16.mxu1 %v768_v20  ;;  %2595 = vmatprep.subr.bf16.mxu0 %v2725_v50 }
 0x211   :  { %2596 = vmatpush3.bf16.msra.mxu0 %v2725_v50 }
 0x212   :  { %2597 = vmatprep.subr.bf16.mxu0 %v2726_v17 }
 0x215   :  { %2574 = vmatmul.mubr.bf16.gmra.mrb[36].mxu1 %v769_v18  ;;  %2598 = vmatpush3.bf16.msra.mxu0 %v2726_v17 }
 0x216   :  { %2577 = vmatprep.mubr.bf16.mxu1 %v770_v48  ;;  %2599 = vmatprep.subr.bf16.mxu0 %v2727_v32 }
 0x219   :  { %2600 = vmatpush3.bf16.msra.mxu0 %v2727_v32 }
 0x21d   :  { %2578 = vmatmul.mubr.bf16.gmra.mrb[40].mxu1 %v771_v45 }
 0x21e   :  { %2581 = vmatprep.mubr.bf16.mxu1 %v772_v33 }
 0x225   :  { %2582 = vmatmul.mubr.bf16.gmra.mrb[44].mxu1 %v773_v21 }
 0x2a8   :  { %v2555_v31 = vpop.f32.mrb[16].mxu1 }
 0x2a9   :  { %v3742_v5 = vadd.f32 %v2555_v31, %v3739_v52  ;;  %v862_v8 = vpop.f32.mrb[17].mxu1 }
 0x2aa   :  { %v3745_v60 = vadd.f32 %v3739_v52, %v862_v8  ;;  %v2556_v2 = vpop.f32.mrb[18].mxu1 }
 0x2ab   :  { %v991_v14 = vsub.f32 0.0, %v3742_v5  ;;  %v3749_v13 = vadd.f32 %v2556_v2, %v3739_v52  ;;  %v865_v18 = vpop.f32.mrb[19].mxu1 }
 0x2ac   :  { %v989_v20 = vsub.f32 0.0, %v3745_v60  ;;  %v3753_v37 = vadd.f32 %v3739_v52, %v865_v18 }
 0x2ad   :  { %v1025_v46 = vmul.f32 1.442695, %v991_v14  ;;  %v992_v0 = vsub.f32 0.0, %v3749_v13 }
 0x2ae   :  { %v1021_v9 = vmul.f32 1.442695, %v989_v20  ;;  %v990_v23 = vsub.f32 0.0, %v3753_v37 }
 0x2af   :  { %2856 = vpow2.f32 %v1025_v46  ;;  %v1027_v42 = vmul.f32 1.442695, %v992_v0 }
 0x2b0   :  { %2858 = vpow2.f32 %v1021_v9  ;;  %v1023_v58 = vmul.f32 1.442695, %v990_v23  ;;  %v2559_v22 = vpop.f32.mrb[20].mxu1 }
 0x2b1   :  { %2860 = vpow2.f32 %v1027_v42  ;;  %v3758_v40 = vadd.f32 %v2559_v22, %v3739_v52  ;;  %v878_v44 = vpop.f32.mrb[21].mxu1 }
 0x2b2   :  { %2862 = vpow2.f32 %v1023_v58  ;;  %v3761_v61 = vadd.f32 %v3739_v52, %v878_v44  ;;  %v2560_v45 = vpop.f32.mrb[22].mxu1 }
 0x2b3   :  { %v995_v38 = vsub.f32 0.0, %v3758_v40  ;;  %v3765_v48 = vadd.f32 %v2560_v45, %v3739_v52  ;;  %v881_v28 = vpop.f32.mrb[23].mxu1 }
 0x2b4   :  { %v993_v24 = vsub.f32 0.0, %v3761_v61  ;;  %v3769_v30 = vadd.f32 %v3739_v52, %v881_v28 }
 0x2b5   :  { %v1033_v29 = vmul.f32 1.442695, %v995_v38  ;;  %v996_v41 = vsub.f32 0.0, %v3765_v48 }
 0x2b6   :  { %v1029_v15 = vmul.f32 1.442695, %v993_v24  ;;  %v994_v34 = vsub.f32 0.0, %v3769_v30 }
 0x2b7   :  { %2864 = vpow2.f32 %v1033_v29  ;;  %v1035_v43 = vmul.f32 1.442695, %v996_v41 }
 0x2b8   :  { %2866 = vpow2.f32 %v1029_v15  ;;  %v1031_v56 = vmul.f32 1.442695, %v994_v34 }
 0x2b9   :  { %v2857_v39 = vpop.eup %2856  ;;  %2868 = vpow2.f32 %v1035_v43 }
 0x2ba   :  { %v2859_v54 = vpop.eup %2858  ;;  %v1087_v59 = vadd.f32 1.0, %v2857_v39  ;;  %2870 = vpow2.f32 %v1031_v56 }
 0x2bb   :  { %v2861_v49 = vpop.eup %2860  ;;  %v1085_v62 = vadd.f32 1.0, %v2859_v54 }
 0x2bc   :  { %v2863_v63 = vpop.eup %2862  ;;  %2872 = vrcp.f32 %v1087_v59  ;;  %v1088_v6 = vadd.f32 1.0, %v2861_v49 }
 0x2bd   :  { %2874 = vrcp.f32 %v1085_v62  ;;  %v1086_v55 = vadd.f32 1.0, %v2863_v63 }
 0x2be   :  { %2876 = vrcp.f32 %v1088_v6 }
 0x2bf   :  { %2878 = vrcp.f32 %v1086_v55 }
 0x2c1   :  { %v2865_v10 = vpop.eup %2864 }
 0x2c2   :  { %v2867_v19 = vpop.eup %2866  ;;  %v1091_v26 = vadd.f32 1.0, %v2865_v10 }
 0x2c3   :  { %v2869_v16 = vpop.eup %2868  ;;  %v1089_v53 = vadd.f32 1.0, %v2867_v19 }
 0x2c4   :  { %v2871_v33 = vpop.eup %2870  ;;  %2880 = vrcp.f32 %v1091_v26  ;;  %v1092_v4 = vadd.f32 1.0, %v2869_v16 }
 0x2c5   :  { %v2563_v11 = vpop.f32.mrb[24].mxu1  ;;  %2882 = vrcp.f32 %v1089_v53  ;;  %v1090_v36 = vadd.f32 1.0, %v2871_v33 }
 0x2c6   :  { %v3774_v7 = vadd.f32 %v2563_v11, %v3739_v52  ;;  %v894_v57 = vpop.f32.mrb[25].mxu1  ;;  %v2873_v17 = vpop.eup %2872  ;;  %2884 = vrcp.f32 %v1092_v4 }
 0x2c7   :  { %v3777_v51 = vadd.f32 %v3739_v52, %v894_v57  ;;  %v2564_v25 = vpop.f32.mrb[26].mxu1  ;;  %v2875_v8 = vpop.eup %2874  ;;  %2886 = vrcp.f32 %v1090_v36  ;;  %v1151_v46 = vmul.f32 %v2873_v17, %v3742_v5 }
 0x2c8   :  { %v999_v27 = vsub.f32 0.0, %v3774_v7  ;;  %v3781_v3 = vadd.f32 %v2564_v25, %v3739_v52  ;;  %v897_v21 = vpop.f32.mrb[27].mxu1  ;;  %v2877_v14 = vpop.eup %2876  ;;  %v1149_v9 = vmul.f32 %v2875_v8, %v3745_v60 }
 0x2c9   :  { %v997_v12 = vsub.f32 0.0, %v3777_v51  ;;  %v3785_v35 = vadd.f32 %v3739_v52, %v897_v21  ;;  %v2879_v20 = vpop.eup %2878  ;;  %v1152_v0 = vmul.f32 %v2877_v14, %v3749_v13 }
 0x2ca   :  { %v1041_v47 = vmul.f32 1.442695, %v999_v27  ;;  %v1000_v50 = vsub.f32 0.0, %v3781_v3  ;;  %v1150_v23 = vmul.f32 %v2879_v20, %v3753_v37 }
 0x2cb   :  { %v1037_v32 = vmul.f32 1.442695, %v997_v12  ;;  %v998_v31 = vsub.f32 0.0, %v3785_v35  ;;  %v1199_v42 = vpack.c.bf16 %v1152_v0, %v1151_v46 }
 0x2cc   :  { %v1043_v2 = vmul.f32 1.442695, %v1000_v50  ;;  %2888 = vpow2.f32 %v1041_v47  ;;  %v1198_v58 = vpack.c.bf16 %v1150_v23, %v1149_v9 }
 0x2cd   :  { %v1039_v18 = vmul.f32 1.442695, %v998_v31  ;;  %2890 = vpow2.f32 %v1037_v32 }
 0x2ce   :  { %2892 = vpow2.f32 %v1043_v2  ;;  %v2881_v22 = vpop.eup %2880  ;;  %2601 = vmatprep.mubr.bf16.mxu0 %v1198_v58 }
 0x2cf   :  { %2894 = vpow2.f32 %v1039_v18  ;;  %v2883_v44 = vpop.eup %2882  ;;  %2602 = vmatmul.mubr.bf16.vlgmr.msra.gmra.mrb[16].mxu0 %v1199_v42  ;;  %v1155_v28 = vmul.f32 %v2881_v22, %v3758_v40 }
 0x2d0   :  { %v2885_v45 = vpop.eup %2884  ;;  %v1153_v24 = vmul.f32 %v2883_v44, %v3761_v61 }
 0x2d1   :  { %v2887_v38 = vpop.eup %2886  ;;  %v1156_v5 = vmul.f32 %v2885_v45, %v3765_v48 }
 0x2d2   :  { %v1154_v60 = vmul.f32 %v2887_v38, %v3769_v30 }
 0x2d3   :  { %v1201_v41 = vpack.c.bf16 %v1156_v5, %v1155_v28 }
 0x2d4   :  { %v1200_v43 = vpack.c.bf16 %v1154_v60, %v1153_v24 }
 0x2d6   :  { %v2889_v13 = vpop.eup %2888  ;;  %2605 = vmatprep.mubr.bf16.mxu0 %v1200_v43 }
 0x2d7   :  { %v2891_v37 = vpop.eup %2890  ;;  %v1095_v29 = vadd.f32 1.0, %v2889_v13  ;;  %2606 = vmatmul.mubr.bf16.gmra.mrb[20].mxu0 %v1201_v41 }
 0x2d8   :  { %v2893_v15 = vpop.eup %2892  ;;  %v1093_v34 = vadd.f32 1.0, %v2891_v37  ;;  %v2567_v54 = vpop.f32.mrb[28].mxu1 }
 0x2d9   :  { %v2895_v56 = vpop.eup %2894  ;;  %2896 = vrcp.f32 %v1095_v29  ;;  %v1096_v39 = vadd.f32 1.0, %v2893_v15  ;;  %v3798_v40 = vadd.f32 %v2567_v54, %v3739_v52  ;;  %v910_v48 = vpop.f32.mrb[29].mxu1 }
 0x2da   :  { %2898 = vrcp.f32 %v1093_v34  ;;  %v1094_v59 = vadd.f32 1.0, %v2895_v56  ;;  %v3801_v61 = vadd.f32 %v3739_v52, %v910_v48  ;;  %v2568_v30 = vpop.f32.mrb[30].mxu1 }
 0x2db   :  { %2900 = vrcp.f32 %v1096_v39  ;;  %v1003_v49 = vsub.f32 0.0, %v3798_v40  ;;  %v3805_v62 = vadd.f32 %v2568_v30, %v3739_v52  ;;  %v913_v63 = vpop.f32.mrb[31].mxu1 }
 0x2dc   :  { %2902 = vrcp.f32 %v1094_v59  ;;  %v1001_v6 = vsub.f32 0.0, %v3801_v61  ;;  %v3809_v55 = vadd.f32 %v3739_v52, %v913_v63 }
 0x2dd   :  { %v1049_v11 = vmul.f32 1.442695, %v1003_v49  ;;  %v1004_v10 = vsub.f32 0.0, %v3805_v62 }
 0x2de   :  { %v1045_v57 = vmul.f32 1.442695, %v1001_v6  ;;  %v1002_v19 = vsub.f32 0.0, %v3809_v55 }
 0x2df   :  { %2904 = vpow2.f32 %v1049_v11  ;;  %v1051_v26 = vmul.f32 1.442695, %v1004_v10 }
 0x2e0   :  { %2906 = vpow2.f32 %v1045_v57  ;;  %v1047_v25 = vmul.f32 1.442695, %v1002_v19  ;;  %v2571_v16 = vpop.f32.mrb[32].mxu1 }
 0x2e1   :  { %2908 = vpow2.f32 %v1051_v26  ;;  %v3814_v53 = vadd.f32 %v2571_v16, %v3739_v52  ;;  %v926_v27 = vpop.f32.mrb[33].mxu1 }
 0x2e2   :  { %2910 = vpow2.f32 %v1047_v25  ;;  %v3817_v33 = vadd.f32 %v3739_v52, %v926_v27  ;;  %v2572_v4 = vpop.f32.mrb[34].mxu1 }
 0x2e3   :  { %v2897_v21 = vpop.eup %2896  ;;  %v1007_v36 = vsub.f32 0.0, %v3814_v53  ;;  %v3821_v47 = vadd.f32 %v2572_v4, %v3739_v52  ;;  %v929_v50 = vpop.f32.mrb[35].mxu1 }
 0x2e4   :  { %v2899_v12 = vpop.eup %2898  ;;  %v1005_v32 = vsub.f32 0.0, %v3817_v33  ;;  %v3825_v31 = vadd.f32 %v3739_v52, %v929_v50  ;;  %v1159_v2 = vmul.f32 %v2897_v21, %v3774_v7 }
 0x2e5   :  { %v2901_v17 = vpop.eup %2900  ;;  %v1057_v18 = vmul.f32 1.442695, %v1007_v36  ;;  %v1008_v20 = vsub.f32 0.0, %v3821_v47  ;;  %v1157_v46 = vmul.f32 %v2899_v12, %v3777_v51 }
 0x2e6   :  { %v2903_v8 = vpop.eup %2902  ;;  %v1160_v14 = vmul.f32 %v2901_v17, %v3781_v3  ;;  %v1053_v9 = vmul.f32 1.442695, %v1005_v32  ;;  %v1006_v23 = vsub.f32 0.0, %v3825_v31 }
 0x2e7   :  { %v1158_v0 = vmul.f32 %v2903_v8, %v3785_v35  ;;  %2912 = vpow2.f32 %v1057_v18  ;;  %v1059_v42 = vmul.f32 1.442695, %v1008_v20 }
 0x2e8   :  { %v1203_v58 = vpack.c.bf16 %v1160_v14, %v1159_v2  ;;  %2914 = vpow2.f32 %v1053_v9  ;;  %v1055_v22 = vmul.f32 1.442695, %v1006_v23  ;;  %v2575_v44 = vpop.f32.mrb[36].mxu1 }
 0x2e9   :  { %v1202_v45 = vpack.c.bf16 %v1158_v0, %v1157_v46  ;;  %v2905_v7 = vpop.eup %2904  ;;  %2916 = vpow2.f32 %v1059_v42  ;;  %v3834_v3 = vadd.f32 %v2575_v44, %v3739_v52  ;;  %v942_v38 = vpop.f32.mrb[37].mxu1 }
 0x2ea   :  { %v2907_v28 = vpop.eup %2906  ;;  %v1099_v51 = vadd.f32 1.0, %v2905_v7  ;;  %2918 = vpow2.f32 %v1055_v22  ;;  %v3837_v35 = vadd.f32 %v3739_v52, %v942_v38  ;;  %v2576_v5 = vpop.f32.mrb[38].mxu1 }
 0x2eb   :  { %2609 = vmatprep.mubr.bf16.mxu0 %v1202_v45  ;;  %v2909_v13 = vpop.eup %2908  ;;  %v1097_v24 = vadd.f32 1.0, %v2907_v28  ;;  %v1011_v60 = vsub.f32 0.0, %v3834_v3  ;;  %v3841_v37 = vadd.f32 %v2576_v5, %v3739_v52  ;;  %v945_v29 = vpop.f32.mrb[39].mxu1 }
 0x2ec   :  { %2610 = vmatmul.mubr.bf16.gmra.mrb[24].mxu0 %v1203_v58  ;;  %v2911_v41 = vpop.eup %2910  ;;  %2920 = vrcp.f32 %v1099_v51  ;;  %v1100_v15 = vadd.f32 1.0, %v2909_v13  ;;  %v1009_v34 = vsub.f32 0.0, %v3837_v35  ;;  %v3845_v43 = vadd.f32 %v3739_v52, %v945_v29 }
 0x2ed   :  { %2922 = vrcp.f32 %v1097_v24  ;;  %v1098_v56 = vadd.f32 1.0, %v2911_v41  ;;  %v1065_v39 = vmul.f32 1.442695, %v1011_v60  ;;  %v1012_v54 = vsub.f32 0.0, %v3841_v37 }
 0x2ee   :  { %2924 = vrcp.f32 %v1100_v15  ;;  %v1061_v59 = vmul.f32 1.442695, %v1009_v34  ;;  %v1010_v48 = vsub.f32 0.0, %v3845_v43 }
 0x2ef   :  { %2926 = vrcp.f32 %v1098_v56  ;;  %v1067_v30 = vmul.f32 1.442695, %v1012_v54 }
 0x2f0   :  { %2928 = vpow2.f32 %v1065_v39  ;;  %v1063_v49 = vmul.f32 1.442695, %v1010_v48  ;;  %v2579_v63 = vpop.f32.mrb[40].mxu1 }
 0x2f1   :  { %v2913_v6 = vpop.eup %2912  ;;  %2930 = vpow2.f32 %v1061_v59  ;;  %v3850_v11 = vadd.f32 %v2579_v63, %v3739_v52  ;;  %v958_v10 = vpop.f32.mrb[41].mxu1 }
 0x2f2   :  { %v2915_v57 = vpop.eup %2914  ;;  %v1103_v19 = vadd.f32 1.0, %v2913_v6  ;;  %2932 = vpow2.f32 %v1067_v30  ;;  %v3853_v26 = vadd.f32 %v3739_v52, %v958_v10  ;;  %v2580_v25 = vpop.f32.mrb[42].mxu1 }
 0x2f3   :  { %v2917_v16 = vpop.eup %2916  ;;  %v1101_v27 = vadd.f32 1.0, %v2915_v57  ;;  %2934 = vpow2.f32 %v1063_v49  ;;  %v1015_v21 = vsub.f32 0.0, %v3850_v11  ;;  %v3857_v4 = vadd.f32 %v2580_v25, %v3739_v52  ;;  %v961_v12 = vpop.f32.mrb[43].mxu1 }
 0x2f4   :  { %v2919_v36 = vpop.eup %2918  ;;  %2936 = vrcp.f32 %v1103_v19  ;;  %v1104_v50 = vadd.f32 1.0, %v2917_v16  ;;  %v1013_v17 = vsub.f32 0.0, %v3853_v26  ;;  %v3861_v32 = vadd.f32 %v3739_v52, %v961_v12 }
 0x2f5   :  { %2938 = vrcp.f32 %v1101_v27  ;;  %v1102_v8 = vadd.f32 1.0, %v2919_v36  ;;  %v1073_v2 = vmul.f32 1.442695, %v1015_v21  ;;  %v1016_v14 = vsub.f32 0.0, %v3857_v4 }
 0x2f6   :  { %v2921_v18 = vpop.eup %2920  ;;  %2940 = vrcp.f32 %v1104_v50  ;;  %v1069_v20 = vmul.f32 1.442695, %v1013_v17  ;;  %v1014_v46 = vsub.f32 0.0, %v3861_v32 }
 0x2f7   :  { %v2923_v0 = vpop.eup %2922  ;;  %2942 = vrcp.f32 %v1102_v8  ;;  %v1075_v9 = vmul.f32 1.442695, %v1016_v14  ;;  %v1163_v44 = vmul.f32 %v2921_v18, %v3798_v40 }
 0x2f8   :  { %v2925_v23 = vpop.eup %2924  ;;  %2944 = vpow2.f32 %v1073_v2  ;;  %v1071_v42 = vmul.f32 1.442695, %v1014_v46  ;;  %v2583_v58 = vpop.f32.mrb[44].mxu1  ;;  %v1161_v45 = vmul.f32 %v2923_v0, %v3801_v61 }
 0x2f9   :  { %v2927_v22 = vpop.eup %2926  ;;  %2946 = vpow2.f32 %v1069_v20  ;;  %v3868_v7 = vadd.f32 %v2583_v58, %v3739_v52  ;;  %v974_v38 = vpop.f32.mrb[45].mxu1  ;;  %v1164_v51 = vmul.f32 %v2925_v23, %v3805_v62 }
 0x2fa   :  { %v2929_v28 = vpop.eup %2928  ;;  %v1162_v5 = vmul.f32 %v2927_v22, %v3809_v55  ;;  %2948 = vpow2.f32 %v1075_v9  ;;  %v3873_v13 = vadd.f32 %v3739_v52, %v974_v38  ;;  %v2584_v24 = vpop.f32.mrb[46].mxu1 }
 0x2fb   :  { %v2931_v60 = vpop.eup %2930  ;;  %v1107_v29 = vadd.f32 1.0, %v2929_v28  ;;  %2950 = vpow2.f32 %v1071_v42  ;;  %v1019_v40 = vsub.f32 0.0, %v3868_v7  ;;  %v3877_v61 = vadd.f32 %v2584_v24, %v3739_v52  ;;  %v977_v41 = vpop.f32.mrb[47].mxu1 }
 0x2fc   :  { %v2933_v15 = vpop.eup %2932  ;;  %v1105_v34 = vadd.f32 1.0, %v2931_v60  ;;  %v1017_v62 = vsub.f32 0.0, %v3873_v13  ;;  %v3881_v55 = vadd.f32 %v3739_v52, %v977_v41  ;;  %v1204_v56 = vpack.c.bf16 %v1162_v5, %v1161_v45 }
 0x2fd   :  { %v2935_v39 = vpop.eup %2934  ;;  %2952 = vrcp.f32 %v1107_v29  ;;  %v1108_v54 = vadd.f32 1.0, %v2933_v15  ;;  %v1081_v59 = vmul.f32 1.442695, %v1019_v40  ;;  %v1020_v48 = vsub.f32 0.0, %v3877_v61 }
 0x2fe   :  { %v2937_v30 = vpop.eup %2936  ;;  %2954 = vrcp.f32 %v1105_v34  ;;  %v1106_v49 = vadd.f32 1.0, %v2935_v39  ;;  %v1077_v63 = vmul.f32 1.442695, %v1017_v62  ;;  %v1018_v6 = vsub.f32 0.0, %v3881_v55  ;;  %2613 = vmatprep.mubr.bf16.mxu0 %v1204_v56 }
 0x2ff   :  { %v2939_v10 = vpop.eup %2938  ;;  %2956 = vrcp.f32 %v1108_v54  ;;  %v1083_v57 = vmul.f32 1.442695, %v1020_v48  ;;  %v1205_v19 = vpack.c.bf16 %v1164_v51, %v1163_v44  ;;  %v1167_v27 = vmul.f32 %v2937_v30, %v3814_v53 }
 0x300   :  { %v2941_v52 = vpop.eup %2940  ;;  %2958 = vrcp.f32 %v1106_v49  ;;  %v1079_v25 = vmul.f32 1.442695, %v1018_v6  ;;  %v1165_v36 = vmul.f32 %v2939_v10, %v3817_v33 }
 0x301   :  { %v2943_v16 = vpop.eup %2942  ;;  %v1168_v21 = vmul.f32 %v2941_v52, %v3821_v47  ;;  %2960 = vpow2.f32 %v1081_v59  ;;  %2614 = vmatmul.mubr.bf16.gmra.mrb[28].mxu0 %v1205_v19 }
 0x302   :  { %v2945_v12 = vpop.eup %2944  ;;  %v1166_v50 = vmul.f32 %v2943_v16, %v3825_v31  ;;  %2962 = vpow2.f32 %v1077_v63 }
 0x303   :  { %v2947_v17 = vpop.eup %2946  ;;  %v1111_v8 = vadd.f32 1.0, %v2945_v12  ;;  %2964 = vpow2.f32 %v1083_v57  ;;  %v1207_v2 = vpack.c.bf16 %v1168_v21, %v1167_v27 }
 0x304   :  { %v2949_v14 = vpop.eup %2948  ;;  %v1109_v18 = vadd.f32 1.0, %v2947_v17  ;;  %2966 = vpow2.f32 %v1079_v25  ;;  %v1206_v20 = vpack.c.bf16 %v1166_v50, %v1165_v36 }
 0x305   :  { %v2951_v46 = vpop.eup %2950  ;;  %2968 = vrcp.f32 %v1111_v8  ;;  %v1112_v53 = vadd.f32 1.0, %v2949_v14 }
 0x306   :  { %2970 = vrcp.f32 %v1109_v18  ;;  %v1110_v47 = vadd.f32 1.0, %v2951_v46  ;;  %2617 = vmatprep.mubr.bf16.mxu0 %v1206_v20 }
 0x307   :  { %v2953_v0 = vpop.eup %2952  ;;  %2972 = vrcp.f32 %v1112_v53 }
 0x308   :  { %v2955_v33 = vpop.eup %2954  ;;  %2974 = vrcp.f32 %v1110_v47  ;;  %v1171_v23 = vmul.f32 %v2953_v0, %v3834_v3 }
 0x309   :  { %v2957_v31 = vpop.eup %2956  ;;  %2618 = vmatmul.mubr.bf16.gmra.mrb[32].mxu0 %v1207_v2  ;;  %v1169_v22 = vmul.f32 %v2955_v33, %v3837_v35 }
 0x30a   :  { %v2959_v9 = vpop.eup %2958  ;;  %v1172_v42 = vmul.f32 %v2957_v31, %v3841_v37 }
 0x30b   :  { %v2961_v58 = vpop.eup %2960  ;;  %v1170_v44 = vmul.f32 %v2959_v9, %v3845_v43 }
 0x30c   :  { %v2963_v45 = vpop.eup %2962  ;;  %v1115_v38 = vadd.f32 1.0, %v2961_v58  ;;  %v1209_v28 = vpack.c.bf16 %v1172_v42, %v1171_v23 }
 0x30d   :  { %v2965_v51 = vpop.eup %2964  ;;  %v1113_v5 = vadd.f32 1.0, %v2963_v45  ;;  %v1208_v24 = vpack.c.bf16 %v1170_v44, %v1169_v22 }
 0x30e   :  { %v2967_v60 = vpop.eup %2966  ;;  %2976 = vrcp.f32 %v1115_v38  ;;  %v1116_v29 = vadd.f32 1.0, %v2965_v51 }
 0x30f   :  { %v2969_v40 = vpop.eup %2968  ;;  %2978 = vrcp.f32 %v1113_v5  ;;  %v1114_v41 = vadd.f32 1.0, %v2967_v60  ;;  %2621 = vmatprep.mubr.bf16.mxu0 %v1208_v24 }
 0x310   :  { %v2971_v3 = vpop.eup %2970  ;;  %2980 = vrcp.f32 %v1116_v29  ;;  %v1175_v43 = vmul.f32 %v2969_v40, %v3850_v11 }
 0x311   :  { %v2973_v37 = vpop.eup %2972  ;;  %2982 = vrcp.f32 %v1114_v41  ;;  %2622 = vmatmul.mubr.bf16.gmra.mrb[36].mxu0 %v1209_v28  ;;  %v1173_v34 = vmul.f32 %v2971_v3, %v3853_v26 }
 0x312   :  { %v2975_v35 = vpop.eup %2974  ;;  %v1176_v15 = vmul.f32 %v2973_v37, %v3857_v4 }
 0x313   :  { %v1174_v62 = vmul.f32 %v2975_v35, %v3861_v32  ;;  %v3901_v32 = vld [vmem:[#allocation18] ss:$0 sm:$0xff] }
 0x314   :  { %v1211_v56 = vpack.c.bf16 %v1176_v15, %v1175_v43 }
 0x315   :  { %v1210_v39 = vpack.c.bf16 %v1174_v62, %v1173_v34 }
 0x317   :  { %2625 = vmatprep.mubr.bf16.mxu0 %v1210_v39 }
 0x318   :  { %v2977_v54 = vpop.eup %2976 }
 0x319   :  { %v2979_v59 = vpop.eup %2978  ;;  %2626 = vmatmul.mubr.bf16.gmra.mrb[40].mxu0 %v1211_v56  ;;  %v1179_v49 = vmul.f32 %v2977_v54, %v3868_v7 }
 0x31a   :  { %v2981_v48 = vpop.eup %2980  ;;  %v1177_v11 = vmul.f32 %v2979_v59, %v3873_v13 }
 0x31b   :  { %v2983_v30 = vpop.eup %2982  ;;  %v1180_v63 = vmul.f32 %v2981_v48, %v3877_v61 }
 0x31c   :  { %v1178_v4 = vmul.f32 %v2983_v30, %v3881_v55 }
 0x31d   :  { %v1213_v6 = vpack.c.bf16 %v1180_v63, %v1179_v49 }
 0x31e   :  { %v1212_v26 = vpack.c.bf16 %v1178_v4, %v1177_v11 }
 0x320   :  { %2629 = vmatprep.mubr.bf16.mxu0 %v1212_v26 }
 0x321   :  { %2630 = vmatmul.mubr.bf16.gmra.mrb[44].mxu0 %v1213_v6 }
 0x3a2   :  { %v2603_v10 = vpop.f32.mrb[16].mxu0 }
 0x3a3   :  { %v3904_v57 = vadd.f32 %v2603_v10, %v3901_v32  ;;  %v1302_v19 = vpop.f32.mrb[17].mxu0 }
 0x3a4   :  { %v3907_v52 = vadd.f32 %v3901_v32, %v1302_v19  ;;  %v2604_v7 = vpop.f32.mrb[18].mxu0 }
 0x3a5   :  { %1435 = vadd.xlane.f32.xlu1 %v3904_v57  ;;  %v1305_v13 = vpop.f32.mrb[19].mxu0  ;;  %v3912_v61 = vadd.f32 %v2604_v7, %v3901_v32 }
 0x3a6   :  { %1431 = vadd.xlane.f32.xlu0 %v3907_v52  ;;  %v3915_v55 = vadd.f32 %v3901_v32, %v1305_v13 }
 0x3a9   :  { %1437 = vadd.xlane.f32.xlu1 %v3912_v61 }
 0x3aa   :  { %v2607_v25 = vpop.f32.mrb[20].mxu0  ;;  %1433 = vadd.xlane.f32.xlu0 %v3915_v55 }
 0x3ab   :  { %v3920_v16 = vadd.f32 %v2607_v25, %v3901_v32  ;;  %v1318_v27 = vpop.f32.mrb[21].mxu0 }
 0x3ac   :  { %v2608_v21 = vpop.f32.mrb[22].mxu0  ;;  %v3928_v50 = vadd.f32 %v3901_v32, %v1318_v27 }
 0x3ad   :  { %v3923_v12 = vadd.f32 %v2608_v21, %v3901_v32  ;;  %v1321_v36 = vpop.f32.mrb[23].mxu0 }
 0x3ae   :  { %1443 = vadd.xlane.f32.xlu0 %v3920_v16  ;;  %v3931_v17 = vadd.f32 %v3901_v32, %v1321_v36 }
 0x3af   :  { %1445 = vadd.xlane.f32.xlu1 %v3923_v12 }
 0x3b2   :  { %1439 = vadd.xlane.f32.xlu0 %v3928_v50 }
 0x3b3   :  { %1441 = vadd.xlane.f32.xlu1 %v3931_v17 }
 0x3bf   :  { %v2611_v8 = vpop.f32.mrb[24].mxu0 }
 0x3c0   :  { %v3936_v2 = vadd.f32 %v2611_v8, %v3901_v32  ;;  %v1334_v14 = vpop.f32.mrb[25].mxu0 }
 0x3c1   :  { %v2612_v18 = vpop.f32.mrb[26].mxu0  ;;  %v3943_v53 = vadd.f32 %v3901_v32, %v1334_v14 }
 0x3c2   :  { %v3939_v20 = vadd.f32 %v2612_v18, %v3901_v32  ;;  %v1337_v46 = vpop.f32.mrb[27].mxu0  ;;  %1451 = vadd.xlane.f32.xlu0 %v3936_v2 }
 0x3c3   :  { %v3947_v47 = vadd.f32 %v3901_v32, %v1337_v46 }
 0x3c4   :  { %1453 = vadd.xlane.f32.xlu1 %v3939_v20 }
 0x3c6   :  { %1447 = vadd.xlane.f32.xlu0 %v3943_v53 }
 0x3c8   :  { %1449 = vadd.xlane.f32.xlu1 %v3947_v47 }
 0x3d4   :  { %v2615_v0 = vpop.f32.mrb[28].mxu0 }
 0x3d5   :  { %v3952_v33 = vadd.f32 %v2615_v0, %v3901_v32  ;;  %v1350_v31 = vpop.f32.mrb[29].mxu0 }
 0x3d6   :  { %v2616_v9 = vpop.f32.mrb[30].mxu0  ;;  %v3959_v58 = vadd.f32 %v3901_v32, %v1350_v31 }
 0x3d7   :  { %v3955_v23 = vadd.f32 %v2616_v9, %v3901_v32  ;;  %v1353_v42 = vpop.f32.mrb[31].mxu0  ;;  %1459 = vadd.xlane.f32.xlu0 %v3952_v33 }
 0x3d8   :  { %v3963_v22 = vadd.f32 %v3901_v32, %v1353_v42 }
 0x3d9   :  { %1461 = vadd.xlane.f32.xlu1 %v3955_v23 }
 0x3db   :  { %1455 = vadd.xlane.f32.xlu0 %v3959_v58 }
 0x3dc   :  { %v2619_v44 = vpop.f32.mrb[32].mxu0 }
 0x3dd   :  { %v3967_v45 = vadd.f32 %v2619_v44, %v3901_v32  ;;  %v1366_v38 = vpop.f32.mrb[33].mxu0  ;;  %1457 = vadd.xlane.f32.xlu1 %v3963_v22 }
 0x3de   :  { %v2620_v28 = vpop.f32.mrb[34].mxu0  ;;  %v3975_v24 = vadd.f32 %v3901_v32, %v1366_v38 }
 0x3df   :  { %v3971_v51 = vadd.f32 %v2620_v28, %v3901_v32  ;;  %v1369_v5 = vpop.f32.mrb[35].mxu0  ;;  %1467 = vadd.xlane.f32.xlu0 %v3967_v45 }
 0x3e0   :  { %v3979_v60 = vadd.f32 %v3901_v32, %v1369_v5 }
 0x3e1   :  { %1469 = vadd.xlane.f32.xlu1 %v3971_v51 }
 0x3e3   :  { %1463 = vadd.xlane.f32.xlu0 %v3975_v24 }
 0x3e4   :  { %v2623_v29 = vpop.f32.mrb[36].mxu0 }
 0x3e5   :  { %v3983_v40 = vadd.f32 %v2623_v29, %v3901_v32  ;;  %v1382_v41 = vpop.f32.mrb[37].mxu0  ;;  %1465 = vadd.xlane.f32.xlu1 %v3979_v60 }
 0x3e6   :  { %v2624_v3 = vpop.f32.mrb[38].mxu0  ;;  %v3991_v43 = vadd.f32 %v3901_v32, %v1382_v41 }
 0x3e7   :  { %v3987_v37 = vadd.f32 %v2624_v3, %v3901_v32  ;;  %v1385_v35 = vpop.f32.mrb[39].mxu0  ;;  %1475 = vadd.xlane.f32.xlu0 %v3983_v40 }
 0x3e8   :  { %v3995_v15 = vadd.f32 %v3901_v32, %v1385_v35 }
 0x3e9   :  { %1477 = vadd.xlane.f32.xlu1 %v3987_v37 }
 0x3eb   :  { %1471 = vadd.xlane.f32.xlu0 %v3991_v43 }
 0x3ec   :  { %v2627_v34 = vpop.f32.mrb[40].mxu0 }
 0x3ed   :  { %v3999_v62 = vadd.f32 %v2627_v34, %v3901_v32  ;;  %v1398_v56 = vpop.f32.mrb[41].mxu0  ;;  %1473 = vadd.xlane.f32.xlu1 %v3995_v15 }
 0x3ee   :  { %v2628_v39 = vpop.f32.mrb[42].mxu0  ;;  %v4007_v48 = vadd.f32 %v3901_v32, %v1398_v56 }
 0x3ef   :  { %v4003_v54 = vadd.f32 %v2628_v39, %v3901_v32  ;;  %v1401_v59 = vpop.f32.mrb[43].mxu0  ;;  %1483 = vadd.xlane.f32.xlu0 %v3999_v62 }
 0x3f0   :  { %v4011_v30 = vadd.f32 %v3901_v32, %v1401_v59 }
 0x3f1   :  { %1485 = vadd.xlane.f32.xlu1 %v4003_v54 }
 0x3f3   :  { %1479 = vadd.xlane.f32.xlu0 %v4007_v48 }
 0x3f4   :  { %v2631_v49 = vpop.f32.mrb[44].mxu0 }
 0x3f5   :  { %v1414_v63 = vpop.f32.mrb[45].mxu0  ;;  %1481 = vadd.xlane.f32.xlu1 %v4011_v30  ;;  %v4023_v10 = vadd.f32 %v2631_v49, %v3901_v32 }
 0x3f6   :  { %v4016_v11 = vadd.f32 %v3901_v32, %v1414_v63  ;;  %v2632_v4 = vpop.f32.mrb[46].mxu0 }
 0x3f7   :  { %v1417_v6 = vpop.f32.mrb[47].mxu0  ;;  %v4027_v19 = vadd.f32 %v2632_v4, %v3901_v32 }
 0x3f8   :  { %v4019_v26 = vadd.f32 %v3901_v32, %v1417_v6  ;;  %1487 = vadd.xlane.f32.xlu0 %v4016_v11 }
 0x3fa   :  { %1489 = vadd.xlane.f32.xlu1 %v4019_v26 }
 0x3fc   :  { %1491 = vadd.xlane.f32.xlu0 %v4023_v10 }
 0x3fe   :  { %1493 = vadd.xlane.f32.xlu1 %v4027_v19 }
 0x432   :  { %v1436_v7 = vpop.xlane.xlu1 %1435 }
 0x433   :  { %v4031_v13 = vmul.f32 0.03125, %v1436_v7  ;;  %v1432_v25 = vpop.xlane.xlu0 %1431 }
 0x434   :  { %v4033_v27 = vmul.f32 0.03125, %v1432_v25 }
 0x435   :  { %v4037_v21 = vsub.f32 %v3904_v57, %v4031_v13 }
 0x436   :  { %v1438_v36 = vpop.xlane.xlu1 %1437  ;;  %v4041_v8 = vsub.f32 %v3907_v52, %v4033_v27 }
 0x437   :  { %v4043_v32 = vmul.f32 0.03125, %v1438_v36  ;;  %v1434_v14 = vpop.xlane.xlu0 %1433  ;;  %v1561_v18 = vmul.f32 %v4037_v21, %v4037_v21 }
 0x438   :  { %v4047_v46 = vmul.f32 0.03125, %v1434_v14  ;;  %v1559_v9 = vmul.f32 %v4041_v8, %v4041_v8 }
 0x439   :  { %v4051_v0 = vsub.f32 %v3912_v61, %v4043_v32  ;;  %1595 = vadd.xlane.f32.xlu0 %v1561_v18 }
 0x43a   :  { %v4055_v57 = vsub.f32 %v3915_v55, %v4047_v46 }
 0x43b   :  { %v1444_v31 = vpop.xlane.xlu0 %1443  ;;  %v1562_v52 = vmul.f32 %v4051_v0, %v4051_v0 }
 0x43c   :  { %v4061_v42 = vmul.f32 0.03125, %v1444_v31  ;;  %v1446_v44 = vpop.xlane.xlu1 %1445  ;;  %v1560_v5 = vmul.f32 %v4055_v57, %v4055_v57 }
 0x43d   :  { %v4063_v38 = vmul.f32 0.03125, %v1446_v44  ;;  %1597 = vadd.xlane.f32.xlu1 %v1562_v52  ;;  %1591 = vadd.xlane.f32.xlu0 %v1559_v9 }
 0x43e   :  { %v4067_v61 = vsub.f32 %v3920_v16, %v4061_v42 }
 0x43f   :  { %v4071_v55 = vsub.f32 %v3923_v12, %v4063_v38  ;;  %v1440_v28 = vpop.xlane.xlu0 %1439 }
 0x440   :  { %v4075_v29 = vmul.f32 0.03125, %v1440_v28  ;;  %v1442_v41 = vpop.xlane.xlu1 %1441  ;;  %v1565_v3 = vmul.f32 %v4067_v61, %v4067_v61 }
 0x441   :  { %v4079_v35 = vmul.f32 0.03125, %v1442_v41  ;;  %1593 = vadd.xlane.f32.xlu1 %v1560_v5  ;;  %v1566_v34 = vmul.f32 %v4071_v55, %v4071_v55 }
 0x442   :  { %v4083_v16 = vsub.f32 %v3928_v50, %v4075_v29  ;;  %1603 = vadd.xlane.f32.xlu0 %v1565_v3 }
 0x443   :  { %v4087_v12 = vsub.f32 %v3931_v17, %v4079_v35 }
 0x444   :  { %v1563_v56 = vmul.f32 %v4083_v16, %v4083_v16 }
 0x445   :  { %1605 = vadd.xlane.f32.xlu1 %v1566_v34  ;;  %v1564_v39 = vmul.f32 %v4087_v12, %v4087_v12 }
 0x446   :  { %1599 = vadd.xlane.f32.xlu0 %v1563_v56 }
 0x449   :  { %1601 = vadd.xlane.f32.xlu1 %v1564_v39 }
 0x44f   :  { %v1452_v59 = vpop.xlane.xlu0 %1451 }
 0x450   :  { %v4095_v50 = vmul.f32 0.03125, %v1452_v59 }
 0x451   :  { %v1454_v49 = vpop.xlane.xlu1 %1453 }
 0x452   :  { %v4099_v17 = vsub.f32 %v3936_v2, %v4095_v50  ;;  %v4101_v63 = vmul.f32 0.03125, %v1454_v49 }
 0x453   :  { %v1448_v4 = vpop.xlane.xlu0 %1447 }
 0x454   :  { %v4105_v6 = vsub.f32 %v3939_v20, %v4101_v63  ;;  %v4107_v7 = vmul.f32 0.03125, %v1448_v4  ;;  %v1569_v25 = vmul.f32 %v4099_v17, %v4099_v17 }
 0x455   :  { %v1450_v36 = vpop.xlane.xlu1 %1449 }
 0x456   :  { %v4113_v14 = vsub.f32 %v3943_v53, %v4107_v7  ;;  %v4115_v18 = vmul.f32 0.03125, %v1450_v36  ;;  %1611 = vadd.xlane.f32.xlu0 %v1569_v25  ;;  %v1570_v2 = vmul.f32 %v4105_v6, %v4105_v6 }
 0x458   :  { %v4121_v20 = vsub.f32 %v3947_v47, %v4115_v18  ;;  %1613 = vadd.xlane.f32.xlu1 %v1570_v2  ;;  %v1567_v31 = vmul.f32 %v4113_v14, %v4113_v14 }
 0x45a   :  { %1607 = vadd.xlane.f32.xlu0 %v1567_v31  ;;  %v1568_v52 = vmul.f32 %v4121_v20, %v4121_v20 }
 0x45c   :  { %1609 = vadd.xlane.f32.xlu1 %v1568_v52 }
 0x464   :  { %v1460_v53 = vpop.xlane.xlu0 %1459 }
 0x465   :  { %v4127_v9 = vmul.f32 0.03125, %v1460_v53 }
 0x466   :  { %v1462_v44 = vpop.xlane.xlu1 %1461 }
 0x467   :  { %v4131_v28 = vsub.f32 %v3952_v33, %v4127_v9  ;;  %v4133_v5 = vmul.f32 0.03125, %v1462_v44 }
 0x468   :  { %v1456_v47 = vpop.xlane.xlu0 %1455 }
 0x469   :  { %v4137_v41 = vsub.f32 %v3955_v23, %v4133_v5  ;;  %v4139_v3 = vmul.f32 0.03125, %v1456_v47  ;;  %v1573_v34 = vmul.f32 %v4131_v28, %v4131_v28 }
 0x46a   :  { %v1458_v56 = vpop.xlane.xlu1 %1457 }
 0x46b   :  { %v4145_v39 = vsub.f32 %v3959_v58, %v4139_v3  ;;  %v4147_v59 = vmul.f32 0.03125, %v1458_v56  ;;  %1619 = vadd.xlane.f32.xlu0 %v1573_v34  ;;  %v1574_v33 = vmul.f32 %v4137_v41, %v4137_v41 }
 0x46c   :  { %v1468_v49 = vpop.xlane.xlu0 %1467 }
 0x46d   :  { %v4153_v23 = vsub.f32 %v3963_v22, %v4147_v59  ;;  %v4155_v4 = vmul.f32 0.03125, %v1468_v49  ;;  %1621 = vadd.xlane.f32.xlu1 %v1574_v33  ;;  %v1571_v25 = vmul.f32 %v4145_v39, %v4145_v39 }
 0x46e   :  { %v1470_v36 = vpop.xlane.xlu1 %1469 }
 0x46f   :  { %4687 = vst [vmem:[#allocation32_spill] sm:$0xff] %v4153_v23  ;;  %v4161_v58 = vsub.f32 %v3967_v45, %v4155_v4  ;;  %v4163_v2 = vmul.f32 0.03125, %v1470_v36  ;;  %1615 = vadd.xlane.f32.xlu0 %v1571_v25  ;;  %v1572_v31 = vmul.f32 %v4153_v23, %v4153_v23 }
 0x470   :  { %v1464_v52 = vpop.xlane.xlu0 %1463 }
 0x471   :  { %4688 = vst [vmem:[#allocation33_spill] sm:$0xff] %v4161_v58  ;;  %v4169_v22 = vsub.f32 %v3971_v51, %v4163_v2  ;;  %v4171_v53 = vmul.f32 0.03125, %v1464_v52  ;;  %1617 = vadd.xlane.f32.xlu1 %v1572_v31  ;;  %v1577_v44 = vmul.f32 %v4161_v58, %v4161_v58 }
 0x472   :  { %v1466_v47 = vpop.xlane.xlu1 %1465 }
 0x473   :  { %4689 = vst [vmem:[#allocation34_spill] sm:$0xff] %v4169_v22  ;;  %v4177_v45 = vsub.f32 %v3975_v24, %v4171_v53  ;;  %v4179_v34 = vmul.f32 0.03125, %v1466_v47  ;;  %1627 = vadd.xlane.f32.xlu0 %v1577_v44  ;;  %v1578_v56 = vmul.f32 %v4169_v22, %v4169_v22 }
 0x474   :  { %v1476_v33 = vpop.xlane.xlu0 %1475 }
 0x475   :  { %4690 = vst [vmem:[#allocation35_spill] sm:$0xff] %v4177_v45  ;;  %v4185_v51 = vsub.f32 %v3979_v60, %v4179_v34  ;;  %v4187_v49 = vmul.f32 0.03125, %v1476_v33  ;;  %1629 = vadd.xlane.f32.xlu1 %v1578_v56  ;;  %v1575_v25 = vmul.f32 %v4177_v45, %v4177_v45 }
 0x476   :  { %v1478_v36 = vpop.xlane.xlu1 %1477 }
 0x477   :  { %4691 = vst [vmem:[#allocation36_spill] sm:$0xff] %v4185_v51  ;;  %v4193_v24 = vsub.f32 %v3983_v40, %v4187_v49  ;;  %v4195_v31 = vmul.f32 0.03125, %v1478_v36  ;;  %1623 = vadd.xlane.f32.xlu0 %v1575_v25  ;;  %v1576_v52 = vmul.f32 %v4185_v51, %v4185_v51 }
 0x478   :  { %v1472_v44 = vpop.xlane.xlu0 %1471 }
 0x479   :  { %4692 = vst [vmem:[#allocation37_spill] sm:$0xff] %v4193_v24  ;;  %v4201_v60 = vsub.f32 %v3987_v37, %v4195_v31  ;;  %v4203_v47 = vmul.f32 0.03125, %v1472_v44  ;;  %1625 = vadd.xlane.f32.xlu1 %v1576_v52  ;;  %v1581_v56 = vmul.f32 %v4193_v24, %v4193_v24 }
 0x47a   :  { %v1474_v33 = vpop.xlane.xlu1 %1473 }
 0x47b   :  { %4693 = vst [vmem:[#allocation38_spill] sm:$0xff] %v4201_v60  ;;  %v4209_v40 = vsub.f32 %v3991_v43, %v4203_v47  ;;  %v4211_v25 = vmul.f32 0.03125, %v1474_v33  ;;  %1635 = vadd.xlane.f32.xlu0 %v1581_v56  ;;  %v1582_v36 = vmul.f32 %v4201_v60, %v4201_v60 }
 0x47c   :  { %v1484_v1 = vpop.xlane.xlu0 %1483 }
 0x47d   :  { %4694 = vst [vmem:[#allocation39_spill] sm:$0xff] %v4209_v40  ;;  %v4217_v37 = vsub.f32 %v3995_v15, %v4211_v25  ;;  %v4219_v52 = vmul.f32 0.03125, %v1484_v1  ;;  %1637 = vadd.xlane.f32.xlu1 %v1582_v36  ;;  %v1579_v44 = vmul.f32 %v4209_v40, %v4209_v40 }
 0x47e   :  { %v1486_v24 = vpop.xlane.xlu1 %1485 }
 0x47f   :  { %4695 = vst [vmem:[#allocation40_spill] sm:$0xff] %v4217_v37  ;;  %v4225_v43 = vsub.f32 %v3999_v62, %v4219_v52  ;;  %v4227_v56 = vmul.f32 0.03125, %v1486_v24  ;;  %1631 = vadd.xlane.f32.xlu0 %v1579_v44  ;;  %v1580_v33 = vmul.f32 %v4217_v37, %v4217_v37 }
 0x480   :  { %v1480_v60 = vpop.xlane.xlu0 %1479 }
 0x481   :  { %4696 = vst [vmem:[#allocation41_spill] sm:$0xff] %v4225_v43  ;;  %v4233_v1 = vsub.f32 %v4003_v54, %v4227_v56  ;;  %v4235_v15 = vmul.f32 0.03125, %v1480_v60  ;;  %1633 = vadd.xlane.f32.xlu1 %v1580_v33  ;;  %v1585_v36 = vmul.f32 %v4225_v43, %v4225_v43 }
 0x482   :  { %v1482_v40 = vpop.xlane.xlu1 %1481 }
 0x483   :  { %4697 = vst [vmem:[#allocation42_spill] sm:$0xff] %v4233_v1  ;;  %v4241_v62 = vsub.f32 %v4007_v48, %v4235_v15  ;;  %v4243_v24 = vmul.f32 0.03125, %v1482_v40  ;;  %1643 = vadd.xlane.f32.xlu0 %v1585_v36  ;;  %v1586_v44 = vmul.f32 %v4233_v1, %v4233_v1 }
 0x485   :  { %4698 = vst [vmem:[#allocation43_spill] sm:$0xff] %v4241_v62  ;;  %v4249_v54 = vsub.f32 %v4011_v30, %v4243_v24  ;;  %v1488_v60 = vpop.xlane.xlu0 %1487  ;;  %1645 = vadd.xlane.f32.xlu1 %v1586_v44  ;;  %v1583_v33 = vmul.f32 %v4241_v62, %v4241_v62 }
 0x486   :  { %v4253_v43 = vmul.f32 0.03125, %v1488_v60 }
 0x487   :  { %4699 = vst [vmem:[#allocation44_spill] sm:$0xff] %v4249_v54  ;;  %v1490_v37 = vpop.xlane.xlu1 %1489  ;;  %1639 = vadd.xlane.f32.xlu0 %v1583_v33  ;;  %v1584_v48 = vmul.f32 %v4249_v54, %v4249_v54 }
 0x488   :  { %v4259_v40 = vsub.f32 %v4016_v11, %v4253_v43  ;;  %v4261_v36 = vmul.f32 0.03125, %v1490_v37 }
 0x489   :  { %v1492_v30 = vpop.xlane.xlu0 %1491  ;;  %1641 = vadd.xlane.f32.xlu1 %v1584_v48 }
 0x48a   :  { %4700 = vst [vmem:[#allocation45_spill] sm:$0xff] %v4259_v40  ;;  %v4265_v44 = vsub.f32 %v4019_v26, %v4261_v36  ;;  %v4267_v62 = vmul.f32 0.03125, %v1492_v30  ;;  %v1587_v60 = vmul.f32 %v4259_v40, %v4259_v40 }
 0x48b   :  { %v1494_v33 = vpop.xlane.xlu1 %1493 }
 0x48c   :  { %4701 = vst [vmem:[#allocation46_spill] sm:$0xff] %v4265_v44  ;;  %v4273_v54 = vsub.f32 %v4023_v10, %v4267_v62  ;;  %v4275_v11 = vmul.f32 0.03125, %v1494_v33  ;;  %1647 = vadd.xlane.f32.xlu0 %v1587_v60  ;;  %v1588_v37 = vmul.f32 %v4265_v44, %v4265_v44  ;;  %v2004_v10 = vlaneseq }
 0x48e   :  { %4702 = vst [vmem:[#allocation47_spill] sm:$0xff] %v4273_v54  ;;  %v4281_v26 = vsub.f32 %v4027_v19, %v4275_v11  ;;  %1649 = vadd.xlane.f32.xlu1 %v1588_v37  ;;  %v1589_v48 = vmul.f32 %v4273_v54, %v4273_v54  ;;  %v4287_v33 = vshrl.u32 %v2004_v10, 7 }
 0x490   :  { %4703 = vst [vmem:[#allocation48_spill] sm:$0xff] %v4281_v26  ;;  %1651 = vadd.xlane.f32.xlu0 %v1589_v48  ;;  %v1590_v30 = vmul.f32 %v4281_v26, %v4281_v26  ;;  %4704 = vst [vmem:[#allocation49_spill] sm:$0xff] %v4287_v33  ;;  %v4293_v60 = vadd.s32 8, %v4287_v33  ;;  %v4296_v19 = vadd.s32 16, %v4287_v33  ;;  %v4299_v37 = vadd.s32 24, %v4287_v33 }
 0x491   :  { %v4302_v48 = vadd.s32 32, %v4287_v33  ;;  %v4308_v10 = vadd.s32 48, %v4287_v33  ;;  %v4311_v26 = vadd.s32 56, %v4287_v33 }
 0x492   :  { %1653 = vadd.xlane.f32.xlu1 %v1590_v30  ;;  %4705 = vst [vmem:[#allocation50_spill] sm:$0xff] %v4293_v60  ;;  %4706 = vst [vmem:[#allocation51_spill] sm:$0xff] %v4296_v19  ;;  %v4305_v30 = vadd.s32 40, %v4287_v33  ;;  %v1657_v60 = vmul.f32 %v4031_v13, %v4031_v13  ;;  %v1655_v19 = vmul.f32 %v4033_v27, %v4033_v27 }
 0x493   :  { %4707 = vst [vmem:[#allocation52_spill] sm:$0xff] %v4299_v37  ;;  %4708 = vst [vmem:[#allocation53_spill] sm:$0xff] %v4302_v48  ;;  %v1658_v37 = vmul.f32 %v4043_v32, %v4043_v32  ;;  %v1662_v32 = vmul.f32 %v4063_v38, %v4063_v38 }
 0x494   :  { %4709 = vst [vmem:[#allocation54_spill] sm:$0xff] %v4305_v30  ;;  %4710 = vst [vmem:[#allocation55_spill] sm:$0xff] %v4308_v10  ;;  %v1689_v54 = vmul.f32 96.0, %v1657_v60  ;;  %v1656_v30 = vmul.f32 %v4047_v46, %v4047_v46  ;;  %v1687_v1 = vmul.f32 96.0, %v1655_v19  ;;  %v1659_v46 = vmul.f32 %v4075_v29, %v4075_v29 }
 0x495   :  { %4711 = vst [vmem:[#allocation56_spill] sm:$0xff] %v4311_v26  ;;  %v1690_v10 = vmul.f32 96.0, %v1658_v37  ;;  %v1661_v26 = vmul.f32 %v4061_v42, %v4061_v42 }
 0x497   :  { %v1693_v19 = vmul.f32 96.0, %v1661_v26 }
 0x4c6   :  { %v1596_v48 = vpop.xlane.xlu0 %1595 }
 0x4c7   :  { %v1721_v44 = vsub.f32 %v1596_v48, %v1689_v54  ;;  %v1688_v48 = vmul.f32 96.0, %v1656_v30 }
 0x4c9   :  { %v1753_v40 = vmul.f32 0.03125, %v1721_v44 }
 0x4ca   :  { %v1598_v33 = vpop.xlane.xlu1 %1597  ;;  %v1592_v13 = vpop.xlane.xlu0 %1591 }
 0x4cb   :  { %v1785_v51 = vmax.f32 %v1753_v40, 0.0  ;;  %v1722_v45 = vsub.f32 %v1598_v33, %v1690_v10  ;;  %v1719_v27 = vsub.f32 %v1592_v13, %v1687_v1  ;;  %v1694_v33 = vmul.f32 96.0, %v1662_v32 }
 0x4cc   :  { %v1660_v1 = vmul.f32 %v4079_v35, %v4079_v35  ;;  %v1691_v13 = vmul.f32 96.0, %v1659_v46 }
 0x4cd   :  { %v1817_v60 = vadd.f32 1e-05, %v1785_v51  ;;  %v1754_v22 = vmul.f32 0.03125, %v1722_v45  ;;  %v1751_v54 = vmul.f32 0.03125, %v1719_v27 }
 0x4ce   :  { %v1594_v44 = vpop.xlane.xlu1 %1593 }
 0x4cf   :  { %2984 = vrsqrt.f32 %v1817_v60  ;;  %v1786_v37 = vmax.f32 %v1754_v22, 0.0  ;;  %v1783_v42 = vmax.f32 %v1751_v54, 0.0  ;;  %v1720_v58 = vsub.f32 %v1594_v44, %v1688_v48  ;;  %v1604_v23 = vpop.xlane.xlu0 %1603 }
 0x4d0   :  { %v1725_v40 = vsub.f32 %v1604_v23, %v1693_v19  ;;  %v1692_v23 = vmul.f32 96.0, %v1660_v1 }
 0x4d1   :  { %v1818_v38 = vadd.f32 1e-05, %v1786_v37  ;;  %v1815_v51 = vadd.f32 1e-05, %v1783_v42  ;;  %v1752_v45 = vmul.f32 0.03125, %v1720_v58 }
 0x4d2   :  { %v1757_v10 = vmul.f32 0.03125, %v1725_v40  ;;  %v1606_v30 = vpop.xlane.xlu1 %1605 }
 0x4d3   :  { %2986 = vrsqrt.f32 %v1818_v38  ;;  %v1784_v29 = vmax.f32 %v1752_v45, 0.0  ;;  %v1726_v27 = vsub.f32 %v1606_v30, %v1694_v33  ;;  %v1600_v26 = vpop.xlane.xlu0 %1599  ;;  %v1665_v33 = vmul.f32 %v4095_v50, %v4095_v50  ;;  %v4331_v38 = vld [vmem:[#allocation20] ss:$0 sm:$0xff] }
 0x4d4   :  { %2988 = vrsqrt.f32 %v1815_v51  ;;  %v1789_v22 = vmax.f32 %v1757_v10, 0.0  ;;  %v1723_v60 = vsub.f32 %v1600_v26, %v1691_v13  ;;  %v1666_v10 = vmul.f32 %v4101_v63, %v4101_v63  ;;  %v4337_v26 = vld [vmem:[#allocation21] ss:$0 sm:$0xff] }
 0x4d5   :  { %v1816_v54 = vadd.f32 1e-05, %v1784_v29  ;;  %v1758_v48 = vmul.f32 0.03125, %v1726_v27 }
 0x4d6   :  { %v1821_v32 = vadd.f32 1e-05, %v1789_v22  ;;  %v1755_v44 = vmul.f32 0.03125, %v1723_v60  ;;  %v1602_v19 = vpop.xlane.xlu1 %1601  ;;  %v1697_v22 = vmul.f32 96.0, %v1665_v33 }
 0x4d7   :  { %2990 = vrsqrt.f32 %v1816_v54  ;;  %v1790_v35 = vmax.f32 %v1758_v48, 0.0  ;;  %v1724_v37 = vsub.f32 %v1602_v19, %v1692_v23  ;;  %v1698_v23 = vmul.f32 96.0, %v1666_v10 }
 0x4d8   :  { %2992 = vrsqrt.f32 %v1821_v32  ;;  %v1787_v58 = vmax.f32 %v1755_v44, 0.0  ;;  %v1664_v44 = vmul.f32 %v4115_v18, %v4115_v18 }
 0x4d9   :  { %v2985_v42 = vpop.eup %2984  ;;  %v1822_v46 = vadd.f32 1e-05, %v1790_v35  ;;  %v1756_v40 = vmul.f32 0.03125, %v1724_v37 }
 0x4da   :  { %v1881_v51 = vmul.f32 %v2985_v42, %v4037_v21  ;;  %v1819_v45 = vadd.f32 1e-05, %v1787_v58  ;;  %v1663_v21 = vmul.f32 %v4107_v7, %v4107_v7 }
 0x4db   :  { %2994 = vrsqrt.f32 %v1822_v46  ;;  %v1788_v1 = vmax.f32 %v1756_v40, 0.0 }
 0x4dc   :  { %2996 = vrsqrt.f32 %v1819_v45  ;;  %v1919_v13 = vmul.f32 %v4331_v38, %v1881_v51  ;;  %v1695_v40 = vmul.f32 96.0, %v1663_v21 }
 0x4dd   :  { %v2987_v30 = vpop.eup %2986  ;;  %v1820_v29 = vadd.f32 1e-05, %v1788_v1 }
 0x4de   :  { %v2989_v27 = vpop.eup %2988  ;;  %v1882_v50 = vmul.f32 %v2987_v30, %v4051_v0  ;;  %v1957_v19 = vadd.f32 %v4337_v26, %v1919_v13 }
 0x4df   :  { %v1879_v60 = vmul.f32 %v2989_v27, %v4041_v8  ;;  %2998 = vrsqrt.f32 %v1820_v29  ;;  %v1696_v27 = vmul.f32 96.0, %v1664_v44 }
 0x4e0   :  { %v1920_v63 = vmul.f32 %v4331_v38, %v1882_v50 }
 0x4e1   :  { %v2991_v32 = vpop.eup %2990  ;;  %v1917_v0 = vmul.f32 %v4331_v38, %v1879_v60 }
 0x4e2   :  { %v2993_v37 = vpop.eup %2992  ;;  %v1958_v7 = vadd.f32 %v4337_v26, %v1920_v63  ;;  %v1880_v8 = vmul.f32 %v2991_v32, %v4055_v57 }
 0x4e3   :  { %v1612_v54 = vpop.xlane.xlu0 %1611  ;;  %v1885_v46 = vmul.f32 %v2993_v37, %v4067_v61  ;;  %v1955_v30 = vadd.f32 %v4337_v26, %v1917_v0 }
 0x4e4   :  { %v1729_v48 = vsub.f32 %v1612_v54, %v1697_v22  ;;  %v4351_v51 = vpack.c.bf16 %v1958_v7, %v1957_v19  ;;  %v1918_v18 = vmul.f32 %v4331_v38, %v1880_v8 }
 0x4e5   :  { %v1614_v35 = vpop.xlane.xlu1 %1613  ;;  %v2995_v10 = vpop.eup %2994  ;;  %v1923_v13 = vmul.f32 %v4331_v38, %v1885_v46 }
 0x4e6   :  { %v1761_v58 = vmul.f32 0.03125, %v1729_v48  ;;  %v1730_v42 = vsub.f32 %v1614_v35, %v1698_v23  ;;  %v2997_v50 = vpop.eup %2996  ;;  %v1956_v22 = vadd.f32 %v4337_v26, %v1918_v18  ;;  %v1886_v61 = vmul.f32 %v2995_v10, %v4071_v55 }
 0x4e7   :  { %v1608_v33 = vpop.xlane.xlu0 %1607  ;;  %v1883_v54 = vmul.f32 %v2997_v50, %v4083_v16  ;;  %v1961_v44 = vadd.f32 %v4337_v26, %v1923_v13  ;;  %v1670_v10 = vmul.f32 %v4133_v5, %v4133_v5  ;;  %v1668_v13 = vmul.f32 %v4147_v59, %v4147_v59 }
 0x4e8   :  { %v1793_v45 = vmax.f32 %v1761_v58, 0.0  ;;  %v1762_v1 = vmul.f32 0.03125, %v1730_v42  ;;  %v1727_v29 = vsub.f32 %v1608_v33, %v1695_v40  ;;  %v4359_v23 = vpack.c.bf16 %v1956_v22, %v1955_v30 }
 0x4e9   :  { %v1610_v57 = vpop.xlane.xlu1 %1609  ;;  %v1924_v32 = vmul.f32 %v4331_v38, %v1886_v61  ;;  %v2999_v0 = vpop.eup %2998  ;;  %v1921_v55 = vmul.f32 %v4331_v38, %v1883_v54  ;;  %v1667_v30 = vmul.f32 %v4139_v3, %v4139_v3  ;;  %v1671_v22 = vmul.f32 %v4171_v53, %v4171_v53 }
 0x4ea   :  { %v1825_v21 = vadd.f32 1e-05, %v1793_v45  ;;  %v1794_v60 = vmax.f32 %v1762_v1, 0.0  ;;  %v1759_v63 = vmul.f32 0.03125, %v1727_v29  ;;  %v1728_v48 = vsub.f32 %v1610_v57, %v1696_v27 }
 0x4eb   :  { %v1962_v7 = vadd.f32 %v4337_v26, %v1924_v32  ;;  %v1884_v8 = vmul.f32 %v2999_v0, %v4087_v12  ;;  %v1959_v33 = vadd.f32 %v4337_v26, %v1921_v55  ;;  %v1669_v45 = vmul.f32 %v4127_v9, %v4127_v9 }
 0x4ec   :  { %3000 = vrsqrt.f32 %v1825_v21  ;;  %v1826_v19 = vadd.f32 1e-05, %v1794_v60  ;;  %v1791_v35 = vmax.f32 %v1759_v63, 0.0  ;;  %v1760_v37 = vmul.f32 0.03125, %v1728_v48 }
 0x4ed   :  { %v4366_v42 = vpack.c.bf16 %v1962_v7, %v1961_v44  ;;  %v1922_v46 = vmul.f32 %v4331_v38, %v1884_v8  ;;  %v1673_v29 = vmul.f32 %v4155_v4, %v4155_v4  ;;  %v1674_v27 = vmul.f32 %v4163_v2, %v4163_v2 }
 0x4ee   :  { %3002 = vrsqrt.f32 %v1826_v19  ;;  %v1823_v16 = vadd.f32 1e-05, %v1791_v35  ;;  %v1792_v58 = vmax.f32 %v1760_v37, 0.0  ;;  %v1701_v50 = vmul.f32 96.0, %v1669_v45 }
 0x4ef   :  { %v1960_v18 = vadd.f32 %v4337_v26, %v1922_v46  ;;  %v1672_v5 = vmul.f32 %v4179_v34, %v4179_v34  ;;  %v1702_v4 = vmul.f32 96.0, %v1670_v10  ;;  %v1699_v60 = vmul.f32 96.0, %v1667_v30 }
 0x4f0   :  { %3004 = vrsqrt.f32 %v1823_v16  ;;  %v1824_v40 = vadd.f32 1e-05, %v1792_v58  ;;  %v1700_v54 = vmul.f32 96.0, %v1668_v13  ;;  %v1705_v53 = vmul.f32 96.0, %v1673_v29 }
 0x4f1   :  { %v4373_v1 = vpack.c.bf16 %v1960_v18, %v1959_v33  ;;  %v1706_v32 = vmul.f32 96.0, %v1674_v27  ;;  %v1678_v34 = vmul.f32 %v4195_v31, %v4195_v31  ;;  %v1703_v55 = vmul.f32 96.0, %v1671_v22 }
 0x4f2   :  { %3006 = vrsqrt.f32 %v1824_v40  ;;  %v1675_v31 = vmul.f32 %v4203_v47, %v4203_v47  ;;  %v1681_v22 = vmul.f32 %v4219_v52, %v4219_v52 }
 0x4f3   :  { %v4409_v30 = vmul.f32 96.0, %v1678_v34 }
 0x4f6   :  { %v3001_v12 = vpop.eup %3000 }
 0x4f7   :  { %v1889_v9 = vmul.f32 %v3001_v12, %v4099_v17  ;;  %v1677_v17 = vmul.f32 %v4187_v49, %v4187_v49  ;;  %v1704_v49 = vmul.f32 96.0, %v1672_v5 }
 0x4f8   :  { %v3003_v57 = vpop.eup %3002  ;;  %v1620_v61 = vpop.xlane.xlu0 %1619 }
 0x4f9   :  { %v1927_v3 = vmul.f32 %v4331_v38, %v1889_v9  ;;  %v1890_v59 = vmul.f32 %v3003_v57, %v4105_v6  ;;  %v1733_v21 = vsub.f32 %v1620_v61, %v1701_v50  ;;  %v4406_v18 = vmul.f32 96.0, %v1677_v17 }
 0x4fa   :  { %v3005_v2 = vpop.eup %3004  ;;  %v1622_v48 = vpop.xlane.xlu1 %1621  ;;  %v1707_v61 = vmul.f32 96.0, %v1675_v31 }
 0x4fb   :  { %v1928_v63 = vmul.f32 %v4331_v38, %v1890_v59  ;;  %v1887_v19 = vmul.f32 %v3005_v2, %v4113_v14  ;;  %v1765_v6 = vmul.f32 0.03125, %v1733_v21  ;;  %v1734_v0 = vsub.f32 %v1622_v48, %v1702_v4 }
 0x4fc   :  { %v3007_v44 = vpop.eup %3006  ;;  %v1965_v35 = vadd.f32 %v4337_v26, %v1927_v3  ;;  %v1616_v7 = vpop.xlane.xlu0 %1615 }
 0x4fd   :  { %v1966_v37 = vadd.f32 %v4337_v26, %v1928_v63  ;;  %v1925_v8 = vmul.f32 %v4331_v38, %v1887_v19  ;;  %v1888_v16 = vmul.f32 %v3007_v44, %v4121_v20  ;;  %v1797_v58 = vmax.f32 %v1765_v6, 0.0 }
 0x4fe   :  { %v1766_v46 = vmul.f32 0.03125, %v1734_v0  ;;  %v1731_v40 = vsub.f32 %v1616_v7, %v1699_v60  ;;  %v1618_v33 = vpop.xlane.xlu1 %1617  ;;  %v1676_v20 = vmul.f32 %v4211_v25, %v4211_v25  ;;  %v1682_v60 = vmul.f32 %v4227_v56, %v4227_v56 }
 0x4ff   :  { %v4404_v14 = vpack.c.bf16 %v1966_v37, %v1965_v35  ;;  %v1926_v45 = vmul.f32 %v4331_v38, %v1888_v16  ;;  %v1829_v12 = vadd.f32 1e-05, %v1797_v58  ;;  %v1963_v13 = vadd.f32 %v4337_v26, %v1925_v8 }
 0x500   :  { %v1798_v10 = vmax.f32 %v1766_v46, 0.0  ;;  %v1763_v29 = vmul.f32 0.03125, %v1731_v40  ;;  %v1732_v27 = vsub.f32 %v1618_v33, %v1700_v54  ;;  %v1628_v47 = vpop.xlane.xlu0 %1627  ;;  %v1679_v54 = vmul.f32 %v4235_v15, %v4235_v15 }
 0x501   :  { %v1964_v9 = vadd.f32 %v4337_v26, %v1926_v45  ;;  %3008 = vrsqrt.f32 %v1829_v12  ;;  %v1737_v50 = vsub.f32 %v1628_v47, %v1705_v53  ;;  %v1708_v34 = vmul.f32 96.0, %v1676_v20 }
 0x502   :  { %v1830_v57 = vadd.f32 1e-05, %v1798_v10  ;;  %v1795_v5 = vmax.f32 %v1763_v29, 0.0  ;;  %v1764_v3 = vmul.f32 0.03125, %v1732_v27  ;;  %v1630_v59 = vpop.xlane.xlu1 %1629  ;;  %v1680_v19 = vmul.f32 %v4243_v24, %v4243_v24 }
 0x503   :  { %v4417_v21 = vpack.c.bf16 %v1964_v9, %v1963_v13  ;;  %v1769_v25 = vmul.f32 0.03125, %v1737_v50  ;;  %v1738_v4 = vsub.f32 %v1630_v59, %v1706_v32  ;;  %v1683_v6 = vmul.f32 %v4253_v43, %v4253_v43 }
 0x504   :  { %3010 = vrsqrt.f32 %v1830_v57  ;;  %v1827_v2 = vadd.f32 1e-05, %v1795_v5  ;;  %v1796_v17 = vmax.f32 %v1764_v3, 0.0  ;;  %v1624_v63 = vpop.xlane.xlu0 %1623  ;;  %v1713_v7 = vmul.f32 96.0, %v1681_v22 }
 0x505   :  { %v1801_v48 = vmax.f32 %v1769_v25, 0.0  ;;  %v1770_v52 = vmul.f32 0.03125, %v1738_v4  ;;  %v1735_v53 = vsub.f32 %v1624_v63, %v1703_v55  ;;  %v4427_v8 = vmul.f32 96.0, %v1682_v60 }
 0x506   :  { %3012 = vrsqrt.f32 %v1827_v2  ;;  %v1828_v32 = vadd.f32 1e-05, %v1796_v17  ;;  %v1626_v0 = vpop.xlane.xlu1 %1625  ;;  %v4429_v55 = vmul.f32 96.0, %v1679_v54  ;;  %v1684_v43 = vmul.f32 %v4261_v36, %v4261_v36 }
 0x507   :  { %v1833_v56 = vadd.f32 1e-05, %v1801_v48  ;;  %v1802_v44 = vmax.f32 %v1770_v52, 0.0  ;;  %v1767_v35 = vmul.f32 0.03125, %v1735_v53  ;;  %v1736_v15 = vsub.f32 %v1626_v0, %v1704_v49  ;;  %v4712_v0 = vld [vmem:[#allocation32_spill] sm:$0xff] }
 0x508   :  { %3014 = vrsqrt.f32 %v1828_v32  ;;  %v1636_v37 = vpop.xlane.xlu0 %1635  ;;  %v4434_v40 = vmul.f32 96.0, %v1680_v19  ;;  %v4436_v49 = vmul.f32 96.0, %v1683_v6  ;;  %v1685_v20 = vmul.f32 %v4267_v62, %v4267_v62 }
 0x509   :  { %3016 = vrsqrt.f32 %v1833_v56  ;;  %v1834_v16 = vadd.f32 1e-05, %v1802_v44  ;;  %v1799_v24 = vmax.f32 %v1767_v35, 0.0  ;;  %v1768_v58 = vmul.f32 0.03125, %v1736_v15 }
 0x50a   :  { %v1741_v46 = vsub.f32 %v1636_v37, %v4406_v18  ;;  %v1638_v31 = vpop.xlane.xlu1 %1637  ;;  %v1686_v13 = vmul.f32 %v4275_v11, %v4275_v11  ;;  %v4446_v3 = vmul.f32 96.0, %v1684_v43  ;;  %v4449_v54 = vmul.f32 96.0, %v1685_v20 }
 0x50b   :  { %v3009_v33 = vpop.eup %3008  ;;  %3018 = vrsqrt.f32 %v1834_v16  ;;  %v1831_v45 = vadd.f32 1e-05, %v1799_v24  ;;  %v1800_v12 = vmax.f32 %v1768_v58, 0.0  ;;  %v1742_v10 = vsub.f32 %v1638_v31, %v4409_v30 }
 0x50c   :  { %v1893_v36 = vmul.f32 %v3009_v33, %v4131_v28  ;;  %v1773_v18 = vmul.f32 0.03125, %v1741_v46  ;;  %v1632_v29 = vpop.xlane.xlu0 %1631  ;;  %v4714_v33 = vld [vmem:[#allocation34_spill] sm:$0xff] }
 0x50d   :  { %3020 = vrsqrt.f32 %v1831_v45  ;;  %v1832_v47 = vadd.f32 1e-05, %v1800_v12  ;;  %v1774_v9 = vmul.f32 0.03125, %v1742_v10  ;;  %v1739_v57 = vsub.f32 %v1632_v29, %v1707_v61 }
 0x50e   :  { %v3011_v27 = vpop.eup %3010  ;;  %v1931_v50 = vmul.f32 %v4331_v38, %v1893_v36  ;;  %v1805_v30 = vmax.f32 %v1773_v18, 0.0  ;;  %v1634_v5 = vpop.xlane.xlu1 %1633  ;;  %v4451_v61 = vmul.f32 96.0, %v1686_v13 }
 0x50f   :  { %v1894_v22 = vmul.f32 %v3011_v27, %v4137_v41  ;;  %3022 = vrsqrt.f32 %v1832_v47  ;;  %v1806_v62 = vmax.f32 %v1774_v9, 0.0  ;;  %v1771_v11 = vmul.f32 0.03125, %v1739_v57 }
 0x510   :  { %v1740_v59 = vsub.f32 %v1634_v5, %v1708_v34  ;;  %v3013_v28 = vpop.eup %3012  ;;  %v1837_v4 = vadd.f32 1e-05, %v1805_v30  ;;  %v1644_v60 = vpop.xlane.xlu0 %1643  ;;  %v1969_v52 = vadd.f32 %v4337_v26, %v1931_v50 }
 0x511   :  { %v1932_v25 = vmul.f32 %v4331_v38, %v1894_v22  ;;  %v1891_v2 = vmul.f32 %v3013_v28, %v4145_v39  ;;  %v1838_v41 = vadd.f32 1e-05, %v1806_v62  ;;  %v1803_v17 = vmax.f32 %v1771_v11, 0.0  ;;  %v4713_v39 = vld [vmem:[#allocation33_spill] sm:$0xff]  ;;  %v4716_v28 = vld [vmem:[#allocation36_spill] sm:$0xff] }
 0x512   :  { %v1772_v63 = vmul.f32 0.03125, %v1740_v59  ;;  %v3015_v48 = vpop.eup %3014  ;;  %3024 = vrsqrt.f32 %v1837_v4  ;;  %v1745_v34 = vsub.f32 %v1644_v60, %v1713_v7  ;;  %v1646_v19 = vpop.xlane.xlu1 %1645 }
 0x513   :  { %v1970_v53 = vadd.f32 %v4337_v26, %v1932_v25  ;;  %v3017_v6 = vpop.eup %3016  ;;  %v1929_v32 = vmul.f32 %v4331_v38, %v1891_v2  ;;  %v1892_v56 = vmul.f32 %v3015_v48, %v4712_v0  ;;  %3026 = vrsqrt.f32 %v1838_v41 }
 0x514   :  { %v1835_v44 = vadd.f32 1e-05, %v1803_v17  ;;  %v1897_v15 = vmul.f32 %v3017_v6, %v4713_v39  ;;  %v1804_v37 = vmax.f32 %v1772_v63, 0.0  ;;  %v1777_v16 = vmul.f32 0.03125, %v1745_v34  ;;  %v1640_v24 = vpop.xlane.xlu0 %1639  ;;  %v4718_v39 = vld [vmem:[#allocation38_spill] sm:$0xff] }
 0x515   :  { %v4458_v35 = vpack.c.bf16 %v1970_v53, %v1969_v52  ;;  %v3019_v58 = vpop.eup %3018  ;;  %v1967_v43 = vadd.f32 %v4337_v26, %v1929_v32  ;;  %v1930_v7 = vmul.f32 %v4331_v38, %v1892_v56  ;;  %v1746_v46 = vsub.f32 %v1646_v19, %v4427_v8  ;;  %v4715_v8 = vld [vmem:[#allocation35_spill] sm:$0xff]  ;;  %v4717_v19 = vld [vmem:[#allocation37_spill] sm:$0xff] }
 0x516   :  { %3028 = vrsqrt.f32 %v1835_v44  ;;  %v1935_v31 = vmul.f32 %v4331_v38, %v1897_v15  ;;  %v1898_v45 = vmul.f32 %v3019_v58, %v4714_v33  ;;  %v1836_v12 = vadd.f32 1e-05, %v1804_v37  ;;  %v1642_v20 = vpop.xlane.xlu1 %1641  ;;  %v4719_v33 = vld [vmem:[#allocation39_spill] sm:$0xff] }
 0x517   :  { %v1809_v10 = vmax.f32 %v1777_v16, 0.0  ;;  %v3021_v13 = vpop.eup %3020  ;;  %v1968_v36 = vadd.f32 %v4337_v26, %v1930_v7  ;;  %v1778_v18 = vmul.f32 0.03125, %v1746_v46  ;;  %v1743_v29 = vsub.f32 %v1640_v24, %v4429_v55 }
 0x518   :  { %v1744_v27 = vsub.f32 %v1642_v20, %v4434_v40  ;;  %v1973_v47 = vadd.f32 %v4337_v26, %v1935_v31  ;;  %v1936_v9 = vmul.f32 %v4331_v38, %v1898_v45  ;;  %v1895_v57 = vmul.f32 %v3021_v13, %v4715_v8 }
 0x519   :  { %3030 = vrsqrt.f32 %v1836_v12  ;;  %v3023_v50 = vpop.eup %3022  ;;  %v4472_v22 = vpack.c.bf16 %v1968_v36, %v1967_v43  ;;  %v1841_v30 = vadd.f32 1e-05, %v1809_v10  ;;  %v1810_v5 = vmax.f32 %v1778_v18, 0.0  ;;  %v1648_v11 = vpop.xlane.xlu0 %1647 }
 0x51a   :  { %v1775_v62 = vmul.f32 0.03125, %v1743_v29  ;;  %v1974_v59 = vadd.f32 %v4337_v26, %v1936_v9  ;;  %v1933_v55 = vmul.f32 %v4331_v38, %v1895_v57  ;;  %v1896_v40 = vmul.f32 %v3023_v50, %v4716_v28  ;;  %v4720_v29 = vld [vmem:[#allocation40_spill] sm:$0xff] }
 0x51b   :  { %v1776_v25 = vmul.f32 0.03125, %v1744_v27  ;;  %3032 = vrsqrt.f32 %v1841_v30  ;;  %v1842_v4 = vadd.f32 1e-05, %v1810_v5  ;;  %v1747_v2 = vsub.f32 %v1648_v11, %v4436_v49  ;;  %v1650_v41 = vpop.xlane.xlu1 %1649  ;;  %v4721_v11 = vld [vmem:[#allocation41_spill] sm:$0xff] }
 0x51c   :  { %v1807_v60 = vmax.f32 %v1775_v62, 0.0  ;;  %v3025_v17 = vpop.eup %3024  ;;  %v4478_v63 = vpack.c.bf16 %v1974_v59, %v1973_v47  ;;  %v1971_v48 = vadd.f32 %v4337_v26, %v1933_v55  ;;  %v1934_v52 = vmul.f32 %v4331_v38, %v1896_v40 }
 0x51d   :  { %v1808_v53 = vmax.f32 %v1776_v25, 0.0  ;;  %v3027_v34 = vpop.eup %3026  ;;  %v1901_v6 = vmul.f32 %v3025_v17, %v4717_v19  ;;  %3034 = vrsqrt.f32 %v1842_v4  ;;  %v1779_v0 = vmul.f32 0.03125, %v1747_v2  ;;  %v1652_v56 = vpop.xlane.xlu0 %1651  ;;  %v4722_v4 = vld [vmem:[#allocation42_spill] sm:$0xff]  ;;  %v4724_v19 = vld [vmem:[#allocation44_spill] sm:$0xff] }
 0x51e   :  { %v1839_v32 = vadd.f32 1e-05, %v1807_v60  ;;  %v1972_v44 = vadd.f32 %v4337_v26, %v1934_v52  ;;  %v1902_v49 = vmul.f32 %v3027_v34, %v4718_v39  ;;  %v1748_v37 = vsub.f32 %v1650_v41, %v4446_v3 }
 0x51f   :  { %v1840_v15 = vadd.f32 1e-05, %v1808_v53  ;;  %v1939_v24 = vmul.f32 %v4331_v38, %v1901_v6  ;;  %v1811_v58 = vmax.f32 %v1779_v0, 0.0  ;;  %v1749_v43 = vsub.f32 %v1652_v56, %v4449_v54  ;;  %v1654_v7 = vpop.xlane.xlu1 %1653  ;;  %v4723_v53 = vld [vmem:[#allocation43_spill] sm:$0xff] }
 0x520   :  { %v3029_v16 = vpop.eup %3028  ;;  %3036 = vrsqrt.f32 %v1839_v32  ;;  %v4488_v46 = vpack.c.bf16 %v1972_v44, %v1971_v48  ;;  %v1940_v31 = vmul.f32 %v4331_v38, %v1902_v49  ;;  %v1780_v10 = vmul.f32 0.03125, %v1748_v37 }
 0x521   :  { %v1899_v45 = vmul.f32 %v3029_v16, %v4719_v33  ;;  %3038 = vrsqrt.f32 %v1840_v15  ;;  %v1843_v12 = vadd.f32 1e-05, %v1811_v58  ;;  %v1781_v20 = vmul.f32 0.03125, %v1749_v43  ;;  %v4725_v15 = vld [vmem:[#allocation45_spill] sm:$0xff]  ;;  %v4726_v33 = vld [vmem:[#allocation46_spill] sm:$0xff] }
 0x522   :  { %v1977_v3 = vadd.f32 %v4337_v26, %v1939_v24  ;;  %v1978_v36 = vadd.f32 %v4337_v26, %v1940_v31  ;;  %v1750_v54 = vsub.f32 %v1654_v7, %v4451_v61  ;;  %v1812_v47 = vmax.f32 %v1780_v10, 0.0 }
 0x523   :  { %v3031_v13 = vpop.eup %3030  ;;  %v1937_v18 = vmul.f32 %v4331_v38, %v1899_v45  ;;  %3040 = vrsqrt.f32 %v1843_v12  ;;  %v1813_v9 = vmax.f32 %v1781_v20, 0.0  ;;  %v4727_v12 = vld [vmem:[#allocation47_spill] sm:$0xff] }
 0x524   :  { %v1900_v27 = vmul.f32 %v3031_v13, %v4720_v29  ;;  %v4497_v8 = vpack.c.bf16 %v1978_v36, %v1977_v3  ;;  %v1782_v57 = vmul.f32 0.03125, %v1750_v54  ;;  %v1844_v5 = vadd.f32 1e-05, %v1812_v47  ;;  %v4728_v36 = vld [vmem:[#allocation48_spill] sm:$0xff] }
 0x525   :  { %v3033_v50 = vpop.eup %3032  ;;  %v1845_v62 = vadd.f32 1e-05, %v1813_v9  ;;  %v1975_v40 = vadd.f32 %v4337_v26, %v1937_v18 }
 0x526   :  { %v1938_v30 = vmul.f32 %v4331_v38, %v1900_v27  ;;  %v1905_v59 = vmul.f32 %v3033_v50, %v4721_v11  ;;  %v1814_v55 = vmax.f32 %v1782_v57, 0.0  ;;  %3042 = vrsqrt.f32 %v1844_v5 }
 0x527   :  { %v3035_v28 = vpop.eup %3034  ;;  %3044 = vrsqrt.f32 %v1845_v62 }
 0x528   :  { %v1976_v61 = vadd.f32 %v4337_v26, %v1938_v30  ;;  %v1943_v25 = vmul.f32 %v4331_v38, %v1905_v59  ;;  %v1906_v60 = vmul.f32 %v3035_v28, %v4722_v4  ;;  %v1846_v2 = vadd.f32 1e-05, %v1814_v55 }
 0x52a   :  { %v3037_v41 = vpop.eup %3036  ;;  %v4505_v17 = vpack.c.bf16 %v1976_v61, %v1975_v40  ;;  %v1944_v52 = vmul.f32 %v4331_v38, %v1906_v60  ;;  %3046 = vrsqrt.f32 %v1846_v2  ;;  %v1981_v32 = vadd.f32 %v4337_v26, %v1943_v25 }
 0x52b   :  { %v3039_v48 = vpop.eup %3038  ;;  %v1903_v34 = vmul.f32 %v3037_v41, %v4723_v53 }
 0x52c   :  { %v1904_v6 = vmul.f32 %v3039_v48, %v4724_v19  ;;  %v1982_v0 = vadd.f32 %v4337_v26, %v1944_v52 }
 0x52d   :  { %v1941_v56 = vmul.f32 %v4331_v38, %v1903_v34  ;;  %v3041_v44 = vpop.eup %3040 }
 0x52e   :  { %v1942_v39 = vmul.f32 %v4331_v38, %v1904_v6  ;;  %v4514_v49 = vpack.c.bf16 %v1982_v0, %v1981_v32  ;;  %v1907_v37 = vmul.f32 %v3041_v44, %v4725_v15 }
 0x52f   :  { %v1979_v16 = vadd.f32 %v4337_v26, %v1941_v56 }
 0x530   :  { %v1980_v24 = vadd.f32 %v4337_v26, %v1942_v39  ;;  %v3043_v58 = vpop.eup %3042  ;;  %v1945_v31 = vmul.f32 %v4331_v38, %v1907_v37 }
 0x531   :  { %v3045_v7 = vpop.eup %3044  ;;  %v1908_v45 = vmul.f32 %v3043_v58, %v4726_v33 }
 0x532   :  { %v4519_v43 = vpack.c.bf16 %v1980_v24, %v1979_v16  ;;  %v1909_v10 = vmul.f32 %v3045_v7, %v4727_v12  ;;  %v1983_v54 = vadd.f32 %v4337_v26, %v1945_v31 }
 0x533   :  { %v1946_v13 = vmul.f32 %v4331_v38, %v1908_v45 }
 0x534   :  { %v3047_v20 = vpop.eup %3046  ;;  %v1947_v3 = vmul.f32 %v4331_v38, %v1909_v10 }
 0x535   :  { %v1910_v18 = vmul.f32 %v3047_v20, %v4728_v36  ;;  %v1984_v29 = vadd.f32 %v4337_v26, %v1946_v13  ;;  %2257 = sbr.rel (%p2256_p10) target bundleno = 1600 (0x640), region = 112 }
 0x536   :  { %v1985_v9 = vadd.f32 %v4337_v26, %v1947_v3 }
 0x537   :  { %v1948_v27 = vmul.f32 %v4331_v38, %v1910_v18  ;;  %v4530_v47 = vpack.c.bf16 %v1984_v29, %v1983_v54 }
 0x539   :  { %v1986_v57 = vadd.f32 %v4337_v26, %v1948_v27 }
 0x53b   :  { %v4534_v50 = vpack.c.bf16 %v1986_v57, %v1985_v9 }
 0x53c LB: > { %2449 = vmatprep.subr.bf16.mxu0 %v4488_v46  ;;  %2649 = vmatprep.subr.bf16.mxu1 %v4488_v46  ;;  %s2305_s4 = sshll.u32 %s3310_s0, 6  ;;  %v4729_v38 = vld [vmem:[#allocation49_spill] sm:$0xff]  ;;  %v4730_v5 = vld [vmem:[#allocation31_spill] sm:$0xff]  ;;  %v4731_v59 = vld [vmem:[#allocation50_spill] sm:$0xff]  ;;  %v3325_v40 = vmov 1.0|1.0   ;;  %s3310_s0 = sphi %s4647_s0, %s2020_s0  }
 0x53d   : > { %2450 = vmatpush3.bf16.msra.mxu0 %v4359_v23  ;;  %2657 = vmatpush3.bf16.msra.mxu1 %v4359_v23  ;;  %v2032_v26 = vsub.s32 1, %v4729_v38  ;;  %v2024_v30 = vstv %s2305_s4  ;;  %v4732_v55 = vld [vmem:[#allocation53_spill] sm:$0xff]  ;;  %v4733_v28 = vld [vmem:[#allocation54_spill] sm:$0xff]  ;;  %v2028_v61 = vsub.s32 0, %v4729_v38  ;;  %v4734_v4 = vld [vmem:[#allocation51_spill] sm:$0xff]  ;;  %s4607_s22 = scalar_lea.vmem [#allocation2], %s2305_s4 }
 0x53e   : > { %2451 = vmatprep.subr.bf16.mxu0 %v4478_v63  ;;  %2650 = vmatprep.subr.bf16.mxu1 %v4478_v63  ;;  %v2025_v62 = vsub.s32 %v4730_v5, %v2024_v30  ;;  %v4735_v60 = vld [vmem:[#allocation52_spill] sm:$0xff]  ;;  %v4736_v2 = vld [vmem:[#allocation55_spill] sm:$0xff]  ;;  %v2156_v34 = vld [vmem:[%s4607_s22] sm:$0xff]  ;;  %s2020_s0 = sadd.s32 1, %s3310_s0  }
 0x53f   : > { %v4737_v41 = vld [vmem:[#allocation56_spill] sm:$0xff]  ;;  %v2160_v6 = vld [vmem:[%s4607_s22 + $0x20] sm:$0xff]  ;;  %v2157_v15 = vld [vmem:[%s4607_s22 + $0x8] sm:$0xff]  ;;  %p2019_p11 = scmp.ge.s32.totalorder %s2020_s0, %s2016_s24 }
 0x540   : > { %v2033_v11 = vrot.slane %v2025_v62, %v2032_v26  ;;  %v2029_v25 = vrot.slane %v2025_v62, %v2028_v61  ;;  %v2161_v16 = vld [vmem:[%s4607_s22 + $0x28] sm:$0xff]  ;;  %v2158_v13 = vld [vmem:[%s4607_s22 + $0x10] sm:$0xff]  ;;  %v2159_v57 = vld [vmem:[%s4607_s22 + $0x18] sm:$0xff] }
 0x541   : > { %2452 = vmatpush3.bf16.msra.mxu0 %v4351_v51  ;;  %2658 = vmatpush3.bf16.msra.mxu1 %v4351_v51  ;;  %v2162_v36 = vld [vmem:[%s4607_s22 + $0x30] sm:$0xff]  ;;  %v2163_v30 = vld [vmem:[%s4607_s22 + $0x38] sm:$0xff] }
 0x542   : > { %2453 = vmatprep.subr.bf16.mxu0 %v4505_v17  ;;  %2651 = vmatprep.subr.bf16.mxu1 %v4505_v17  ;;  %vm2035_vm0 = vcmp.eq.s32.totalorder %v4729_v38, %v2033_v11  ;;  %vm2037_vm1 = vcmp.eq.s32.totalorder %v4731_v59, %v2033_v11  ;;  %vm2043_vm2 = vcmp.eq.s32.totalorder %v4732_v55, %v2033_v11 }
 0x543   : > { %vm2045_vm3 = vcmp.eq.s32.totalorder %v4733_v28, %v2033_v11  ;;  %vm2322_vm4 = vmpackc.low %vm2037_vm1, %vm2035_vm0  ;;  %vm2034_vm6 = vcmp.eq.s32.totalorder %v4729_v38, %v2029_v25  ;;  %vm2036_vm7 = vcmp.eq.s32.totalorder %v4731_v59, %v2029_v25  ;;  %vm2042_vm8 = vcmp.eq.s32.totalorder %v4732_v55, %v2029_v25 }
 0x544   : > { %vm2330_vm5 = vmpackc.low %vm2045_vm3, %vm2043_vm2  ;;  %2323 = vmatprep.mubr.msk.bf16.mxu0 %vm2322_vm4, %v3325_v40  ;;  %vm2044_vm9 = vcmp.eq.s32.totalorder %v4733_v28, %v2029_v25  ;;  %vm2039_vm10 = vcmp.eq.s32.totalorder %v4734_v4, %v2033_v11  ;;  %vm2041_vm11 = vcmp.eq.s32.totalorder %v4735_v60, %v2033_v11  ;;  %vm2047_vm13 = vcmp.eq.s32.totalorder %v4736_v2, %v2033_v11 }
 0x545   : > { %2454 = vmatpush3.bf16.msra.mxu0 %v4373_v1  ;;  %2659 = vmatpush3.bf16.msra.mxu1 %v4373_v1  ;;  %vm2324_vm12 = vmpackc.low %vm2036_vm7, %vm2034_vm6  ;;  %vm2049_vm14 = vcmp.eq.s32.totalorder %v4737_v41, %v2033_v11  ;;  %vm2038_vm2 = vcmp.eq.s32.totalorder %v4734_v4, %v2029_v25  ;;  %vm2040_vm3 = vcmp.eq.s32.totalorder %v4735_v60, %v2029_v25 }
 0x546   : > { %2455 = vmatprep.subr.bf16.mxu0 %v4497_v8  ;;  %2652 = vmatprep.subr.bf16.mxu1 %v4497_v8  ;;  %vm2332_vm15 = vmpackc.low %vm2044_vm9, %vm2042_vm8  ;;  %vm2046_vm4 = vcmp.eq.s32.totalorder %v4736_v2, %v2029_v25 }
 0x547   : > { %2331 = vmatprep.mubr.msk.bf16.mxu1 %vm2330_vm5, %v3325_v40  ;;  %vm2326_vm0 = vmpackc.low %vm2041_vm11, %vm2039_vm10  ;;  %vm2048_vm5 = vcmp.eq.s32.totalorder %v4737_v41, %v2029_v25 }
 0x548   : > { %vm2334_vm1 = vmpackc.low %vm2049_vm14, %vm2047_vm13 }
 0x549   : > { %2456 = vmatpush3.bf16.msra.mxu0 %v4366_v42  ;;  %2660 = vmatpush3.bf16.msra.mxu1 %v4366_v42  ;;  %vm2328_vm6 = vmpackc.low %vm2040_vm3, %vm2038_vm2 }
 0x54a   : > { %2457 = vmatprep.subr.bf16.mxu0 %v4519_v43  ;;  %2653 = vmatprep.subr.bf16.mxu1 %v4519_v43  ;;  %vm2336_vm7 = vmpackc.low %vm2048_vm5, %vm2046_vm4 }
 0x54d   : > { %2458 = vmatpush3.bf16.msra.mxu0 %v4417_v21  ;;  %2661 = vmatpush3.bf16.msra.mxu1 %v4417_v21 }
 0x54e   : > { %2459 = vmatprep.subr.bf16.mxu0 %v4514_v49  ;;  %2654 = vmatprep.subr.bf16.mxu1 %v4514_v49 }
 0x551   : > { %2460 = vmatpush3.bf16.msra.mxu0 %v4404_v14  ;;  %2662 = vmatpush3.bf16.msra.mxu1 %v4404_v14 }
 0x552   : > { %2461 = vmatprep.subr.bf16.mxu0 %v4530_v47  ;;  %2655 = vmatprep.subr.bf16.mxu1 %v4530_v47 }
 0x555   : > { %2462 = vmatpush3.bf16.msra.mxu0 %v4472_v22  ;;  %2663 = vmatpush3.bf16.msra.mxu1 %v4472_v22 }
 0x556   : > { %2463 = vmatprep.subr.bf16.mxu0 %v4534_v50  ;;  %2656 = vmatprep.subr.bf16.mxu1 %v4534_v50 }
 0x559   : > { %2464 = vmatpush3.bf16.msra.mxu0 %v4458_v35  ;;  %2664 = vmatpush3.bf16.msra.mxu1 %v4458_v35 }
 0x55c   : > { %2325 = vmatmul.mubr.msk.bf16.vlgmr.msra.gmra.mrb[0].mxu0 %vm2324_vm12, %v3325_v40  ;;  %2333 = vmatmul.mubr.msk.bf16.vlgmr.msra.gmra.mrb[0].mxu1 %vm2332_vm15, %v3325_v40 }
 0x55d   : > { %2327 = vmatprep.mubr.msk.bf16.mxu0 %vm2326_vm0, %v3325_v40  ;;  %2335 = vmatprep.mubr.msk.bf16.mxu1 %vm2334_vm1, %v3325_v40 }
 0x564   : > { %2329 = vmatmul.mubr.msk.bf16.gmra.mrb[4].mxu0 %vm2328_vm6, %v3325_v40  ;;  %2337 = vmatmul.mubr.msk.bf16.gmra.mrb[4].mxu1 %vm2336_vm7, %v3325_v40 }
 0x62f   : > { %v2465_v48 = vpop.f32.mrb[0].mxu0  ;;  %v2477_v52 = vpop.f32.mrb[0].mxu1 }
 0x630   : > { %v2466_v53 = vpop.f32.mrb[1].mxu0  ;;  %v2478_v19 = vpop.f32.mrb[1].mxu1 }
 0x631   : > { %v2467_v32 = vadd.f32 %v2466_v53, %v2465_v48  ;;  %v2479_v0 = vadd.f32 %v2478_v19, %v2477_v52  ;;  %v2468_v56 = vpop.f32.mrb[2].mxu0  ;;  %v2480_v44 = vpop.f32.mrb[2].mxu1 }
 0x632   : > { %v2469_v39 = vpop.f32.mrb[3].mxu0  ;;  %v2481_v37 = vpop.f32.mrb[3].mxu1 }
 0x633   : > { %v2164_v24 = vadd.f32 %v2467_v32, %v2156_v34  ;;  %v2168_v58 = vadd.f32 %v2479_v0, %v2160_v6  ;;  %v2470_v7 = vadd.f32 %v2469_v39, %v2468_v56  ;;  %v2482_v31 = vadd.f32 %v2481_v37, %v2480_v44 }
 0x635   : > { %2172 = vst [vmem:[%s4607_s22] sm:$0xff] %v2164_v24  ;;  %2176 = vst [vmem:[%s4607_s22 + $0x20] sm:$0xff] %v2168_v58  ;;  %v2165_v33 = vadd.f32 %v2470_v7, %v2157_v15  ;;  %v2169_v45 = vadd.f32 %v2482_v31, %v2161_v16 }
 0x637   : > { %2173 = vst [vmem:[%s4607_s22 + $0x8] sm:$0xff] %v2165_v33  ;;  %2177 = vst [vmem:[%s4607_s22 + $0x28] sm:$0xff] %v2169_v45  ;;  %v2471_v12 = vpop.f32.mrb[4].mxu0  ;;  %v2483_v10 = vpop.f32.mrb[4].mxu1 }
 0x638   : > { %v2472_v20 = vpop.f32.mrb[5].mxu0  ;;  %v2484_v3 = vpop.f32.mrb[5].mxu1 }
 0x639   : > { %v2473_v18 = vadd.f32 %v2472_v20, %v2471_v12  ;;  %v2485_v54 = vadd.f32 %v2484_v3, %v2483_v10  ;;  %v2474_v29 = vpop.f32.mrb[6].mxu0  ;;  %v2486_v27 = vpop.f32.mrb[6].mxu1  ;;  %2022 = sbr.rel (!%p2019_p11) target bundleno = 1340 (0x53c), region = 118 }
 0x63a   : > { %v2475_v9 = vpop.f32.mrb[7].mxu0  ;;  %v2487_v26 = vpop.f32.mrb[7].mxu1 }
 0x63b   : > { %v2166_v5 = vadd.f32 %v2473_v18, %v2158_v13  ;;  %v2170_v62 = vadd.f32 %v2485_v54, %v2162_v36  ;;  %v2476_v11 = vadd.f32 %v2475_v9, %v2474_v29  ;;  %v2488_v40 = vadd.f32 %v2487_v26, %v2486_v27 }
 0x63d   : > { %2174 = vst [vmem:[%s4607_s22 + $0x10] sm:$0xff] %v2166_v5  ;;  %2178 = vst [vmem:[%s4607_s22 + $0x30] sm:$0xff] %v2170_v62  ;;  %v2167_v61 = vadd.f32 %v2476_v11, %v2159_v57  ;;  %v2171_v25 = vadd.f32 %v2488_v40, %v2163_v30 }
 0x63f   : > { %2175 = vst [vmem:[%s4607_s22 + $0x18] sm:$0xff] %v2167_v61  ;;  %2179 = vst [vmem:[%s4607_s22 + $0x38] sm:$0xff] %v2171_v25 }
 0x640 PF:  { %s3326_s14 = smov [#allocation23]  }
 0x641   :  { %s2236_s15 = sshll.u32 %s3326_s14, 4  ;;  %s2237_s15 = int_to_ptr.vmem [resolvable:$true] %s2236_s15 }
 0x642   :  { %s3268_s0 = scalar_lea.vmem %s2237_s15, 512  ;;  %p3273_p13 = scmp.lt.s32.totalorder %s2237_s15, %s2237_s15 }
 0x643   :  { %p3269_p12 = scmp.ne.s32.totalorder %s2237_s15, %s3268_s0  ;;  %p3274_p0 = scmp.lt.s32.totalorder %s3268_s0, %s3268_s0 }
 0x645   :  { %p3275_p1 = por %p3274_p0, %p3273_p13 }
 0x646   :  { %v2183_v48 = vld [vmem:[#allocation2] sm:$0xff]  ;;  %v2184_v52 = vld [vmem:[#allocation2 + $0x8] sm:$0xff]  ;;  %v2185_v53 = vld [vmem:[#allocation2 + $0x10] sm:$0xff] }
 0x647   :  { %v2357_v34 = vpack.c.bf16 %v2184_v52, %v2183_v48  ;;  %v2186_v19 = vld [vmem:[#allocation2 + $0x18] sm:$0xff]  ;;  %v2187_v6 = vld [vmem:[#allocation2 + $0x20] sm:$0xff]  ;;  %v2188_v32 = vld [vmem:[#allocation2 + $0x28] sm:$0xff]  ;;  %p3276_p2 = pnand %p3275_p1, %p3269_p12 }
 0x648   :  { %v2362_v0 = vpack.c.bf16 %v2186_v19, %v2185_v53  ;;  %v2367_v56 = vpack.c.bf16 %v2188_v32, %v2187_v6  ;;  %v2189_v44 = vld [vmem:[#allocation2 + $0x30] sm:$0xff]  ;;  %v2190_v39 = vld [vmem:[#allocation2 + $0x38] sm:$0xff] }
 0x649   :  { %2358 = vst [vmem:[#allocation23] sm:$0xff] %v2357_v34   ;;  %v2372_v15 = vpack.c.bf16 %v2190_v39, %v2189_v44 }
 0x64a   :  { %2374 = vst [vmem:[#allocation23 + $0x8] sm:$0xff] %v2362_v0   ;;  %2375 = vst [vmem:[#allocation23 + $0x10] sm:$0xff] %v2367_v56  }
 0x64b   :  { %2376 = vst [vmem:[#allocation23 + $0x18] sm:$0xff] %v2372_v15  }
 0x64c   :  { %3279 = shalt.err (!%p3276_p2)
}
 0x64d   :  { %s3280_s16 = scalar_lea.hbm %s4659_s12, 512 }
 0x64e   :  { %p3281_p3 = scmp.ne.s32.totalorder %s4659_s12, %s3280_s16  ;;  %p3284_p4 = scmp.lt.u32.totalorder %s3280_s16, %s4659_s12 }
 0x650   :  { %p3286_p5 = pnand %p3284_p4, %p3281_p3 }
 0x652   :  { %3289 = shalt.err (!%p3286_p5)
}
 0x653   :  { %2242 = dma.vmem_to_hbm [thread:$0]  %s2237_s15, 512, %s4659_s12, [#allocation8], %s3317_s9, %s3317_s9, %s3318_s13  }
 0x654   :  { %3306 = dma.done.wait [#allocation8], 512  }
 0x655   :  { %3307 = vsyncadd [#allocation8], 4294966784 }
 0x656   :  { %2246 = vsyncpa [#allocation7], 1 }
 0x657   :  { %2247 = vsyncpa [#allocation10], 1 }
 0x658   :  { %2248 = vsyncpa [#allocation13], 1 }
 0x659   :  { %2249 = vsyncpa [#allocation16], 1 }
 0x65a   :  { %2250 = vsyncpa [#allocation19], 1 }
 0x65b   :  { %2251 = vsyncpa [#allocation22], 1 }
 0x65c   :  { %2252 = vsyncpa [#allocation8], 1 }

</bundles_post_ra>
